<compile_context>
chip_gen: v6e
topology: v6e:2x2x1
jax: 0.10.0
libtpu: 0.0.40
codegen_flags: <defaults>
</compile_context>

<pallas_src>
import functools

import jax
import jax.numpy as jnp
from jax import lax
from jax.experimental import pallas as pl
from jax.experimental.pallas import tpu as pltpu

LANE = 128


def _round_up(n, m):
    return ((n + m - 1) // m) * m


# ------------------------ fused kernel ------------------------
def fused_lstm_fc_kernel(*refs, num_layers, seq_len):
    """refs layout:
        refs[0]                : x      (B_pad, T*D)   f32, batch-first
        refs[1+3l .. 3+3l]     : w_ih_l (D_l, 4*Hp)    (f32 row if D_l==1 else bf16),
                                 w_hh_l (Hp, 4*Hp)     bf16,
                                 b_l    (1, 4*Hp)      f32
        refs[1+3L], refs[2+3L] : fc_w (Hp, Kp) f32, fc_b (1, Kp) f32
        refs[3+3L]             : out (B_pad, Kp) f32
    """
    x_ref = refs[0]
    fc_w_ref = refs[1 + 3 * num_layers]
    fc_b_ref = refs[2 + 3 * num_layers]
    o_ref = refs[3 + 3 * num_layers]

    T = seq_len
    B = x_ref.shape[0]
    D = x_ref.shape[1] // T

    # Weights / biases loaded once per layer; reused by the unrolled time loop.
    w_ih = [refs[1 + 3 * l][...] for l in range(num_layers)]
    w_hh = [refs[2 + 3 * l][...] for l in range(num_layers)]
    bias = [refs[3 + 3 * l][...] for l in range(num_layers)]
    Hp = w_hh[0].shape[0]                      # lane-padded hidden size (128)

    def lstm_cell(pre, c_prev):
        # Gate slices fall exactly on 128-lane vreg boundaries (Hp == LANE),
        # so there is no masked lane-extract work on the serial chain.
        i = jax.nn.sigmoid(pre[:, 0 * Hp:1 * Hp])
        f = jax.nn.sigmoid(pre[:, 1 * Hp:2 * Hp])
        g = jnp.tanh(pre[:, 2 * Hp:3 * Hp])
        o = jax.nn.sigmoid(pre[:, 3 * Hp:4 * Hp])
        c_new = f * c_prev + i * g
        h_new = o * jnp.tanh(c_new)
        return h_new, c_new

    h = [jnp.zeros((B, Hp), jnp.float32) for _ in range(num_layers)]
    c = [jnp.zeros((B, Hp), jnp.float32) for _ in range(num_layers)]

    # Wavefront-interleaved, fully unrolled recurrence: layer l at step t only
    # depends on (layer l-1, step t) and (layer l, step t-1); the critical path
    # is T + num_layers - 1 dependent matmul levels instead of num_layers * T.
    for t in range(T):
        x_t = x_ref[:, t * D:(t + 1) * D]                          # (B, D) f32
        for l in range(num_layers):
            if l == 0 and D == 1:
                # Outer product as a VPU broadcast multiply (no recurrent dep,
                # avoids a degenerate K=1 MXU pass).
                inp = x_t * w_ih[0] + bias[0]
            else:
                src = x_t if l == 0 else h[l - 1]
                inp = jnp.dot(src.astype(w_ih[l].dtype), w_ih[l],
                              preferred_element_type=jnp.float32) + bias[l]
            rec = jnp.dot(h[l].astype(w_hh[l].dtype), w_hh[l],
                          preferred_element_type=jnp.float32)
            h[l], c[l] = lstm_cell(inp + rec, c[l])

    # Linear head on the last timestep of the top layer; lane-dense (128-col)
    # unmasked store, sliced back to num_keys in the wrapper.
    o_ref[...] = (jnp.dot(h[-1], fc_w_ref[...],
                          preferred_element_type=jnp.float32) + fc_b_ref[...])


# ------------------------ parameter preparation ------------------------
def _pad_gate_blocks(w, H, Hp):
    """(D, 4H) PyTorch gate order (i,f,g,o) -> (D, 4*Hp); gate g occupies
    columns [g*Hp, g*Hp + H), zeros elsewhere."""
    out = jnp.zeros((w.shape[0], 4 * Hp), w.dtype)
    for g in range(4):
        out = out.at[:, g * Hp:g * Hp + H].set(w[:, g * H:(g + 1) * H])
    return out


def prepare_params(lstm_params, fc_w, fc_b, hidden_size):
    """One-time weight prep.  Expects PyTorch weights already transposed to
    (in, 4H) / (H, 4H) and b = b_ih + b_hh of shape (1, 4H).  Pads every gate
    block to a full 128-lane slab, casts the MXU operands (recurrent and
    inter-layer weights) to bfloat16, and pads the fc head to 128 lanes."""
    H = hidden_size
    Hp = _round_up(max(H, LANE), LANE)

    prepared = []
    for l, (w_ih, w_hh, b) in enumerate(lstm_params):
        in_dim = w_ih.shape[0]
        assert w_ih.shape == (in_dim, 4 * H), w_ih.shape
        assert w_hh.shape == (H, 4 * H), w_hh.shape
        assert b.shape == (1, 4 * H), b.shape

        w_hh_p = jnp.pad(_pad_gate_blocks(w_hh, H, Hp),
                         ((0, Hp - H), (0, 0))).astype(jnp.bfloat16)
        b_p = _pad_gate_blocks(b.astype(jnp.float32), H, Hp)
        if l == 0:
            w_ih_p = _pad_gate_blocks(w_ih.astype(jnp.float32), H, Hp)
            if in_dim > 1:
                w_ih_p = w_ih_p.astype(jnp.bfloat16)
        else:
            w_ih_p = jnp.pad(_pad_gate_blocks(w_ih, H, Hp),
                             ((0, Hp - in_dim), (0, 0))).astype(jnp.bfloat16)
        prepared.append((w_ih_p, w_hh_p, b_p))

    K = fc_w.shape[1]
    assert fc_w.shape == (H, K), fc_w.shape
    assert fc_b.shape == (1, K), fc_b.shape
    Kp = _round_up(max(K, LANE), LANE)
    fc_w_p = jnp.pad(fc_w.astype(jnp.float32), ((0, Hp - H), (0, Kp - K)))
    fc_b_p = jnp.pad(fc_b.astype(jnp.float32), ((0, 0), (0, Kp - K)))
    return prepared, fc_w_p, fc_b_p, K


# ------------------------ model forward (matches PyTorch Model.forward) ------------------------
def model_forward(x, prepared, fc_w_p, fc_b_p, num_keys):
    """x: (B, T, input_size) batch_first, like the PyTorch module."""
    B, T, D = x.shape
    B_pad = _round_up(B, 8)
    Kp = fc_w_p.shape[1]

    x2d = x.astype(jnp.float32).reshape(B, T * D)      # batch-first, no transpose
    if B_pad != B:
        x2d = jnp.pad(x2d, ((0, B_pad - B), (0, 0)))

    args = [x2d]
    for (w_ih, w_hh, b) in prepared:
        args += [w_ih, w_hh, b]
    args += [fc_w_p, fc_b_p]

    kernel = functools.partial(fused_lstm_fc_kernel,
                               num_layers=len(prepared), seq_len=T)
    out = pl.pallas_call(
        kernel,
        out_shape=jax.ShapeDtypeStruct((B_pad, Kp), jnp.float32),
        in_specs=[pl.BlockSpec(memory_space=pltpu.MemorySpace.VMEM)] * len(args),
        out_specs=pl.BlockSpec(memory_space=pltpu.MemorySpace.VMEM),
    )(*args)
    return out[:B, :num_keys]


# ------------------------ pure-JAX reference ------------------------
def model_forward_ref(x, lstm_params, fc_w, fc_b):
    h_seq = jnp.transpose(x, (1, 0, 2)).astype(jnp.float32)          # (T, B, D)
    for (w_ih, w_hh, b) in lstm_params:
        T, B, _ = h_seq.shape
        H = w_hh.shape[0]

        def step(carry, x_t):
            h, c = carry
            gates = x_t @ w_ih + h @ w_hh + b
            i = jax.nn.sigmoid(gates[:, 0 * H:1 * H])
            f = jax.nn.sigmoid(gates[:, 1 * H:2 * H])
            g = jnp.tanh(gates[:, 2 * H:3 * H])
            o = jax.nn.sigmoid(gates[:, 3 * H:4 * H])
            c_new = f * c + i * g
            h_new = o * jnp.tanh(c_new)
            return (h_new, c_new), h_new

        init = (jnp.zeros((B, H), jnp.float32), jnp.zeros((B, H), jnp.float32))
        _, h_seq = lax.scan(step, init, h_seq)
    return h_seq[-1] @ fc_w + fc_b


if __name__ == "__main__":
    B, T = 2, 8
    input_size, hidden_size, num_layers, num_keys = 1, 32, 2, 8

    key = jax.random.PRNGKey(0)
    bound = 1.0 / float(jnp.sqrt(hidden_size))

    lstm_params = []
    for layer in range(num_layers):
        in_dim = input_size if layer == 0 else hidden_size
        key, k1, k2, k3, k4 = jax.random.split(key, 5)
        w_ih = jax.random.uniform(k1, (in_dim, 4 * hidden_size), jnp.float32, -bound, bound)
        w_hh = jax.random.uniform(k2, (hidden_size, 4 * hidden_size), jnp.float32, -bound, bound)
        b_ih = jax.random.uniform(k3, (1, 4 * hidden_size), jnp.float32, -bound, bound)
        b_hh = jax.random.uniform(k4, (1, 4 * hidden_size), jnp.float32, -bound, bound)
        lstm_params.append((w_ih, w_hh, b_ih + b_hh))

    key, kfw, kfb, kx = jax.random.split(key, 4)
    fc_bound = 1.0 / float(jnp.sqrt(hidden_size))
    fc_w = jax.random.uniform(kfw, (hidden_size, num_keys), jnp.float32, -fc_bound, fc_bound)
    fc_b = jax.random.uniform(kfb, (1, num_keys), jnp.float32, -fc_bound, fc_bound)

    x = jax.random.normal(kx, (B, T, input_size), jnp.float32)

    prepared, fc_w_p, fc_b_p, K = prepare_params(lstm_params, fc_w, fc_b, hidden_size)

    out = model_forward(x, prepared, fc_w_p, fc_b_p, num_keys)
    out = jax.block_until_ready(out)

    ref = model_forward_ref(x, lstm_params, fc_w, fc_b)
    assert out.shape == (B, num_keys)
    # bf16 MXU inputs (f32 accumulation) -> loosened tolerance vs the pure-f32 ref.
    assert jnp.allclose(out, ref, rtol=2e-2, atol=2e-2), float(jnp.max(jnp.abs(out - ref)))

    print("KERNEL_OK")
</pallas_src>

<mosaic_0001>
module attributes {stable_mosaic.version = 11 : i64} {
  func.func @fused_lstm_fc_kernel(%arg0: memref<8x8xf32, #tpu.memory_space<vmem>>, %arg1: memref<1x512xf32, #tpu.memory_space<vmem>>, %arg2: memref<128x512xbf16, #tpu.memory_space<vmem>>, %arg3: memref<1x512xf32, #tpu.memory_space<vmem>>, %arg4: memref<128x512xbf16, #tpu.memory_space<vmem>>, %arg5: memref<128x512xbf16, #tpu.memory_space<vmem>>, %arg6: memref<1x512xf32, #tpu.memory_space<vmem>>, %arg7: memref<128x128xf32, #tpu.memory_space<vmem>>, %arg8: memref<1x128xf32, #tpu.memory_space<vmem>>, %arg9: memref<8x128xf32, #tpu.memory_space<vmem>>) attributes {dimension_semantics = [], scalar_prefetch = 0 : i64, scratch_operands = 0 : i64, tpu.core_type = #tpu.core_type<tc>} {
    %c0 = arith.constant 0 : index
    %c0_0 = arith.constant 0 : index
    %0 = vector.load %arg1[%c0, %c0_0] : memref<1x512xf32, #tpu.memory_space<vmem>>, vector<1x512xf32>
    %c0_1 = arith.constant 0 : index
    %c0_2 = arith.constant 0 : index
    %1 = vector.load %arg4[%c0_1, %c0_2] : memref<128x512xbf16, #tpu.memory_space<vmem>>, vector<128x512xbf16>
    %c0_3 = arith.constant 0 : index
    %c0_4 = arith.constant 0 : index
    %2 = vector.load %arg2[%c0_3, %c0_4] : memref<128x512xbf16, #tpu.memory_space<vmem>>, vector<128x512xbf16>
    %c0_5 = arith.constant 0 : index
    %c0_6 = arith.constant 0 : index
    %3 = vector.load %arg5[%c0_5, %c0_6] : memref<128x512xbf16, #tpu.memory_space<vmem>>, vector<128x512xbf16>
    %c0_7 = arith.constant 0 : index
    %c0_8 = arith.constant 0 : index
    %4 = vector.load %arg3[%c0_7, %c0_8] : memref<1x512xf32, #tpu.memory_space<vmem>>, vector<1x512xf32>
    %c0_9 = arith.constant 0 : index
    %c0_10 = arith.constant 0 : index
    %5 = vector.load %arg6[%c0_9, %c0_10] : memref<1x512xf32, #tpu.memory_space<vmem>>, vector<1x512xf32>
    %cst = arith.constant 0.000000e+00 : f32
    %6 = vector.broadcast %cst : f32 to vector<8x128xf32>
    %cst_11 = arith.constant 0.000000e+00 : f32
    %7 = vector.broadcast %cst_11 : f32 to vector<8x128xf32>
    %cst_12 = arith.constant 0.000000e+00 : f32
    %8 = vector.broadcast %cst_12 : f32 to vector<8x128xf32>
    %cst_13 = arith.constant 0.000000e+00 : f32
    %9 = vector.broadcast %cst_13 : f32 to vector<8x128xf32>
    %c0_14 = arith.constant 0 : index
    %c0_15 = arith.constant 0 : index
    %10 = vector.load %arg0[%c0_14, %c0_15] : memref<8x8xf32, #tpu.memory_space<vmem>>, vector<8x1xf32>
    %11 = vector.broadcast %10 : vector<8x1xf32> to vector<8x512xf32>
    %12 = vector.broadcast %0 : vector<1x512xf32> to vector<8x512xf32>
    %13 = arith.mulf %11, %12 : vector<8x512xf32>
    %14 = vector.broadcast %4 : vector<1x512xf32> to vector<8x512xf32>
    %15 = arith.addf %13, %14 : vector<8x512xf32>
    %16 = arith.truncf %6 : vector<8x128xf32> to vector<8x128xbf16>
    %cst_16 = arith.constant dense<0.000000e+00> : vector<8x512xf32>
    %17 = tpu.matmul %16, %2, %cst_16 {dimension_numbers = #tpu.dot_dimension_numbers<[1], [0], [0], [1], [0, 0, 1, 1], [], []>} : vector<8x128xbf16>, vector<128x512xbf16>, vector<8x512xf32> -> vector<8x512xf32>
    %18 = arith.addf %15, %17 : vector<8x512xf32>
    %19 = vector.extract_strided_slice %18 {offsets = [0, 0], sizes = [8, 128], strides = [1, 1]} : vector<8x512xf32> to vector<8x128xf32>
    %20 = arith.negf %19 : vector<8x128xf32>
    %21 = math.exp %20 : vector<8x128xf32>
    %cst_17 = arith.constant 1.000000e+00 : f32
    %22 = vector.broadcast %cst_17 : f32 to vector<8x128xf32>
    %23 = arith.addf %22, %21 : vector<8x128xf32>
    %24 = arith.divf %22, %23 : vector<8x128xf32>
    %25 = vector.extract_strided_slice %18 {offsets = [0, 128], sizes = [8, 128], strides = [1, 1]} : vector<8x512xf32> to vector<8x128xf32>
    %26 = arith.negf %25 : vector<8x128xf32>
    %27 = math.exp %26 : vector<8x128xf32>
    %cst_18 = arith.constant 1.000000e+00 : f32
    %28 = vector.broadcast %cst_18 : f32 to vector<8x128xf32>
    %29 = arith.addf %28, %27 : vector<8x128xf32>
    %30 = arith.divf %28, %29 : vector<8x128xf32>
    %31 = vector.extract_strided_slice %18 {offsets = [0, 256], sizes = [8, 128], strides = [1, 1]} : vector<8x512xf32> to vector<8x128xf32>
    %32 = math.tanh %31 : vector<8x128xf32>
    %33 = vector.extract_strided_slice %18 {offsets = [0, 384], sizes = [8, 128], strides = [1, 1]} : vector<8x512xf32> to vector<8x128xf32>
    %34 = arith.negf %33 : vector<8x128xf32>
    %35 = math.exp %34 : vector<8x128xf32>
    %cst_19 = arith.constant 1.000000e+00 : f32
    %36 = vector.broadcast %cst_19 : f32 to vector<8x128xf32>
    %37 = arith.addf %36, %35 : vector<8x128xf32>
    %38 = arith.divf %36, %37 : vector<8x128xf32>
    %39 = arith.mulf %30, %8 : vector<8x128xf32>
    %40 = arith.mulf %24, %32 : vector<8x128xf32>
    %41 = arith.addf %39, %40 : vector<8x128xf32>
    %42 = math.tanh %41 : vector<8x128xf32>
    %43 = arith.mulf %38, %42 : vector<8x128xf32>
    %44 = arith.truncf %43 : vector<8x128xf32> to vector<8x128xbf16>
    %cst_20 = arith.constant dense<0.000000e+00> : vector<8x512xf32>
    %45 = tpu.matmul %44, %1, %cst_20 {dimension_numbers = #tpu.dot_dimension_numbers<[1], [0], [0], [1], [0, 0, 1, 1], [], []>} : vector<8x128xbf16>, vector<128x512xbf16>, vector<8x512xf32> -> vector<8x512xf32>
    %46 = vector.broadcast %5 : vector<1x512xf32> to vector<8x512xf32>
    %47 = arith.addf %45, %46 : vector<8x512xf32>
    %48 = arith.truncf %7 : vector<8x128xf32> to vector<8x128xbf16>
    %cst_21 = arith.constant dense<0.000000e+00> : vector<8x512xf32>
    %49 = tpu.matmul %48, %3, %cst_21 {dimension_numbers = #tpu.dot_dimension_numbers<[1], [0], [0], [1], [0, 0, 1, 1], [], []>} : vector<8x128xbf16>, vector<128x512xbf16>, vector<8x512xf32> -> vector<8x512xf32>
    %50 = arith.addf %47, %49 : vector<8x512xf32>
    %51 = vector.extract_strided_slice %50 {offsets = [0, 0], sizes = [8, 128], strides = [1, 1]} : vector<8x512xf32> to vector<8x128xf32>
    %52 = arith.negf %51 : vector<8x128xf32>
    %53 = math.exp %52 : vector<8x128xf32>
    %cst_22 = arith.constant 1.000000e+00 : f32
    %54 = vector.broadcast %cst_22 : f32 to vector<8x128xf32>
    %55 = arith.addf %54, %53 : vector<8x128xf32>
    %56 = arith.divf %54, %55 : vector<8x128xf32>
    %57 = vector.extract_strided_slice %50 {offsets = [0, 128], sizes = [8, 128], strides = [1, 1]} : vector<8x512xf32> to vector<8x128xf32>
    %58 = arith.negf %57 : vector<8x128xf32>
    %59 = math.exp %58 : vector<8x128xf32>
    %cst_23 = arith.constant 1.000000e+00 : f32
    %60 = vector.broadcast %cst_23 : f32 to vector<8x128xf32>
    %61 = arith.addf %60, %59 : vector<8x128xf32>
    %62 = arith.divf %60, %61 : vector<8x128xf32>
    %63 = vector.extract_strided_slice %50 {offsets = [0, 256], sizes = [8, 128], strides = [1, 1]} : vector<8x512xf32> to vector<8x128xf32>
    %64 = math.tanh %63 : vector<8x128xf32>
    %65 = vector.extract_strided_slice %50 {offsets = [0, 384], sizes = [8, 128], strides = [1, 1]} : vector<8x512xf32> to vector<8x128xf32>
    %66 = arith.negf %65 : vector<8x128xf32>
    %67 = math.exp %66 : vector<8x128xf32>
    %cst_24 = arith.constant 1.000000e+00 : f32
    %68 = vector.broadcast %cst_24 : f32 to vector<8x128xf32>
    %69 = arith.addf %68, %67 : vector<8x128xf32>
    %70 = arith.divf %68, %69 : vector<8x128xf32>
    %71 = arith.mulf %62, %9 : vector<8x128xf32>
    %72 = arith.mulf %56, %64 : vector<8x128xf32>
    %73 = arith.addf %71, %72 : vector<8x128xf32>
    %74 = math.tanh %73 : vector<8x128xf32>
    %75 = arith.mulf %70, %74 : vector<8x128xf32>
    %c0_25 = arith.constant 0 : index
    %c1 = arith.constant 1 : index
    %76 = vector.load %arg0[%c0_25, %c1] : memref<8x8xf32, #tpu.memory_space<vmem>>, vector<8x1xf32>
    %77 = vector.broadcast %76 : vector<8x1xf32> to vector<8x512xf32>
    %78 = vector.broadcast %0 : vector<1x512xf32> to vector<8x512xf32>
    %79 = arith.mulf %77, %78 : vector<8x512xf32>
    %80 = vector.broadcast %4 : vector<1x512xf32> to vector<8x512xf32>
    %81 = arith.addf %79, %80 : vector<8x512xf32>
    %82 = arith.truncf %43 : vector<8x128xf32> to vector<8x128xbf16>
    %cst_26 = arith.constant dense<0.000000e+00> : vector<8x512xf32>
    %83 = tpu.matmul %82, %2, %cst_26 {dimension_numbers = #tpu.dot_dimension_numbers<[1], [0], [0], [1], [0, 0, 1, 1], [], []>} : vector<8x128xbf16>, vector<128x512xbf16>, vector<8x512xf32> -> vector<8x512xf32>
    %84 = arith.addf %81, %83 : vector<8x512xf32>
    %85 = vector.extract_strided_slice %84 {offsets = [0, 0], sizes = [8, 128], strides = [1, 1]} : vector<8x512xf32> to vector<8x128xf32>
    %86 = arith.negf %85 : vector<8x128xf32>
    %87 = math.exp %86 : vector<8x128xf32>
    %cst_27 = arith.constant 1.000000e+00 : f32
    %88 = vector.broadcast %cst_27 : f32 to vector<8x128xf32>
    %89 = arith.addf %88, %87 : vector<8x128xf32>
    %90 = arith.divf %88, %89 : vector<8x128xf32>
    %91 = vector.extract_strided_slice %84 {offsets = [0, 128], sizes = [8, 128], strides = [1, 1]} : vector<8x512xf32> to vector<8x128xf32>
    %92 = arith.negf %91 : vector<8x128xf32>
    %93 = math.exp %92 : vector<8x128xf32>
    %cst_28 = arith.constant 1.000000e+00 : f32
    %94 = vector.broadcast %cst_28 : f32 to vector<8x128xf32>
    %95 = arith.addf %94, %93 : vector<8x128xf32>
    %96 = arith.divf %94, %95 : vector<8x128xf32>
    %97 = vector.extract_strided_slice %84 {offsets = [0, 256], sizes = [8, 128], strides = [1, 1]} : vector<8x512xf32> to vector<8x128xf32>
    %98 = math.tanh %97 : vector<8x128xf32>
    %99 = vector.extract_strided_slice %84 {offsets = [0, 384], sizes = [8, 128], strides = [1, 1]} : vector<8x512xf32> to vector<8x128xf32>
    %100 = arith.negf %99 : vector<8x128xf32>
    %101 = math.exp %100 : vector<8x128xf32>
    %cst_29 = arith.constant 1.000000e+00 : f32
    %102 = vector.broadcast %cst_29 : f32 to vector<8x128xf32>
    %103 = arith.addf %102, %101 : vector<8x128xf32>
    %104 = arith.divf %102, %103 : vector<8x128xf32>
    %105 = arith.mulf %96, %41 : vector<8x128xf32>
    %106 = arith.mulf %90, %98 : vector<8x128xf32>
    %107 = arith.addf %105, %106 : vector<8x128xf32>
    %108 = math.tanh %107 : vector<8x128xf32>
    %109 = arith.mulf %104, %108 : vector<8x128xf32>
    %110 = arith.truncf %109 : vector<8x128xf32> to vector<8x128xbf16>
    %cst_30 = arith.constant dense<0.000000e+00> : vector<8x512xf32>
    %111 = tpu.matmul %110, %1, %cst_30 {dimension_numbers = #tpu.dot_dimension_numbers<[1], [0], [0], [1], [0, 0, 1, 1], [], []>} : vector<8x128xbf16>, vector<128x512xbf16>, vector<8x512xf32> -> vector<8x512xf32>
    %112 = vector.broadcast %5 : vector<1x512xf32> to vector<8x512xf32>
    %113 = arith.addf %111, %112 : vector<8x512xf32>
    %114 = arith.truncf %75 : vector<8x128xf32> to vector<8x128xbf16>
    %cst_31 = arith.constant dense<0.000000e+00> : vector<8x512xf32>
    %115 = tpu.matmul %114, %3, %cst_31 {dimension_numbers = #tpu.dot_dimension_numbers<[1], [0], [0], [1], [0, 0, 1, 1], [], []>} : vector<8x128xbf16>, vector<128x512xbf16>, vector<8x512xf32> -> vector<8x512xf32>
    %116 = arith.addf %113, %115 : vector<8x512xf32>
    %117 = vector.extract_strided_slice %116 {offsets = [0, 0], sizes = [8, 128], strides = [1, 1]} : vector<8x512xf32> to vector<8x128xf32>
    %118 = arith.negf %117 : vector<8x128xf32>
    %119 = math.exp %118 : vector<8x128xf32>
    %cst_32 = arith.constant 1.000000e+00 : f32
    %120 = vector.broadcast %cst_32 : f32 to vector<8x128xf32>
    %121 = arith.addf %120, %119 : vector<8x128xf32>
    %122 = arith.divf %120, %121 : vector<8x128xf32>
    %123 = vector.extract_strided_slice %116 {offsets = [0, 128], sizes = [8, 128], strides = [1, 1]} : vector<8x512xf32> to vector<8x128xf32>
    %124 = arith.negf %123 : vector<8x128xf32>
    %125 = math.exp %124 : vector<8x128xf32>
    %cst_33 = arith.constant 1.000000e+00 : f32
    %126 = vector.broadcast %cst_33 : f32 to vector<8x128xf32>
    %127 = arith.addf %126, %125 : vector<8x128xf32>
    %128 = arith.divf %126, %127 : vector<8x128xf32>
    %129 = vector.extract_strided_slice %116 {offsets = [0, 256], sizes = [8, 128], strides = [1, 1]} : vector<8x512xf32> to vector<8x128xf32>
    %130 = math.tanh %129 : vector<8x128xf32>
    %131 = vector.extract_strided_slice %116 {offsets = [0, 384], sizes = [8, 128], strides = [1, 1]} : vector<8x512xf32> to vector<8x128xf32>
    %132 = arith.negf %131 : vector<8x128xf32>
    %133 = math.exp %132 : vector<8x128xf32>
    %cst_34 = arith.constant 1.000000e+00 : f32
    %134 = vector.broadcast %cst_34 : f32 to vector<8x128xf32>
    %135 = arith.addf %134, %133 : vector<8x128xf32>
    %136 = arith.divf %134, %135 : vector<8x128xf32>
    %137 = arith.mulf %128, %73 : vector<8x128xf32>
    %138 = arith.mulf %122, %130 : vector<8x128xf32>
    %139 = arith.addf %137, %138 : vector<8x128xf32>
    %140 = math.tanh %139 : vector<8x128xf32>
    %141 = arith.mulf %136, %140 : vector<8x128xf32>
    %c0_35 = arith.constant 0 : index
    %c2 = arith.constant 2 : index
    %142 = vector.load %arg0[%c0_35, %c2] : memref<8x8xf32, #tpu.memory_space<vmem>>, vector<8x1xf32>
    %143 = vector.broadcast %142 : vector<8x1xf32> to vector<8x512xf32>
    %144 = vector.broadcast %0 : vector<1x512xf32> to vector<8x512xf32>
    %145 = arith.mulf %143, %144 : vector<8x512xf32>
    %146 = vector.broadcast %4 : vector<1x512xf32> to vector<8x512xf32>
    %147 = arith.addf %145, %146 : vector<8x512xf32>
    %148 = arith.truncf %109 : vector<8x128xf32> to vector<8x128xbf16>
    %cst_36 = arith.constant dense<0.000000e+00> : vector<8x512xf32>
    %149 = tpu.matmul %148, %2, %cst_36 {dimension_numbers = #tpu.dot_dimension_numbers<[1], [0], [0], [1], [0, 0, 1, 1], [], []>} : vector<8x128xbf16>, vector<128x512xbf16>, vector<8x512xf32> -> vector<8x512xf32>
    %150 = arith.addf %147, %149 : vector<8x512xf32>
    %151 = vector.extract_strided_slice %150 {offsets = [0, 0], sizes = [8, 128], strides = [1, 1]} : vector<8x512xf32> to vector<8x128xf32>
    %152 = arith.negf %151 : vector<8x128xf32>
    %153 = math.exp %152 : vector<8x128xf32>
    %cst_37 = arith.constant 1.000000e+00 : f32
    %154 = vector.broadcast %cst_37 : f32 to vector<8x128xf32>
    %155 = arith.addf %154, %153 : vector<8x128xf32>
    %156 = arith.divf %154, %155 : vector<8x128xf32>
    %157 = vector.extract_strided_slice %150 {offsets = [0, 128], sizes = [8, 128], strides = [1, 1]} : vector<8x512xf32> to vector<8x128xf32>
    %158 = arith.negf %157 : vector<8x128xf32>
    %159 = math.exp %158 : vector<8x128xf32>
    %cst_38 = arith.constant 1.000000e+00 : f32
    %160 = vector.broadcast %cst_38 : f32 to vector<8x128xf32>
    %161 = arith.addf %160, %159 : vector<8x128xf32>
    %162 = arith.divf %160, %161 : vector<8x128xf32>
    %163 = vector.extract_strided_slice %150 {offsets = [0, 256], sizes = [8, 128], strides = [1, 1]} : vector<8x512xf32> to vector<8x128xf32>
    %164 = math.tanh %163 : vector<8x128xf32>
    %165 = vector.extract_strided_slice %150 {offsets = [0, 384], sizes = [8, 128], strides = [1, 1]} : vector<8x512xf32> to vector<8x128xf32>
    %166 = arith.negf %165 : vector<8x128xf32>
    %167 = math.exp %166 : vector<8x128xf32>
    %cst_39 = arith.constant 1.000000e+00 : f32
    %168 = vector.broadcast %cst_39 : f32 to vector<8x128xf32>
    %169 = arith.addf %168, %167 : vector<8x128xf32>
    %170 = arith.divf %168, %169 : vector<8x128xf32>
    %171 = arith.mulf %162, %107 : vector<8x128xf32>
    %172 = arith.mulf %156, %164 : vector<8x128xf32>
    %173 = arith.addf %171, %172 : vector<8x128xf32>
    %174 = math.tanh %173 : vector<8x128xf32>
    %175 = arith.mulf %170, %174 : vector<8x128xf32>
    %176 = arith.truncf %175 : vector<8x128xf32> to vector<8x128xbf16>
    %cst_40 = arith.constant dense<0.000000e+00> : vector<8x512xf32>
    %177 = tpu.matmul %176, %1, %cst_40 {dimension_numbers = #tpu.dot_dimension_numbers<[1], [0], [0], [1], [0, 0, 1, 1], [], []>} : vector<8x128xbf16>, vector<128x512xbf16>, vector<8x512xf32> -> vector<8x512xf32>
    %178 = vector.broadcast %5 : vector<1x512xf32> to vector<8x512xf32>
    %179 = arith.addf %177, %178 : vector<8x512xf32>
    %180 = arith.truncf %141 : vector<8x128xf32> to vector<8x128xbf16>
    %cst_41 = arith.constant dense<0.000000e+00> : vector<8x512xf32>
    %181 = tpu.matmul %180, %3, %cst_41 {dimension_numbers = #tpu.dot_dimension_numbers<[1], [0], [0], [1], [0, 0, 1, 1], [], []>} : vector<8x128xbf16>, vector<128x512xbf16>, vector<8x512xf32> -> vector<8x512xf32>
    %182 = arith.addf %179, %181 : vector<8x512xf32>
    %183 = vector.extract_strided_slice %182 {offsets = [0, 0], sizes = [8, 128], strides = [1, 1]} : vector<8x512xf32> to vector<8x128xf32>
    %184 = arith.negf %183 : vector<8x128xf32>
    %185 = math.exp %184 : vector<8x128xf32>
    %cst_42 = arith.constant 1.000000e+00 : f32
    %186 = vector.broadcast %cst_42 : f32 to vector<8x128xf32>
    %187 = arith.addf %186, %185 : vector<8x128xf32>
    %188 = arith.divf %186, %187 : vector<8x128xf32>
    %189 = vector.extract_strided_slice %182 {offsets = [0, 128], sizes = [8, 128], strides = [1, 1]} : vector<8x512xf32> to vector<8x128xf32>
    %190 = arith.negf %189 : vector<8x128xf32>
    %191 = math.exp %190 : vector<8x128xf32>
    %cst_43 = arith.constant 1.000000e+00 : f32
    %192 = vector.broadcast %cst_43 : f32 to vector<8x128xf32>
    %193 = arith.addf %192, %191 : vector<8x128xf32>
    %194 = arith.divf %192, %193 : vector<8x128xf32>
    %195 = vector.extract_strided_slice %182 {offsets = [0, 256], sizes = [8, 128], strides = [1, 1]} : vector<8x512xf32> to vector<8x128xf32>
    %196 = math.tanh %195 : vector<8x128xf32>
    %197 = vector.extract_strided_slice %182 {offsets = [0, 384], sizes = [8, 128], strides = [1, 1]} : vector<8x512xf32> to vector<8x128xf32>
    %198 = arith.negf %197 : vector<8x128xf32>
    %199 = math.exp %198 : vector<8x128xf32>
    %cst_44 = arith.constant 1.000000e+00 : f32
    %200 = vector.broadcast %cst_44 : f32 to vector<8x128xf32>
    %201 = arith.addf %200, %199 : vector<8x128xf32>
    %202 = arith.divf %200, %201 : vector<8x128xf32>
    %203 = arith.mulf %194, %139 : vector<8x128xf32>
    %204 = arith.mulf %188, %196 : vector<8x128xf32>
    %205 = arith.addf %203, %204 : vector<8x128xf32>
    %206 = math.tanh %205 : vector<8x128xf32>
    %207 = arith.mulf %202, %206 : vector<8x128xf32>
    %c0_45 = arith.constant 0 : index
    %c3 = arith.constant 3 : index
    %208 = vector.load %arg0[%c0_45, %c3] : memref<8x8xf32, #tpu.memory_space<vmem>>, vector<8x1xf32>
    %209 = vector.broadcast %208 : vector<8x1xf32> to vector<8x512xf32>
    %210 = vector.broadcast %0 : vector<1x512xf32> to vector<8x512xf32>
    %211 = arith.mulf %209, %210 : vector<8x512xf32>
    %212 = vector.broadcast %4 : vector<1x512xf32> to vector<8x512xf32>
    %213 = arith.addf %211, %212 : vector<8x512xf32>
    %214 = arith.truncf %175 : vector<8x128xf32> to vector<8x128xbf16>
    %cst_46 = arith.constant dense<0.000000e+00> : vector<8x512xf32>
    %215 = tpu.matmul %214, %2, %cst_46 {dimension_numbers = #tpu.dot_dimension_numbers<[1], [0], [0], [1], [0, 0, 1, 1], [], []>} : vector<8x128xbf16>, vector<128x512xbf16>, vector<8x512xf32> -> vector<8x512xf32>
    %216 = arith.addf %213, %215 : vector<8x512xf32>
    %217 = vector.extract_strided_slice %216 {offsets = [0, 0], sizes = [8, 128], strides = [1, 1]} : vector<8x512xf32> to vector<8x128xf32>
    %218 = arith.negf %217 : vector<8x128xf32>
    %219 = math.exp %218 : vector<8x128xf32>
    %cst_47 = arith.constant 1.000000e+00 : f32
    %220 = vector.broadcast %cst_47 : f32 to vector<8x128xf32>
    %221 = arith.addf %220, %219 : vector<8x128xf32>
    %222 = arith.divf %220, %221 : vector<8x128xf32>
    %223 = vector.extract_strided_slice %216 {offsets = [0, 128], sizes = [8, 128], strides = [1, 1]} : vector<8x512xf32> to vector<8x128xf32>
    %224 = arith.negf %223 : vector<8x128xf32>
    %225 = math.exp %224 : vector<8x128xf32>
    %cst_48 = arith.constant 1.000000e+00 : f32
    %226 = vector.broadcast %cst_48 : f32 to vector<8x128xf32>
    %227 = arith.addf %226, %225 : vector<8x128xf32>
    %228 = arith.divf %226, %227 : vector<8x128xf32>
    %229 = vector.extract_strided_slice %216 {offsets = [0, 256], sizes = [8, 128], strides = [1, 1]} : vector<8x512xf32> to vector<8x128xf32>
    %230 = math.tanh %229 : vector<8x128xf32>
    %231 = vector.extract_strided_slice %216 {offsets = [0, 384], sizes = [8, 128], strides = [1, 1]} : vector<8x512xf32> to vector<8x128xf32>
    %232 = arith.negf %231 : vector<8x128xf32>
    %233 = math.exp %232 : vector<8x128xf32>
    %cst_49 = arith.constant 1.000000e+00 : f32
    %234 = vector.broadcast %cst_49 : f32 to vector<8x128xf32>
    %235 = arith.addf %234, %233 : vector<8x128xf32>
    %236 = arith.divf %234, %235 : vector<8x128xf32>
    %237 = arith.mulf %228, %173 : vector<8x128xf32>
    %238 = arith.mulf %222, %230 : vector<8x128xf32>
    %239 = arith.addf %237, %238 : vector<8x128xf32>
    %240 = math.tanh %239 : vector<8x128xf32>
    %241 = arith.mulf %236, %240 : vector<8x128xf32>
    %242 = arith.truncf %241 : vector<8x128xf32> to vector<8x128xbf16>
    %cst_50 = arith.constant dense<0.000000e+00> : vector<8x512xf32>
    %243 = tpu.matmul %242, %1, %cst_50 {dimension_numbers = #tpu.dot_dimension_numbers<[1], [0], [0], [1], [0, 0, 1, 1], [], []>} : vector<8x128xbf16>, vector<128x512xbf16>, vector<8x512xf32> -> vector<8x512xf32>
    %244 = vector.broadcast %5 : vector<1x512xf32> to vector<8x512xf32>
    %245 = arith.addf %243, %244 : vector<8x512xf32>
    %246 = arith.truncf %207 : vector<8x128xf32> to vector<8x128xbf16>
    %cst_51 = arith.constant dense<0.000000e+00> : vector<8x512xf32>
    %247 = tpu.matmul %246, %3, %cst_51 {dimension_numbers = #tpu.dot_dimension_numbers<[1], [0], [0], [1], [0, 0, 1, 1], [], []>} : vector<8x128xbf16>, vector<128x512xbf16>, vector<8x512xf32> -> vector<8x512xf32>
    %248 = arith.addf %245, %247 : vector<8x512xf32>
    %249 = vector.extract_strided_slice %248 {offsets = [0, 0], sizes = [8, 128], strides = [1, 1]} : vector<8x512xf32> to vector<8x128xf32>
    %250 = arith.negf %249 : vector<8x128xf32>
    %251 = math.exp %250 : vector<8x128xf32>
    %cst_52 = arith.constant 1.000000e+00 : f32
    %252 = vector.broadcast %cst_52 : f32 to vector<8x128xf32>
    %253 = arith.addf %252, %251 : vector<8x128xf32>
    %254 = arith.divf %252, %253 : vector<8x128xf32>
    %255 = vector.extract_strided_slice %248 {offsets = [0, 128], sizes = [8, 128], strides = [1, 1]} : vector<8x512xf32> to vector<8x128xf32>
    %256 = arith.negf %255 : vector<8x128xf32>
    %257 = math.exp %256 : vector<8x128xf32>
    %cst_53 = arith.constant 1.000000e+00 : f32
    %258 = vector.broadcast %cst_53 : f32 to vector<8x128xf32>
    %259 = arith.addf %258, %257 : vector<8x128xf32>
    %260 = arith.divf %258, %259 : vector<8x128xf32>
    %261 = vector.extract_strided_slice %248 {offsets = [0, 256], sizes = [8, 128], strides = [1, 1]} : vector<8x512xf32> to vector<8x128xf32>
    %262 = math.tanh %261 : vector<8x128xf32>
    %263 = vector.extract_strided_slice %248 {offsets = [0, 384], sizes = [8, 128], strides = [1, 1]} : vector<8x512xf32> to vector<8x128xf32>
    %264 = arith.negf %263 : vector<8x128xf32>
    %265 = math.exp %264 : vector<8x128xf32>
    %cst_54 = arith.constant 1.000000e+00 : f32
    %266 = vector.broadcast %cst_54 : f32 to vector<8x128xf32>
    %267 = arith.addf %266, %265 : vector<8x128xf32>
    %268 = arith.divf %266, %267 : vector<8x128xf32>
    %269 = arith.mulf %260, %205 : vector<8x128xf32>
    %270 = arith.mulf %254, %262 : vector<8x128xf32>
    %271 = arith.addf %269, %270 : vector<8x128xf32>
    %272 = math.tanh %271 : vector<8x128xf32>
    %273 = arith.mulf %268, %272 : vector<8x128xf32>
    %c0_55 = arith.constant 0 : index
    %c4 = arith.constant 4 : index
    %274 = vector.load %arg0[%c0_55, %c4] : memref<8x8xf32, #tpu.memory_space<vmem>>, vector<8x1xf32>
    %275 = vector.broadcast %274 : vector<8x1xf32> to vector<8x512xf32>
    %276 = vector.broadcast %0 : vector<1x512xf32> to vector<8x512xf32>
    %277 = arith.mulf %275, %276 : vector<8x512xf32>
    %278 = vector.broadcast %4 : vector<1x512xf32> to vector<8x512xf32>
    %279 = arith.addf %277, %278 : vector<8x512xf32>
    %280 = arith.truncf %241 : vector<8x128xf32> to vector<8x128xbf16>
    %cst_56 = arith.constant dense<0.000000e+00> : vector<8x512xf32>
    %281 = tpu.matmul %280, %2, %cst_56 {dimension_numbers = #tpu.dot_dimension_numbers<[1], [0], [0], [1], [0, 0, 1, 1], [], []>} : vector<8x128xbf16>, vector<128x512xbf16>, vector<8x512xf32> -> vector<8x512xf32>
    %282 = arith.addf %279, %281 : vector<8x512xf32>
    %283 = vector.extract_strided_slice %282 {offsets = [0, 0], sizes = [8, 128], strides = [1, 1]} : vector<8x512xf32> to vector<8x128xf32>
    %284 = arith.negf %283 : vector<8x128xf32>
    %285 = math.exp %284 : vector<8x128xf32>
    %cst_57 = arith.constant 1.000000e+00 : f32
    %286 = vector.broadcast %cst_57 : f32 to vector<8x128xf32>
    %287 = arith.addf %286, %285 : vector<8x128xf32>
    %288 = arith.divf %286, %287 : vector<8x128xf32>
    %289 = vector.extract_strided_slice %282 {offsets = [0, 128], sizes = [8, 128], strides = [1, 1]} : vector<8x512xf32> to vector<8x128xf32>
    %290 = arith.negf %289 : vector<8x128xf32>
    %291 = math.exp %290 : vector<8x128xf32>
    %cst_58 = arith.constant 1.000000e+00 : f32
    %292 = vector.broadcast %cst_58 : f32 to vector<8x128xf32>
    %293 = arith.addf %292, %291 : vector<8x128xf32>
    %294 = arith.divf %292, %293 : vector<8x128xf32>
    %295 = vector.extract_strided_slice %282 {offsets = [0, 256], sizes = [8, 128], strides = [1, 1]} : vector<8x512xf32> to vector<8x128xf32>
    %296 = math.tanh %295 : vector<8x128xf32>
    %297 = vector.extract_strided_slice %282 {offsets = [0, 384], sizes = [8, 128], strides = [1, 1]} : vector<8x512xf32> to vector<8x128xf32>
    %298 = arith.negf %297 : vector<8x128xf32>
    %299 = math.exp %298 : vector<8x128xf32>
    %cst_59 = arith.constant 1.000000e+00 : f32
    %300 = vector.broadcast %cst_59 : f32 to vector<8x128xf32>
    %301 = arith.addf %300, %299 : vector<8x128xf32>
    %302 = arith.divf %300, %301 : vector<8x128xf32>
    %303 = arith.mulf %294, %239 : vector<8x128xf32>
    %304 = arith.mulf %288, %296 : vector<8x128xf32>
    %305 = arith.addf %303, %304 : vector<8x128xf32>
    %306 = math.tanh %305 : vector<8x128xf32>
    %307 = arith.mulf %302, %306 : vector<8x128xf32>
    %308 = arith.truncf %307 : vector<8x128xf32> to vector<8x128xbf16>
    %cst_60 = arith.constant dense<0.000000e+00> : vector<8x512xf32>
    %309 = tpu.matmul %308, %1, %cst_60 {dimension_numbers = #tpu.dot_dimension_numbers<[1], [0], [0], [1], [0, 0, 1, 1], [], []>} : vector<8x128xbf16>, vector<128x512xbf16>, vector<8x512xf32> -> vector<8x512xf32>
    %310 = vector.broadcast %5 : vector<1x512xf32> to vector<8x512xf32>
    %311 = arith.addf %309, %310 : vector<8x512xf32>
    %312 = arith.truncf %273 : vector<8x128xf32> to vector<8x128xbf16>
    %cst_61 = arith.constant dense<0.000000e+00> : vector<8x512xf32>
    %313 = tpu.matmul %312, %3, %cst_61 {dimension_numbers = #tpu.dot_dimension_numbers<[1], [0], [0], [1], [0, 0, 1, 1], [], []>} : vector<8x128xbf16>, vector<128x512xbf16>, vector<8x512xf32> -> vector<8x512xf32>
    %314 = arith.addf %311, %313 : vector<8x512xf32>
    %315 = vector.extract_strided_slice %314 {offsets = [0, 0], sizes = [8, 128], strides = [1, 1]} : vector<8x512xf32> to vector<8x128xf32>
    %316 = arith.negf %315 : vector<8x128xf32>
    %317 = math.exp %316 : vector<8x128xf32>
    %cst_62 = arith.constant 1.000000e+00 : f32
    %318 = vector.broadcast %cst_62 : f32 to vector<8x128xf32>
    %319 = arith.addf %318, %317 : vector<8x128xf32>
    %320 = arith.divf %318, %319 : vector<8x128xf32>
    %321 = vector.extract_strided_slice %314 {offsets = [0, 128], sizes = [8, 128], strides = [1, 1]} : vector<8x512xf32> to vector<8x128xf32>
    %322 = arith.negf %321 : vector<8x128xf32>
    %323 = math.exp %322 : vector<8x128xf32>
    %cst_63 = arith.constant 1.000000e+00 : f32
    %324 = vector.broadcast %cst_63 : f32 to vector<8x128xf32>
    %325 = arith.addf %324, %323 : vector<8x128xf32>
    %326 = arith.divf %324, %325 : vector<8x128xf32>
    %327 = vector.extract_strided_slice %314 {offsets = [0, 256], sizes = [8, 128], strides = [1, 1]} : vector<8x512xf32> to vector<8x128xf32>
    %328 = math.tanh %327 : vector<8x128xf32>
    %329 = vector.extract_strided_slice %314 {offsets = [0, 384], sizes = [8, 128], strides = [1, 1]} : vector<8x512xf32> to vector<8x128xf32>
    %330 = arith.negf %329 : vector<8x128xf32>
    %331 = math.exp %330 : vector<8x128xf32>
    %cst_64 = arith.constant 1.000000e+00 : f32
    %332 = vector.broadcast %cst_64 : f32 to vector<8x128xf32>
    %333 = arith.addf %332, %331 : vector<8x128xf32>
    %334 = arith.divf %332, %333 : vector<8x128xf32>
    %335 = arith.mulf %326, %271 : vector<8x128xf32>
    %336 = arith.mulf %320, %328 : vector<8x128xf32>
    %337 = arith.addf %335, %336 : vector<8x128xf32>
    %338 = math.tanh %337 : vector<8x128xf32>
    %339 = arith.mulf %334, %338 : vector<8x128xf32>
    %c0_65 = arith.constant 0 : index
    %c5 = arith.constant 5 : index
    %340 = vector.load %arg0[%c0_65, %c5] : memref<8x8xf32, #tpu.memory_space<vmem>>, vector<8x1xf32>
    %341 = vector.broadcast %340 : vector<8x1xf32> to vector<8x512xf32>
    %342 = vector.broadcast %0 : vector<1x512xf32> to vector<8x512xf32>
    %343 = arith.mulf %341, %342 : vector<8x512xf32>
    %344 = vector.broadcast %4 : vector<1x512xf32> to vector<8x512xf32>
    %345 = arith.addf %343, %344 : vector<8x512xf32>
    %346 = arith.truncf %307 : vector<8x128xf32> to vector<8x128xbf16>
    %cst_66 = arith.constant dense<0.000000e+00> : vector<8x512xf32>
    %347 = tpu.matmul %346, %2, %cst_66 {dimension_numbers = #tpu.dot_dimension_numbers<[1], [0], [0], [1], [0, 0, 1, 1], [], []>} : vector<8x128xbf16>, vector<128x512xbf16>, vector<8x512xf32> -> vector<8x512xf32>
    %348 = arith.addf %345, %347 : vector<8x512xf32>
    %349 = vector.extract_strided_slice %348 {offsets = [0, 0], sizes = [8, 128], strides = [1, 1]} : vector<8x512xf32> to vector<8x128xf32>
    %350 = arith.negf %349 : vector<8x128xf32>
    %351 = math.exp %350 : vector<8x128xf32>
    %cst_67 = arith.constant 1.000000e+00 : f32
    %352 = vector.broadcast %cst_67 : f32 to vector<8x128xf32>
    %353 = arith.addf %352, %351 : vector<8x128xf32>
    %354 = arith.divf %352, %353 : vector<8x128xf32>
    %355 = vector.extract_strided_slice %348 {offsets = [0, 128], sizes = [8, 128], strides = [1, 1]} : vector<8x512xf32> to vector<8x128xf32>
    %356 = arith.negf %355 : vector<8x128xf32>
    %357 = math.exp %356 : vector<8x128xf32>
    %cst_68 = arith.constant 1.000000e+00 : f32
    %358 = vector.broadcast %cst_68 : f32 to vector<8x128xf32>
    %359 = arith.addf %358, %357 : vector<8x128xf32>
    %360 = arith.divf %358, %359 : vector<8x128xf32>
    %361 = vector.extract_strided_slice %348 {offsets = [0, 256], sizes = [8, 128], strides = [1, 1]} : vector<8x512xf32> to vector<8x128xf32>
    %362 = math.tanh %361 : vector<8x128xf32>
    %363 = vector.extract_strided_slice %348 {offsets = [0, 384], sizes = [8, 128], strides = [1, 1]} : vector<8x512xf32> to vector<8x128xf32>
    %364 = arith.negf %363 : vector<8x128xf32>
    %365 = math.exp %364 : vector<8x128xf32>
    %cst_69 = arith.constant 1.000000e+00 : f32
    %366 = vector.broadcast %cst_69 : f32 to vector<8x128xf32>
    %367 = arith.addf %366, %365 : vector<8x128xf32>
    %368 = arith.divf %366, %367 : vector<8x128xf32>
    %369 = arith.mulf %360, %305 : vector<8x128xf32>
    %370 = arith.mulf %354, %362 : vector<8x128xf32>
    %371 = arith.addf %369, %370 : vector<8x128xf32>
    %372 = math.tanh %371 : vector<8x128xf32>
    %373 = arith.mulf %368, %372 : vector<8x128xf32>
    %374 = arith.truncf %373 : vector<8x128xf32> to vector<8x128xbf16>
    %cst_70 = arith.constant dense<0.000000e+00> : vector<8x512xf32>
    %375 = tpu.matmul %374, %1, %cst_70 {dimension_numbers = #tpu.dot_dimension_numbers<[1], [0], [0], [1], [0, 0, 1, 1], [], []>} : vector<8x128xbf16>, vector<128x512xbf16>, vector<8x512xf32> -> vector<8x512xf32>
    %376 = vector.broadcast %5 : vector<1x512xf32> to vector<8x512xf32>
    %377 = arith.addf %375, %376 : vector<8x512xf32>
    %378 = arith.truncf %339 : vector<8x128xf32> to vector<8x128xbf16>
    %cst_71 = arith.constant dense<0.000000e+00> : vector<8x512xf32>
    %379 = tpu.matmul %378, %3, %cst_71 {dimension_numbers = #tpu.dot_dimension_numbers<[1], [0], [0], [1], [0, 0, 1, 1], [], []>} : vector<8x128xbf16>, vector<128x512xbf16>, vector<8x512xf32> -> vector<8x512xf32>
    %380 = arith.addf %377, %379 : vector<8x512xf32>
    %381 = vector.extract_strided_slice %380 {offsets = [0, 0], sizes = [8, 128], strides = [1, 1]} : vector<8x512xf32> to vector<8x128xf32>
    %382 = arith.negf %381 : vector<8x128xf32>
    %383 = math.exp %382 : vector<8x128xf32>
    %cst_72 = arith.constant 1.000000e+00 : f32
    %384 = vector.broadcast %cst_72 : f32 to vector<8x128xf32>
    %385 = arith.addf %384, %383 : vector<8x128xf32>
    %386 = arith.divf %384, %385 : vector<8x128xf32>
    %387 = vector.extract_strided_slice %380 {offsets = [0, 128], sizes = [8, 128], strides = [1, 1]} : vector<8x512xf32> to vector<8x128xf32>
    %388 = arith.negf %387 : vector<8x128xf32>
    %389 = math.exp %388 : vector<8x128xf32>
    %cst_73 = arith.constant 1.000000e+00 : f32
    %390 = vector.broadcast %cst_73 : f32 to vector<8x128xf32>
    %391 = arith.addf %390, %389 : vector<8x128xf32>
    %392 = arith.divf %390, %391 : vector<8x128xf32>
    %393 = vector.extract_strided_slice %380 {offsets = [0, 256], sizes = [8, 128], strides = [1, 1]} : vector<8x512xf32> to vector<8x128xf32>
    %394 = math.tanh %393 : vector<8x128xf32>
    %395 = vector.extract_strided_slice %380 {offsets = [0, 384], sizes = [8, 128], strides = [1, 1]} : vector<8x512xf32> to vector<8x128xf32>
    %396 = arith.negf %395 : vector<8x128xf32>
    %397 = math.exp %396 : vector<8x128xf32>
    %cst_74 = arith.constant 1.000000e+00 : f32
    %398 = vector.broadcast %cst_74 : f32 to vector<8x128xf32>
    %399 = arith.addf %398, %397 : vector<8x128xf32>
    %400 = arith.divf %398, %399 : vector<8x128xf32>
    %401 = arith.mulf %392, %337 : vector<8x128xf32>
    %402 = arith.mulf %386, %394 : vector<8x128xf32>
    %403 = arith.addf %401, %402 : vector<8x128xf32>
    %404 = math.tanh %403 : vector<8x128xf32>
    %405 = arith.mulf %400, %404 : vector<8x128xf32>
    %c0_75 = arith.constant 0 : index
    %c6 = arith.constant 6 : index
    %406 = vector.load %arg0[%c0_75, %c6] : memref<8x8xf32, #tpu.memory_space<vmem>>, vector<8x1xf32>
    %407 = vector.broadcast %406 : vector<8x1xf32> to vector<8x512xf32>
    %408 = vector.broadcast %0 : vector<1x512xf32> to vector<8x512xf32>
    %409 = arith.mulf %407, %408 : vector<8x512xf32>
    %410 = vector.broadcast %4 : vector<1x512xf32> to vector<8x512xf32>
    %411 = arith.addf %409, %410 : vector<8x512xf32>
    %412 = arith.truncf %373 : vector<8x128xf32> to vector<8x128xbf16>
    %cst_76 = arith.constant dense<0.000000e+00> : vector<8x512xf32>
    %413 = tpu.matmul %412, %2, %cst_76 {dimension_numbers = #tpu.dot_dimension_numbers<[1], [0], [0], [1], [0, 0, 1, 1], [], []>} : vector<8x128xbf16>, vector<128x512xbf16>, vector<8x512xf32> -> vector<8x512xf32>
    %414 = arith.addf %411, %413 : vector<8x512xf32>
    %415 = vector.extract_strided_slice %414 {offsets = [0, 0], sizes = [8, 128], strides = [1, 1]} : vector<8x512xf32> to vector<8x128xf32>
    %416 = arith.negf %415 : vector<8x128xf32>
    %417 = math.exp %416 : vector<8x128xf32>
    %cst_77 = arith.constant 1.000000e+00 : f32
    %418 = vector.broadcast %cst_77 : f32 to vector<8x128xf32>
    %419 = arith.addf %418, %417 : vector<8x128xf32>
    %420 = arith.divf %418, %419 : vector<8x128xf32>
    %421 = vector.extract_strided_slice %414 {offsets = [0, 128], sizes = [8, 128], strides = [1, 1]} : vector<8x512xf32> to vector<8x128xf32>
    %422 = arith.negf %421 : vector<8x128xf32>
    %423 = math.exp %422 : vector<8x128xf32>
    %cst_78 = arith.constant 1.000000e+00 : f32
    %424 = vector.broadcast %cst_78 : f32 to vector<8x128xf32>
    %425 = arith.addf %424, %423 : vector<8x128xf32>
    %426 = arith.divf %424, %425 : vector<8x128xf32>
    %427 = vector.extract_strided_slice %414 {offsets = [0, 256], sizes = [8, 128], strides = [1, 1]} : vector<8x512xf32> to vector<8x128xf32>
    %428 = math.tanh %427 : vector<8x128xf32>
    %429 = vector.extract_strided_slice %414 {offsets = [0, 384], sizes = [8, 128], strides = [1, 1]} : vector<8x512xf32> to vector<8x128xf32>
    %430 = arith.negf %429 : vector<8x128xf32>
    %431 = math.exp %430 : vector<8x128xf32>
    %cst_79 = arith.constant 1.000000e+00 : f32
    %432 = vector.broadcast %cst_79 : f32 to vector<8x128xf32>
    %433 = arith.addf %432, %431 : vector<8x128xf32>
    %434 = arith.divf %432, %433 : vector<8x128xf32>
    %435 = arith.mulf %426, %371 : vector<8x128xf32>
    %436 = arith.mulf %420, %428 : vector<8x128xf32>
    %437 = arith.addf %435, %436 : vector<8x128xf32>
    %438 = math.tanh %437 : vector<8x128xf32>
    %439 = arith.mulf %434, %438 : vector<8x128xf32>
    %440 = arith.truncf %439 : vector<8x128xf32> to vector<8x128xbf16>
    %cst_80 = arith.constant dense<0.000000e+00> : vector<8x512xf32>
    %441 = tpu.matmul %440, %1, %cst_80 {dimension_numbers = #tpu.dot_dimension_numbers<[1], [0], [0], [1], [0, 0, 1, 1], [], []>} : vector<8x128xbf16>, vector<128x512xbf16>, vector<8x512xf32> -> vector<8x512xf32>
    %442 = vector.broadcast %5 : vector<1x512xf32> to vector<8x512xf32>
    %443 = arith.addf %441, %442 : vector<8x512xf32>
    %444 = arith.truncf %405 : vector<8x128xf32> to vector<8x128xbf16>
    %cst_81 = arith.constant dense<0.000000e+00> : vector<8x512xf32>
    %445 = tpu.matmul %444, %3, %cst_81 {dimension_numbers = #tpu.dot_dimension_numbers<[1], [0], [0], [1], [0, 0, 1, 1], [], []>} : vector<8x128xbf16>, vector<128x512xbf16>, vector<8x512xf32> -> vector<8x512xf32>
    %446 = arith.addf %443, %445 : vector<8x512xf32>
    %447 = vector.extract_strided_slice %446 {offsets = [0, 0], sizes = [8, 128], strides = [1, 1]} : vector<8x512xf32> to vector<8x128xf32>
    %448 = arith.negf %447 : vector<8x128xf32>
    %449 = math.exp %448 : vector<8x128xf32>
    %cst_82 = arith.constant 1.000000e+00 : f32
    %450 = vector.broadcast %cst_82 : f32 to vector<8x128xf32>
    %451 = arith.addf %450, %449 : vector<8x128xf32>
    %452 = arith.divf %450, %451 : vector<8x128xf32>
    %453 = vector.extract_strided_slice %446 {offsets = [0, 128], sizes = [8, 128], strides = [1, 1]} : vector<8x512xf32> to vector<8x128xf32>
    %454 = arith.negf %453 : vector<8x128xf32>
    %455 = math.exp %454 : vector<8x128xf32>
    %cst_83 = arith.constant 1.000000e+00 : f32
    %456 = vector.broadcast %cst_83 : f32 to vector<8x128xf32>
    %457 = arith.addf %456, %455 : vector<8x128xf32>
    %458 = arith.divf %456, %457 : vector<8x128xf32>
    %459 = vector.extract_strided_slice %446 {offsets = [0, 256], sizes = [8, 128], strides = [1, 1]} : vector<8x512xf32> to vector<8x128xf32>
    %460 = math.tanh %459 : vector<8x128xf32>
    %461 = vector.extract_strided_slice %446 {offsets = [0, 384], sizes = [8, 128], strides = [1, 1]} : vector<8x512xf32> to vector<8x128xf32>
    %462 = arith.negf %461 : vector<8x128xf32>
    %463 = math.exp %462 : vector<8x128xf32>
    %cst_84 = arith.constant 1.000000e+00 : f32
    %464 = vector.broadcast %cst_84 : f32 to vector<8x128xf32>
    %465 = arith.addf %464, %463 : vector<8x128xf32>
    %466 = arith.divf %464, %465 : vector<8x128xf32>
    %467 = arith.mulf %458, %403 : vector<8x128xf32>
    %468 = arith.mulf %452, %460 : vector<8x128xf32>
    %469 = arith.addf %467, %468 : vector<8x128xf32>
    %470 = math.tanh %469 : vector<8x128xf32>
    %471 = arith.mulf %466, %470 : vector<8x128xf32>
    %c0_85 = arith.constant 0 : index
    %c7 = arith.constant 7 : index
    %472 = vector.load %arg0[%c0_85, %c7] : memref<8x8xf32, #tpu.memory_space<vmem>>, vector<8x1xf32>
    %473 = vector.broadcast %472 : vector<8x1xf32> to vector<8x512xf32>
    %474 = vector.broadcast %0 : vector<1x512xf32> to vector<8x512xf32>
    %475 = arith.mulf %473, %474 : vector<8x512xf32>
    %476 = vector.broadcast %4 : vector<1x512xf32> to vector<8x512xf32>
    %477 = arith.addf %475, %476 : vector<8x512xf32>
    %478 = arith.truncf %439 : vector<8x128xf32> to vector<8x128xbf16>
    %cst_86 = arith.constant dense<0.000000e+00> : vector<8x512xf32>
    %479 = tpu.matmul %478, %2, %cst_86 {dimension_numbers = #tpu.dot_dimension_numbers<[1], [0], [0], [1], [0, 0, 1, 1], [], []>} : vector<8x128xbf16>, vector<128x512xbf16>, vector<8x512xf32> -> vector<8x512xf32>
    %480 = arith.addf %477, %479 : vector<8x512xf32>
    %481 = vector.extract_strided_slice %480 {offsets = [0, 0], sizes = [8, 128], strides = [1, 1]} : vector<8x512xf32> to vector<8x128xf32>
    %482 = arith.negf %481 : vector<8x128xf32>
    %483 = math.exp %482 : vector<8x128xf32>
    %cst_87 = arith.constant 1.000000e+00 : f32
    %484 = vector.broadcast %cst_87 : f32 to vector<8x128xf32>
    %485 = arith.addf %484, %483 : vector<8x128xf32>
    %486 = arith.divf %484, %485 : vector<8x128xf32>
    %487 = vector.extract_strided_slice %480 {offsets = [0, 128], sizes = [8, 128], strides = [1, 1]} : vector<8x512xf32> to vector<8x128xf32>
    %488 = arith.negf %487 : vector<8x128xf32>
    %489 = math.exp %488 : vector<8x128xf32>
    %cst_88 = arith.constant 1.000000e+00 : f32
    %490 = vector.broadcast %cst_88 : f32 to vector<8x128xf32>
    %491 = arith.addf %490, %489 : vector<8x128xf32>
    %492 = arith.divf %490, %491 : vector<8x128xf32>
    %493 = vector.extract_strided_slice %480 {offsets = [0, 256], sizes = [8, 128], strides = [1, 1]} : vector<8x512xf32> to vector<8x128xf32>
    %494 = math.tanh %493 : vector<8x128xf32>
    %495 = vector.extract_strided_slice %480 {offsets = [0, 384], sizes = [8, 128], strides = [1, 1]} : vector<8x512xf32> to vector<8x128xf32>
    %496 = arith.negf %495 : vector<8x128xf32>
    %497 = math.exp %496 : vector<8x128xf32>
    %cst_89 = arith.constant 1.000000e+00 : f32
    %498 = vector.broadcast %cst_89 : f32 to vector<8x128xf32>
    %499 = arith.addf %498, %497 : vector<8x128xf32>
    %500 = arith.divf %498, %499 : vector<8x128xf32>
    %501 = arith.mulf %492, %437 : vector<8x128xf32>
    %502 = arith.mulf %486, %494 : vector<8x128xf32>
    %503 = arith.addf %501, %502 : vector<8x128xf32>
    %504 = math.tanh %503 : vector<8x128xf32>
    %505 = arith.mulf %500, %504 : vector<8x128xf32>
    %506 = arith.truncf %505 : vector<8x128xf32> to vector<8x128xbf16>
    %cst_90 = arith.constant dense<0.000000e+00> : vector<8x512xf32>
    %507 = tpu.matmul %506, %1, %cst_90 {dimension_numbers = #tpu.dot_dimension_numbers<[1], [0], [0], [1], [0, 0, 1, 1], [], []>} : vector<8x128xbf16>, vector<128x512xbf16>, vector<8x512xf32> -> vector<8x512xf32>
    %508 = vector.broadcast %5 : vector<1x512xf32> to vector<8x512xf32>
    %509 = arith.addf %507, %508 : vector<8x512xf32>
    %510 = arith.truncf %471 : vector<8x128xf32> to vector<8x128xbf16>
    %cst_91 = arith.constant dense<0.000000e+00> : vector<8x512xf32>
    %511 = tpu.matmul %510, %3, %cst_91 {dimension_numbers = #tpu.dot_dimension_numbers<[1], [0], [0], [1], [0, 0, 1, 1], [], []>} : vector<8x128xbf16>, vector<128x512xbf16>, vector<8x512xf32> -> vector<8x512xf32>
    %512 = arith.addf %509, %511 : vector<8x512xf32>
    %513 = vector.extract_strided_slice %512 {offsets = [0, 0], sizes = [8, 128], strides = [1, 1]} : vector<8x512xf32> to vector<8x128xf32>
    %514 = arith.negf %513 : vector<8x128xf32>
    %515 = math.exp %514 : vector<8x128xf32>
    %cst_92 = arith.constant 1.000000e+00 : f32
    %516 = vector.broadcast %cst_92 : f32 to vector<8x128xf32>
    %517 = arith.addf %516, %515 : vector<8x128xf32>
    %518 = arith.divf %516, %517 : vector<8x128xf32>
    %519 = vector.extract_strided_slice %512 {offsets = [0, 128], sizes = [8, 128], strides = [1, 1]} : vector<8x512xf32> to vector<8x128xf32>
    %520 = arith.negf %519 : vector<8x128xf32>
    %521 = math.exp %520 : vector<8x128xf32>
    %cst_93 = arith.constant 1.000000e+00 : f32
    %522 = vector.broadcast %cst_93 : f32 to vector<8x128xf32>
    %523 = arith.addf %522, %521 : vector<8x128xf32>
    %524 = arith.divf %522, %523 : vector<8x128xf32>
    %525 = vector.extract_strided_slice %512 {offsets = [0, 256], sizes = [8, 128], strides = [1, 1]} : vector<8x512xf32> to vector<8x128xf32>
    %526 = math.tanh %525 : vector<8x128xf32>
    %527 = vector.extract_strided_slice %512 {offsets = [0, 384], sizes = [8, 128], strides = [1, 1]} : vector<8x512xf32> to vector<8x128xf32>
    %528 = arith.negf %527 : vector<8x128xf32>
    %529 = math.exp %528 : vector<8x128xf32>
    %cst_94 = arith.constant 1.000000e+00 : f32
    %530 = vector.broadcast %cst_94 : f32 to vector<8x128xf32>
    %531 = arith.addf %530, %529 : vector<8x128xf32>
    %532 = arith.divf %530, %531 : vector<8x128xf32>
    %533 = arith.mulf %524, %469 : vector<8x128xf32>
    %534 = arith.mulf %518, %526 : vector<8x128xf32>
    %535 = arith.addf %533, %534 : vector<8x128xf32>
    %536 = math.tanh %535 : vector<8x128xf32>
    %537 = arith.mulf %532, %536 : vector<8x128xf32>
    %c0_95 = arith.constant 0 : index
    %c0_96 = arith.constant 0 : index
    %538 = vector.load %arg7[%c0_95, %c0_96] : memref<128x128xf32, #tpu.memory_space<vmem>>, vector<128x128xf32>
    %cst_97 = arith.constant dense<0.000000e+00> : vector<8x128xf32>
    %539 = tpu.matmul %537, %538, %cst_97 {dimension_numbers = #tpu.dot_dimension_numbers<[1], [0], [0], [1], [0, 0, 1, 1], [], []>} : vector<8x128xf32>, vector<128x128xf32>, vector<8x128xf32> -> vector<8x128xf32>
    %c0_98 = arith.constant 0 : index
    %c0_99 = arith.constant 0 : index
    %540 = vector.load %arg8[%c0_98, %c0_99] : memref<1x128xf32, #tpu.memory_space<vmem>>, vector<1x128xf32>
    %541 = vector.broadcast %540 : vector<1x128xf32> to vector<8x128xf32>
    %542 = arith.addf %539, %541 : vector<8x128xf32>
    %c0_100 = arith.constant 0 : index
    %c0_101 = arith.constant 0 : index
    %543 = vector.load %arg9[%c0_100, %c0_101] : memref<8x128xf32, #tpu.memory_space<vmem>>, vector<8x128xf32>
    tpu.vector_store %arg9[%c0_100, %c0_101], %542 {strides = array<i32>} : memref<8x128xf32, #tpu.memory_space<vmem>>, vector<8x128xf32>,
    return
  }
}

</mosaic_0001>

<bundles_post_ra>
// kernel: tpu_custom_call.1
= control target key start
LH: loop header
LB: loop body
LE: loop exit
PB: predicated region body
PF: predicated region fallthrough
CT: control target
= control target key end

     0   :  { %14 = vsyncpa [#allocation3], 0  ;;  %s6146_s0 = inlined_call_operand.hbm [shape: f32[8,8], index: 0, kind: input, shape index: {}]   ;;  %s6147_s1 = inlined_call_operand.hbm [shape: f32[1,512], index: 1, kind: input, shape index: {}]   ;;  %s6148_s2 = inlined_call_operand.hbm [shape: bf16[128,512], index: 2, kind: input, shape index: {}]   ;;  %s6149_s3 = inlined_call_operand.vmem [shape: f32[1,512], index: 3, kind: input, shape index: {}]   ;;  %s6150_s4 = inlined_call_operand.hbm [shape: bf16[128,512], index: 4, kind: input, shape index: {}]   ;;  %s6151_s5 = inlined_call_operand.hbm [shape: bf16[128,512], index: 5, kind: input, shape index: {}]   ;;  %s6152_s6 = inlined_call_operand.vmem [shape: f32[1,512], index: 6, kind: input, shape index: {}]   ;;  %s6153_s7 = inlined_call_operand.hbm [shape: f32[128,128], index: 7, kind: input, shape index: {}]   ;;  %s6154_s8 = inlined_call_operand.vmem [shape: f32[1,128], index: 8, kind: input, shape index: {}]   ;;  %s6155_s9 = inlined_call_operand.hbm [shape: f32[8,128], index: 9, kind: output, shape index: {}]  }
   0x1   :  { %15 = vsyncpa [#allocation6], 0 }
   0x2   :  { %16 = vsyncpa [#allocation9], 0 }
   0x3   :  { %17 = vsyncpa [#allocation12], 0 }
   0x4   :  { %18 = vsyncpa [#allocation4], 0  ;;  %s4366_s30 = smov [#allocation5]  }
   0x5   :  { %s35_s10 = sshll.u32 %s4366_s30, 4  ;;  %s36_s10 = int_to_ptr.vmem [resolvable:$true] %s35_s10 }
   0x6   :  { %s4224_s11 = scalar_lea.vmem %s36_s10, 64  ;;  %p4229_p1 = scmp.lt.s32.totalorder %s36_s10, %s36_s10 }
   0x7   :  { %p4225_p0 = scmp.ne.s32.totalorder %s36_s10, %s4224_s11  ;;  %p4230_p2 = scmp.lt.s32.totalorder %s4224_s11, %s4224_s11 }
   0x9   :  { %p4231_p3 = por %p4230_p2, %p4229_p1 }
   0xb   :  { %p4232_p4 = pnand %p4231_p3, %p4225_p0 }
   0xd   :  { %4235 = shalt.err (!%p4232_p4)
}
   0xe   :  { %38 = dma.hbm_to_vmem [thread:$0]  %s6147_s1, 64, %s36_s10, [#allocation6]  }
   0xf   :  { %s4367_s14 = smov [#allocation8]   ;;  %s4368_s16 = smov [#allocation2]  }
  0x10   :  { %s58_s15 = sshll.u32 %s4367_s14, 4  ;;  %s25_s17 = sshll.u32 %s4368_s16, 4  ;;  %s59_s15 = int_to_ptr.vmem [resolvable:$true] %s58_s15  ;;  %s26_s17 = int_to_ptr.vmem [resolvable:$true] %s25_s17 }
  0x11   :  { %s4244_s18 = scalar_lea.vmem %s59_s15, 4096  ;;  %p4249_p6 = scmp.lt.s32.totalorder %s59_s15, %s59_s15 }
  0x12   :  { %p4245_p5 = scmp.ne.s32.totalorder %s59_s15, %s4244_s18  ;;  %p4250_p7 = scmp.lt.s32.totalorder %s4244_s18, %s4244_s18 }
  0x14   :  { %p4251_p8 = por %p4250_p7, %p4249_p6 }
  0x16   :  { %p4252_p9 = pnand %p4251_p8, %p4245_p5 }
  0x18   :  { %4255 = shalt.err (!%p4252_p9)
}
  0x19   :  { %s4369_s19 = smov 256   ;;  %s4370_s20 = smov 16  }
  0x1a   :  { %64 = dma.hbm_to_vmem [thread:$0]  %s6150_s4, 4096, %s59_s15, [#allocation9], %s4369_s19, %s4369_s19, %s4370_s20  }
  0x1b   :  { %s4264_s1 = scalar_lea.vmem %s26_s17, 128  ;;  %p4269_p11 = scmp.lt.s32.totalorder %s26_s17, %s26_s17 }
  0x1c   :  { %p4265_p10 = scmp.ne.s32.totalorder %s26_s17, %s4264_s1  ;;  %p4270_p12 = scmp.lt.s32.totalorder %s4264_s1, %s4264_s1 }
  0x1e   :  { %p4271_p13 = por %p4270_p12, %p4269_p11 }
  0x20   :  { %p4272_p0 = pnand %p4271_p13, %p4265_p10 }
  0x22   :  { %4275 = shalt.err (!%p4272_p0)
}
  0x23   :  { %28 = dma.hbm_to_vmem [thread:$0]  %s6146_s0, 128, %s26_s17, [#allocation3]  }
  0x24   :  { %s4371_s25 = smov [#allocation7]   ;;  %s4372_s27 = smov [#allocation10]  }
  0x25   :  { %s44_s26 = sshll.u32 %s4371_s25, 4  ;;  %s70_s28 = sshll.u32 %s4372_s27, 4  ;;  %s45_s26 = int_to_ptr.vmem [resolvable:$true] %s44_s26  ;;  %s71_s28 = int_to_ptr.vmem [resolvable:$true] %s70_s28 }
  0x26   :  { %s4284_s29 = scalar_lea.vmem %s45_s26, 4096  ;;  %p4289_p2 = scmp.lt.s32.totalorder %s45_s26, %s45_s26 }
  0x27   :  { %p4285_p1 = scmp.ne.s32.totalorder %s45_s26, %s4284_s29  ;;  %p4290_p3 = scmp.lt.s32.totalorder %s4284_s29, %s4284_s29 }
  0x29   :  { %p4291_p4 = por %p4290_p3, %p4289_p2 }
  0x2b   :  { %p4292_p5 = pnand %p4291_p4, %p4285_p1 }
  0x2d   :  { %4295 = shalt.err (!%p4292_p5)
}
  0x2e   :  { %50 = dma.hbm_to_vmem [thread:$0]  %s6148_s2, 4096, %s45_s26, [#allocation6], %s4369_s19, %s4369_s19, %s4370_s20  }
  0x2f   :  { %s4304_s0 = scalar_lea.vmem %s71_s28, 4096  ;;  %p4309_p7 = scmp.lt.s32.totalorder %s71_s28, %s71_s28 }
  0x30   :  { %p4305_p6 = scmp.ne.s32.totalorder %s71_s28, %s4304_s0  ;;  %p4310_p8 = scmp.lt.s32.totalorder %s4304_s0, %s4304_s0 }
  0x32   :  { %p4311_p9 = por %p4310_p8, %p4309_p7 }
  0x34   :  { %p4312_p10 = pnand %p4311_p9, %p4305_p6 }
  0x36   :  { %4315 = shalt.err (!%p4312_p10)
}
  0x37   :  { %76 = dma.hbm_to_vmem [thread:$0]  %s6151_s5, 4096, %s71_s28, [#allocation9], %s4369_s19, %s4369_s19, %s4370_s20  }
  0x38   :  { %s4373_s12 = smov [#allocation11]  }
  0x39   :  { %s84_s13 = sshll.u32 %s4373_s12, 4  ;;  %s85_s13 = int_to_ptr.vmem [resolvable:$true] %s84_s13 }
  0x3a   :  { %s4324_s14 = scalar_lea.vmem %s85_s13, 2048  ;;  %p4329_p12 = scmp.lt.s32.totalorder %s85_s13, %s85_s13 }
  0x3b   :  { %p4325_p11 = scmp.ne.s32.totalorder %s85_s13, %s4324_s14  ;;  %p4330_p13 = scmp.lt.s32.totalorder %s4324_s14, %s4324_s14 }
  0x3d   :  { %p4331_p0 = por %p4330_p13, %p4329_p12 }
  0x3f   :  { %p4332_p1 = pnand %p4331_p0, %p4325_p11 }
  0x41   :  { %4335 = shalt.err (!%p4332_p1)
}
  0x42   :  { %s4374_s2 = smov 128   ;;  %s4375_s15 = smov 8  }
  0x43   :  { %90 = dma.hbm_to_vmem [thread:$0]  %s6153_s7, 2048, %s85_s13, [#allocation12], %s4374_s2, %s4374_s2, %s4375_s15  }
  0x44   :  { %4356 = dma.done.wait [#allocation3], 128  }
  0x45   :  { %4357 = vsyncadd [#allocation3], 4294967168 }
  0x46   :  { %4358 = dma.done.wait [#allocation6], 4160  }
  0x47   :  { %4359 = vsyncadd [#allocation6], 4294963136 }
  0x48   :  { %4360 = dma.done.wait [#allocation9], 8192  }
  0x49   :  { %4361 = vsyncadd [#allocation9], 4294959104 }
  0x4a   :  { %4362 = dma.done.wait [#allocation12], 2048  }
  0x4b   :  { %4363 = vsyncadd [#allocation12], 4294965248  ;;  %v6156_v0 = vmov 0   ;;  %v4467_v1 = vld [vmem:[#allocation7 + $0xe4] ss:$16 sps:$4 sm:$0xff]   ;;  %vm4385_vm0 = vmmov 0  }
  0x4c   :  { %459 = vmatprep.mubr.bf16.mxu0 %v6156_v0  ;;  %500 = vmatprep.mubr.bf16.mxu1 %v6156_v0  ;;  %v4469_v2 = vld [vmem:[#allocation7 + $0xec] ss:$16 sps:$4 sm:$0xff]   ;;  %v4472_v3 = vld [vmem:[#allocation7 + $0xe0] ss:$16 sps:$4 sm:$0xff]   ;;  %v4474_v4 = vld [vmem:[#allocation7 + $0xe8] ss:$16 sps:$4 sm:$0xff]  }
  0x4d   :  { %3613 = vset.pattern.permute.xlu0 %v6156_v0  ;;  %427 = vmatprep.subr.bf16.mxu0 %v4467_v1  ;;  %v4477_v5 = vld [vmem:[#allocation7 + $0xc4] ss:$16 sps:$4 sm:$0xff]   ;;  %v4481_v6 = vld [vmem:[#allocation7 + $0xcc] ss:$16 sps:$4 sm:$0xff]   ;;  %v4483_v7 = vld [vmem:[#allocation7 + $0xc0] ss:$16 sps:$4 sm:$0xff]  }
  0x4e   :  { %468 = vmatprep.subr.bf16.mxu1 %v4469_v2  ;;  %428 = vmatpush1.bf16.msra.mxu0 %v4472_v3  ;;  %v4486_v8 = vld [vmem:[#allocation7 + $0xc8] ss:$16 sps:$4 sm:$0xff]   ;;  %v4489_v9 = vld [vmem:[#allocation7 + $0xa4] ss:$16 sps:$4 sm:$0xff]   ;;  %v4491_v10 = vld [vmem:[#allocation7 + $0xac] ss:$16 sps:$4 sm:$0xff]  }
  0x4f   :  { %469 = vmatpush1.bf16.msra.mxu1 %v4474_v4  ;;  %429 = vmatprep.subr.bf16.mxu0 %v4477_v5  ;;  %v4493_v11 = vld [vmem:[#allocation7 + $0xa0] ss:$16 sps:$4 sm:$0xff]   ;;  %v4495_v12 = vld [vmem:[#allocation7 + $0xa8] ss:$16 sps:$4 sm:$0xff]   ;;  %v4499_v13 = vld [vmem:[#allocation7 + $0x84] ss:$16 sps:$4 sm:$0xff]  }
  0x50   :  { %470 = vmatprep.subr.bf16.mxu1 %v4481_v6  ;;  %v4503_v14 = vld [vmem:[#allocation7 + $0x8c] ss:$16 sps:$4 sm:$0xff]   ;;  %v4505_v15 = vld [vmem:[#allocation7 + $0x80] ss:$16 sps:$4 sm:$0xff]   ;;  %v4509_v16 = vld [vmem:[#allocation7 + $0x88] ss:$16 sps:$4 sm:$0xff]  }
  0x51   :  { %v4511_v17 = vld [vmem:[#allocation7 + $0x64] ss:$16 sps:$4 sm:$0xff]   ;;  %v4515_v18 = vld [vmem:[#allocation7 + $0x6c] ss:$16 sps:$4 sm:$0xff]   ;;  %v4517_v19 = vld [vmem:[#allocation7 + $0x60] ss:$16 sps:$4 sm:$0xff]  }
  0x52   :  { %430 = vmatpush1.bf16.msra.mxu0 %v4483_v7  ;;  %v4519_v20 = vld [vmem:[#allocation7 + $0x68] ss:$16 sps:$4 sm:$0xff]   ;;  %v4523_v21 = vld [vmem:[#allocation7 + $0x44] ss:$16 sps:$4 sm:$0xff]   ;;  %v4527_v22 = vld [vmem:[#allocation7 + $0x4c] ss:$16 sps:$4 sm:$0xff]  }
  0x53   :  { %471 = vmatpush1.bf16.msra.mxu1 %v4486_v8  ;;  %431 = vmatprep.subr.bf16.mxu0 %v4489_v9  ;;  %v4531_v23 = vld [vmem:[#allocation7 + $0x40] ss:$16 sps:$4 sm:$0xff]   ;;  %v4533_v24 = vld [vmem:[#allocation7 + $0x48] ss:$16 sps:$4 sm:$0xff]   ;;  %v4537_v25 = vld [vmem:[#allocation7 + $0x24] ss:$16 sps:$4 sm:$0xff]  }
  0x54   :  { %472 = vmatprep.subr.bf16.mxu1 %v4491_v10  ;;  %v4539_v26 = vld [vmem:[#allocation7 + $0x2c] ss:$16 sps:$4 sm:$0xff]   ;;  %v4541_v27 = vld [vmem:[#allocation2] sm:$0xff]  ;;  %v4543_v28 = vld [vmem:[#allocation7 + $0x20] ss:$16 sps:$4 sm:$0xff]   ;;  %s4386_s20 = smov [#allocation13]  }
  0x55   :  { %6513 = vst [vmem:[#allocation19_spill] sm:$0xff] %v4541_v27  ;;  %v4545_v29 = vld [vmem:[#allocation7 + $0x28] ss:$16 sps:$4 sm:$0xff]   ;;  %214 = vperm.xlu0 %3613, %v4541_v27   ;;  %v4548_v30 = vld [vmem:[#allocation7 + $0x4] ss:$16 sps:$4 sm:$0xff]   ;;  %s3383_s21 = sshll.u32 %s4386_s20, 4  ;;  %s3384_s21 = int_to_ptr.vmem [resolvable:$true] %s3383_s21 }
  0x56   :  { %432 = vmatpush1.bf16.msra.mxu0 %v4493_v11  ;;  %v4550_v31 = vld [vmem:[#allocation7 + $0xc] ss:$16 sps:$4 sm:$0xff]   ;;  %v4556_v32 = vld [vmem:[#allocation7] ss:$16 sps:$4 sm:$0xff]   ;;  %v4558_v33 = vld [vmem:[#allocation7 + $0x8] ss:$16 sps:$4 sm:$0xff]   ;;  %p4341_p3 = scmp.lt.s32.totalorder %s3384_s21, %s3384_s21 }
  0x57   :  { %473 = vmatpush1.bf16.msra.mxu1 %v4495_v12  ;;  %433 = vmatprep.subr.bf16.mxu0 %v4499_v13  ;;  %v4570_v34 = vld [vmem:[#allocation8 + $0xe4] ss:$16 sps:$4 sm:$0xff]   ;;  %v4572_v35 = vld [vmem:[#allocation8 + $0xec] ss:$16 sps:$4 sm:$0xff]   ;;  %v4574_v36 = vld [vmem:[#allocation8 + $0xe0] ss:$16 sps:$4 sm:$0xff]  }
  0x58   :  { %474 = vmatprep.subr.bf16.mxu1 %v4503_v14  ;;  %v4576_v37 = vld [vmem:[#allocation8 + $0xe8] ss:$16 sps:$4 sm:$0xff]   ;;  %v4582_v38 = vld [vmem:[#allocation8 + $0xc4] ss:$16 sps:$4 sm:$0xff]   ;;  %v4584_v39 = vld [vmem:[#allocation8 + $0xcc] ss:$16 sps:$4 sm:$0xff]  }
  0x59   :  { %v4586_v40 = vld [vmem:[#allocation8 + $0xc0] ss:$16 sps:$4 sm:$0xff]   ;;  %v4588_v41 = vld [vmem:[#allocation8 + $0xc8] ss:$16 sps:$4 sm:$0xff]   ;;  %v4594_v42 = vld [vmem:[#allocation8 + $0xa4] ss:$16 sps:$4 sm:$0xff]  }
  0x5a   :  { %434 = vmatpush1.bf16.msra.mxu0 %v4505_v15  ;;  %v4596_v43 = vld [vmem:[#allocation8 + $0xac] ss:$16 sps:$4 sm:$0xff]   ;;  %v4598_v44 = vld [vmem:[#allocation8 + $0xa0] ss:$16 sps:$4 sm:$0xff]   ;;  %v4600_v45 = vld [vmem:[#allocation8 + $0xa8] ss:$16 sps:$4 sm:$0xff]  }
  0x5b   :  { %475 = vmatpush1.bf16.msra.mxu1 %v4509_v16  ;;  %435 = vmatprep.subr.bf16.mxu0 %v4511_v17  ;;  %6514 = vst [vmem:[#allocation20_spill] sm:$0xff] %v4596_v43  ;;  %6515 = vst [vmem:[#allocation21_spill] sm:$0xff] %v4598_v44  ;;  %v4606_v46 = vld [vmem:[#allocation8 + $0x84] ss:$16 sps:$4 sm:$0xff]   ;;  %v4608_v47 = vld [vmem:[#allocation8 + $0x8c] ss:$16 sps:$4 sm:$0xff]  }
  0x5c   :  { %476 = vmatprep.subr.bf16.mxu1 %v4515_v18  ;;  %6516 = vst [vmem:[#allocation22_spill] sm:$0xff] %v4600_v45  ;;  %6517 = vst [vmem:[#allocation23_spill] sm:$0xff] %v4606_v46  ;;  %v4610_v48 = vld [vmem:[#allocation8 + $0x80] ss:$16 sps:$4 sm:$0xff]   ;;  %v4612_v49 = vld [vmem:[#allocation8 + $0x88] ss:$16 sps:$4 sm:$0xff]  }
  0x5d   :  { %6518 = vst [vmem:[#allocation24_spill] sm:$0xff] %v4608_v47  ;;  %6519 = vst [vmem:[#allocation25_spill] sm:$0xff] %v4610_v48  ;;  %v4618_v50 = vld [vmem:[#allocation8 + $0x64] ss:$16 sps:$4 sm:$0xff]   ;;  %v4620_v51 = vld [vmem:[#allocation8 + $0x6c] ss:$16 sps:$4 sm:$0xff]  }
  0x5e   :  { %436 = vmatpush1.bf16.msra.mxu0 %v4517_v19  ;;  %6520 = vst [vmem:[#allocation26_spill] sm:$0xff] %v4612_v49  ;;  %6521 = vst [vmem:[#allocation27_spill] sm:$0xff] %v4618_v50  ;;  %v4622_v52 = vld [vmem:[#allocation8 + $0x60] ss:$16 sps:$4 sm:$0xff]   ;;  %v4624_v53 = vld [vmem:[#allocation8 + $0x68] ss:$16 sps:$4 sm:$0xff]  }
  0x5f   :  { %477 = vmatpush1.bf16.msra.mxu1 %v4519_v20  ;;  %437 = vmatprep.subr.bf16.mxu0 %v4523_v21  ;;  %6522 = vst [vmem:[#allocation28_spill] sm:$0xff] %v4620_v51  ;;  %6523 = vst [vmem:[#allocation29_spill] sm:$0xff] %v4622_v52  ;;  %v4626_v54 = vld [vmem:[#allocation8 + $0x44] ss:$16 sps:$4 sm:$0xff]   ;;  %v4628_v55 = vld [vmem:[#allocation8 + $0x4c] ss:$16 sps:$4 sm:$0xff]  }
  0x60   :  { %478 = vmatprep.subr.bf16.mxu1 %v4527_v22  ;;  %6524 = vst [vmem:[#allocation30_spill] sm:$0xff] %v4624_v53  ;;  %6525 = vst [vmem:[#allocation31_spill] sm:$0xff] %v4626_v54  ;;  %v4634_v56 = vld [vmem:[#allocation8 + $0x40] ss:$16 sps:$4 sm:$0xff]   ;;  %v4636_v57 = vld [vmem:[#allocation8 + $0x48] ss:$16 sps:$4 sm:$0xff]  }
  0x61   :  { %6526 = vst [vmem:[#allocation32_spill] sm:$0xff] %v4628_v55  ;;  %6527 = vst [vmem:[#allocation33_spill] sm:$0xff] %v4634_v56  ;;  %v4640_v58 = vld [vmem:[#allocation8 + $0x24] ss:$16 sps:$4 sm:$0xff]   ;;  %v4642_v59 = vld [vmem:[#allocation8 + $0x2c] ss:$16 sps:$4 sm:$0xff]  }
  0x62   :  { %438 = vmatpush1.bf16.msra.mxu0 %v4531_v23  ;;  %6528 = vst [vmem:[#allocation34_spill] sm:$0xff] %v4636_v57  ;;  %6529 = vst [vmem:[#allocation35_spill] sm:$0xff] %v4640_v58  ;;  %v4646_v60 = vld [vmem:[#allocation8 + $0x20] ss:$16 sps:$4 sm:$0xff]   ;;  %v4648_v61 = vld [vmem:[#allocation8 + $0x28] ss:$16 sps:$4 sm:$0xff]  }
  0x63   :  { %479 = vmatpush1.bf16.msra.mxu1 %v4533_v24  ;;  %439 = vmatprep.subr.bf16.mxu0 %v4537_v25  ;;  %6530 = vst [vmem:[#allocation36_spill] sm:$0xff] %v4642_v59  ;;  %6531 = vst [vmem:[#allocation37_spill] sm:$0xff] %v4646_v60  ;;  %v4651_v62 = vld [vmem:[#allocation8 + $0x4] ss:$16 sps:$4 sm:$0xff]   ;;  %v4653_v63 = vld [vmem:[#allocation8 + $0xc] ss:$16 sps:$4 sm:$0xff]  }
  0x64   :  { %480 = vmatprep.subr.bf16.mxu1 %v4539_v26  ;;  %6532 = vst [vmem:[#allocation38_spill] sm:$0xff] %v4648_v61  ;;  %6533 = vst [vmem:[#allocation39_spill] sm:$0xff] %v4651_v62  ;;  %s4336_s22 = scalar_lea.vmem %s3384_s21, 128 }
  0x65   :  { %6534 = vst [vmem:[#allocation40_spill] sm:$0xff] %v4653_v63  ;;  %p4337_p2 = scmp.ne.s32.totalorder %s3384_s21, %s4336_s22  ;;  %p4342_p4 = scmp.lt.s32.totalorder %s4336_s22, %s4336_s22 }
  0x66   :  { %440 = vmatpush1.bf16.msra.mxu0 %v4543_v28 }
  0x67   :  { %481 = vmatpush1.bf16.msra.mxu1 %v4545_v29  ;;  %441 = vmatprep.subr.bf16.mxu0 %v4548_v30  ;;  %p4343_p5 = por %p4342_p4, %p4341_p3 }
  0x68   :  { %482 = vmatprep.subr.bf16.mxu1 %v4550_v31 }
  0x69   :  { %p4344_p6 = pnand %p4343_p5, %p4337_p2 }
  0x6a   :  { %442 = vmatpush1.bf16.msra.mxu0 %v4556_v32 }
  0x6b   :  { %483 = vmatpush1.bf16.msra.mxu1 %v4558_v33  ;;  %719 = vmatprep.subr.bf16.mxu0 %v4570_v34 }
  0x6c   :  { %760 = vmatprep.subr.bf16.mxu1 %v4572_v35 }
  0x6d   :  { %460 = vmatmul.mubr.bf16.vlgmr.msra.gmra.mxu0 %v6156_v0 }
  0x6e   :  { %501 = vmatmul.mubr.bf16.vlgmr.msra.gmra.mxu1 %v6156_v0  ;;  %751 = vmatprep.mubr.bf16.mxu0 %v6156_v0 }
  0x6f   :  { %792 = vmatprep.mubr.bf16.mxu1 %v6156_v0  ;;  %720 = vmatpush1.bf16.msra.mxu0 %v4574_v36  ;;  %v4658_v0 = vld [vmem:[#allocation8] ss:$16 sps:$4 sm:$0xff]  }
  0x70   :  { %761 = vmatpush1.bf16.msra.mxu1 %v4576_v37  ;;  %721 = vmatprep.subr.bf16.mxu0 %v4582_v38  ;;  %6535 = vst [vmem:[#allocation41_spill] sm:$0xff] %v4658_v0 }
  0x71   :  { %762 = vmatprep.subr.bf16.mxu1 %v4584_v39 }
  0x73   :  { %722 = vmatpush1.bf16.msra.mxu0 %v4586_v40 }
  0x74   :  { %763 = vmatpush1.bf16.msra.mxu1 %v4588_v41  ;;  %723 = vmatprep.subr.bf16.mxu0 %v4594_v42 }
  0x75   :  { %764 = vmatprep.subr.bf16.mxu1 %v4596_v43 }
  0x77   :  { %724 = vmatpush1.bf16.msra.mxu0 %v4598_v44 }
  0x78   :  { %765 = vmatpush1.bf16.msra.mxu1 %v4600_v45  ;;  %725 = vmatprep.subr.bf16.mxu0 %v4606_v46 }
  0x79   :  { %766 = vmatprep.subr.bf16.mxu1 %v4608_v47 }
  0x7b   :  { %726 = vmatpush1.bf16.msra.mxu0 %v4610_v48 }
  0x7c   :  { %767 = vmatpush1.bf16.msra.mxu1 %v4612_v49  ;;  %727 = vmatprep.subr.bf16.mxu0 %v4618_v50 }
  0x7d   :  { %768 = vmatprep.subr.bf16.mxu1 %v4620_v51  ;;  %v4377_v51 = vmov 1  }
  0x7e   :  { %3614 = vset.pattern.permute.xlu0 %v4377_v51 }
  0x7f   :  { %728 = vmatpush1.bf16.msra.mxu0 %v4622_v52  ;;  %1072 = vperm.xlu0 %3614, %v4541_v27  }
  0x80   :  { %769 = vmatpush1.bf16.msra.mxu1 %v4624_v53  ;;  %729 = vmatprep.subr.bf16.mxu0 %v4626_v54 }
  0x81   :  { %770 = vmatprep.subr.bf16.mxu1 %v4628_v55  ;;  %v112_v55 = vld [vmem:[#allocation5] sm:$0xf] }
  0x83   :  { %730 = vmatpush1.bf16.msra.mxu0 %v4634_v56  ;;  %v4660_v56 = vld [vmem:[#allocation8 + $0x8] ss:$16 sps:$4 sm:$0xff]  }
  0x84   :  { %771 = vmatpush1.bf16.msra.mxu1 %v4636_v57  ;;  %731 = vmatprep.subr.bf16.mxu0 %v4640_v58  ;;  %6536 = vst [vmem:[#allocation42_spill] sm:$0xff] %v4660_v56  ;;  %v4664_v57 = vld [vmem:[#allocation10 + $0xe4] ss:$16 sps:$4 sm:$0xff]   ;;  %v4666_v58 = vld [vmem:[#allocation10 + $0xec] ss:$16 sps:$4 sm:$0xff]  }
  0x85   :  { %772 = vmatprep.subr.bf16.mxu1 %v4642_v59  ;;  %6537 = vst [vmem:[#allocation43_spill] sm:$0xff] %v4664_v57  ;;  %6538 = vst [vmem:[#allocation44_spill] sm:$0xff] %v4666_v58 }
  0x87   :  { %732 = vmatpush1.bf16.msra.mxu0 %v4646_v60 }
  0x88   :  { %773 = vmatpush1.bf16.msra.mxu1 %v4648_v61  ;;  %733 = vmatprep.subr.bf16.mxu0 %v4651_v62  ;;  %v218_v61 = vlaneseq }
  0x89   :  { %774 = vmatprep.subr.bf16.mxu1 %v4653_v63 }
  0x8a   :  { %v219_v60 = vshrl.u32 %v218_v61, 7 }
  0x8b   :  { %734 = vmatpush1.bf16.msra.mxu0 %v4658_v0  ;;  %v209_v0 = vld [vmem:[%s6149_s3] sm:$0xf] }
  0x8c   :  { %775 = vmatpush1.bf16.msra.mxu1 %v4660_v56  ;;  %961 = vmatprep.subr.bf16.mxu0 %v4664_v57  ;;  %v4672_v59 = vsub.s32 0, %v219_v60  ;;  %v4674_v62 = vsub.s32 1, %v219_v60  ;;  %v4693_v52 = vsub.s32 3, %v219_v60 }
  0x8d   :  { %1002 = vmatprep.subr.bf16.mxu1 %v4666_v58 }
  0x8e   :  { %6539 = vst [vmem:[#allocation45_spill] sm:$0xff] %v4672_v59  ;;  %6540 = vst [vmem:[#allocation46_spill] sm:$0xff] %v4674_v62  ;;  %v4677_v63 = vrot.slane %v112_v55, %v4672_v59  ;;  %v4683_v56 = vrot.slane %v112_v55, %v4674_v62  ;;  %v4687_v61 = vrot.slane %v209_v0, %v4672_v59 }
  0x8f   :  { %v4691_v53 = vrot.slane %v209_v0, %v4674_v62  ;;  %v4699_v59 = vrot.slane %v112_v55, %v4693_v52 }
  0x90   :  { %6541 = vst [vmem:[#allocation47_spill] sm:$0xff] %v4677_v63  ;;  %6542 = vst [vmem:[#allocation48_spill] sm:$0xff] %v4683_v56 }
  0x91   :  { %6543 = vst [vmem:[#allocation49_spill] sm:$0xff] %v4687_v61  ;;  %6544 = vst [vmem:[#allocation50_spill] sm:$0xff] %v4691_v53 }
  0x92   :  { %6545 = vst [vmem:[#allocation51_spill] sm:$0xff] %v4699_v59 }
  0xd0   :  { %v215_v54 = vpop.permute.xlu0 %214 }
  0xd1   :  { %v238_v58 = vmul.f32 %v4677_v63, %v215_v54  ;;  %v239_v57 = vmul.f32 %v4683_v56, %v215_v54  ;;  %v4701_v56 = vsub.s32 2, %v219_v60  ;;  %v241_v51 = vmul.f32 %v4699_v59, %v215_v54 }
  0xd3   :  { %v263_v50 = vadd.f32 %v4687_v61, %v238_v58  ;;  %v264_v49 = vadd.f32 %v4691_v53, %v239_v57  ;;  %v4705_v58 = vrot.slane %v209_v0, %v4693_v52  ;;  %v4708_v53 = vrot.slane %v112_v55, %v4701_v56 }
  0xd5   :  { %6546 = vst [vmem:[#allocation52_spill] sm:$0xff] %v4708_v53 }
 0x12d   :  { %v461_v48 = vpop.f32.mrf.mxu0 }
 0x12e   :  { %v502_v63 = vpop.f32.mrf.mxu1  ;;  %v509_v47 = vadd.f32 %v461_v48, %v263_v50  ;;  %v266_v50 = vadd.f32 %v4705_v58, %v241_v51 }
 0x12f   :  { %v463_v62 = vpop.f32.mrf.mxu0 }
 0x130   :  { %v504_v46 = vpop.f32.mrf.mxu1  ;;  %v3427_v45 = vmul.f32 -1.442695, %v509_v47  ;;  %v510_v44 = vadd.f32 %v463_v62, %v264_v49  ;;  %v240_v47 = vmul.f32 %v4708_v53, %v215_v54  ;;  %v4713_v49 = vrot.slane %v209_v0, %v4701_v56 }
 0x131   :  { %v465_v27 = vpop.f32.mrf.mxu0  ;;  %v512_v60 = vadd.f32 %v504_v46, %v266_v50 }
 0x132   :  { %v506_v61 = vpop.f32.mrf.mxu1  ;;  %3766 = vpow2.f32 %v3427_v45  ;;  %v3428_v57 = vmul.f32 -1.442695, %v510_v44  ;;  %v265_v62 = vadd.f32 %v4713_v49, %v240_v47 }
 0x133   :  { %v466_v43 = vpop.f32.mrf.mxu0  ;;  %v3429_v27 = vmul.f32 -1.442695, %v512_v60  ;;  %v4719_v60 = vld [vmem:[#allocation10 + $0xe0] ss:$16 sps:$4 sm:$0xff]  }
 0x134   :  { %v507_v48 = vpop.f32.mrf.mxu1  ;;  %3768 = vpow2.f32 %v3428_v57  ;;  %v511_v45 = vadd.f32 %v502_v63, %v265_v62 }
 0x135   :  { %3770 = vpow2.f32 %v3429_v27  ;;  %v4725_v27 = vld [vmem:[#allocation10 + $0xc4] ss:$16 sps:$4 sm:$0xff]  }
 0x13f   :  { %v3767_v61 = vpop.eup %3766 }
 0x140   :  { %v516_v44 = vadd.f32 1.0, %v3767_v61  ;;  %v4727_v61 = vld [vmem:[#allocation10 + $0xcc] ss:$16 sps:$4 sm:$0xff]  }
 0x141   :  { %v3769_v59 = vpop.eup %3768 }
 0x142   :  { %3772 = vrcp.f32 %v516_v44  ;;  %v522_v43 = vadd.f32 1.0, %v3769_v59  ;;  %v3771_v55 = vpop.eup %3770  ;;  %v4721_v59 = vld [vmem:[#allocation10 + $0xe8] ss:$16 sps:$4 sm:$0xff]   ;;  %v4739_v44 = vld [vmem:[#allocation10 + $0xa4] ss:$16 sps:$4 sm:$0xff]  }
 0x143   :  { %3774 = vtanh.f32 %v511_v45  ;;  %v529_v48 = vadd.f32 1.0, %v3771_v55  ;;  %v4735_v45 = vld [vmem:[#allocation10 + $0xc8] ss:$16 sps:$4 sm:$0xff]   ;;  %v6548_v55 = vmov 0  }
 0x144   :  { %3776 = vrcp.f32 %v522_v43  ;;  %v4741_v43 = vld [vmem:[#allocation10 + $0xac] ss:$16 sps:$4 sm:$0xff]  }
 0x145   :  { %3778 = vrcp.f32 %v529_v48  ;;  %6547 = vst [vmem:[#allocation53_spill] sm:$0xff] %v4741_v43  ;;  %v4755_v48 = vld [vmem:[#allocation10 + $0x8c] ss:$16 sps:$4 sm:$0xff]  }
 0x146   :  { %6552 = vst [vmem:[#allocation57_spill] sm:$0xff] %v4755_v48 }
 0x14f   :  { %v3773_v51 = vpop.eup %3772 }
 0x150   :  { %v3775_v57 = vpop.eup %3774 }
 0x151   :  { %v3777_v54 = vpop.eup %3776  ;;  %v533_v53 = vmul.f32 %v3775_v57, %v3773_v51  ;;  %v4747_v51 = vld [vmem:[#allocation10 + $0xa0] ss:$16 sps:$4 sm:$0xff]   ;;  %v4749_v57 = vld [vmem:[#allocation10 + $0xa8] ss:$16 sps:$4 sm:$0xff]  }
 0x152   :  { %v532_v0 = vmul.f32 0.0, %v3777_v54  ;;  %v3779_v63 = vpop.eup %3778  ;;  %6549 = vst [vmem:[#allocation54_spill] sm:$0xff] %v4747_v51  ;;  %6550 = vst [vmem:[#allocation55_spill] sm:$0xff] %v4749_v57  ;;  %v4753_v54 = vld [vmem:[#allocation10 + $0x84] ss:$16 sps:$4 sm:$0xff]  }
 0x153   :  { %6551 = vst [vmem:[#allocation56_spill] sm:$0xff] %v4753_v54 }
 0x154   :  { %v4716_v46 = vadd.f32 %v533_v53, %v532_v0  ;;  %v4733_v53 = vld [vmem:[#allocation10 + $0xc0] ss:$16 sps:$4 sm:$0xff]  }
 0x155   :  { %v4759_v0 = vld [vmem:[#allocation10 + $0x80] ss:$16 sps:$4 sm:$0xff]  }
 0x156   :  { %3780 = vtanh.f32 %v4716_v46  ;;  %6553 = vst [vmem:[#allocation58_spill] sm:$0xff] %v4759_v0 }
 0x163   :  { %v3781_v50 = vpop.eup %3780 }
 0x164   :  { %v536_v47 = vmul.f32 %v3781_v50, %v3779_v63  ;;  %v4761_v63 = vld [vmem:[#allocation10 + $0x88] ss:$16 sps:$4 sm:$0xff]   ;;  %v4765_v50 = vld [vmem:[#allocation10 + $0x64] ss:$16 sps:$4 sm:$0xff]  }
 0x165   :  { %6554 = vst [vmem:[#allocation59_spill] sm:$0xff] %v4761_v63  ;;  %6555 = vst [vmem:[#allocation60_spill] sm:$0xff] %v4765_v50 }
 0x166   :  { %v4723_v62 = vpack.c.bf16 %v536_v47, %v536_v47  ;;  %v4767_v47 = vld [vmem:[#allocation10 + $0x6c] ss:$16 sps:$4 sm:$0xff]  }
 0x167   :  { %6556 = vst [vmem:[#allocation61_spill] sm:$0xff] %v4767_v47 }
 0x168   :  { %752 = vmatmul.mubr.bf16.vlgmr.msra.gmra.mxu0 %v4723_v62  ;;  %793 = vmatmul.mubr.bf16.vlgmr.msra.gmra.mxu1 %v4723_v62 }
 0x169   :  { %962 = vmatpush1.bf16.msra.mxu0 %v4719_v60  ;;  %1003 = vmatpush1.bf16.msra.mxu1 %v4721_v59 }
 0x16a   :  { %963 = vmatprep.subr.bf16.mxu0 %v4725_v27  ;;  %1004 = vmatprep.subr.bf16.mxu1 %v4727_v61 }
 0x16b   :  { %993 = vmatprep.mubr.bf16.mxu0 %v6548_v55  ;;  %1034 = vmatprep.mubr.bf16.mxu1 %v6548_v55 }
 0x16d   :  { %964 = vmatpush1.bf16.msra.mxu0 %v4733_v53  ;;  %1005 = vmatpush1.bf16.msra.mxu1 %v4735_v45 }
 0x16e   :  { %965 = vmatprep.subr.bf16.mxu0 %v4739_v44  ;;  %1006 = vmatprep.subr.bf16.mxu1 %v4741_v43  ;;  %v4771_v43 = vld [vmem:[#allocation10 + $0x60] ss:$16 sps:$4 sm:$0xff]  }
 0x16f   :  { %6557 = vst [vmem:[#allocation62_spill] sm:$0xff] %v4771_v43 }
 0x171   :  { %966 = vmatpush1.bf16.msra.mxu0 %v4747_v51  ;;  %1007 = vmatpush1.bf16.msra.mxu1 %v4749_v57  ;;  %v4773_v51 = vld [vmem:[#allocation10 + $0x68] ss:$16 sps:$4 sm:$0xff]   ;;  %v4777_v57 = vld [vmem:[#allocation10 + $0x44] ss:$16 sps:$4 sm:$0xff]  }
 0x172   :  { %967 = vmatprep.subr.bf16.mxu0 %v4753_v54  ;;  %1008 = vmatprep.subr.bf16.mxu1 %v4755_v48  ;;  %6558 = vst [vmem:[#allocation63_spill] sm:$0xff] %v4773_v51  ;;  %6559 = vst [vmem:[#allocation64_spill] sm:$0xff] %v4777_v57  ;;  %v4779_v54 = vld [vmem:[#allocation10 + $0x4c] ss:$16 sps:$4 sm:$0xff]   ;;  %v4783_v48 = vld [vmem:[#allocation10 + $0x40] ss:$16 sps:$4 sm:$0xff]  }
 0x173   :  { %6560 = vst [vmem:[#allocation65_spill] sm:$0xff] %v4779_v54  ;;  %6561 = vst [vmem:[#allocation66_spill] sm:$0xff] %v4783_v48 }
 0x175   :  { %968 = vmatpush1.bf16.msra.mxu0 %v4759_v0  ;;  %1009 = vmatpush1.bf16.msra.mxu1 %v4761_v63  ;;  %v4785_v0 = vld [vmem:[#allocation10 + $0x48] ss:$16 sps:$4 sm:$0xff]   ;;  %v4789_v63 = vld [vmem:[#allocation10 + $0x24] ss:$16 sps:$4 sm:$0xff]  }
 0x176   :  { %969 = vmatprep.subr.bf16.mxu0 %v4765_v50  ;;  %1010 = vmatprep.subr.bf16.mxu1 %v4767_v47  ;;  %v4791_v50 = vld [vmem:[#allocation10 + $0x2c] ss:$16 sps:$4 sm:$0xff]   ;;  %v4795_v47 = vld [vmem:[#allocation10 + $0x20] ss:$16 sps:$4 sm:$0xff]  }
 0x179   :  { %970 = vmatpush1.bf16.msra.mxu0 %v4771_v43  ;;  %1011 = vmatpush1.bf16.msra.mxu1 %v4773_v51  ;;  %v4797_v43 = vld [vmem:[#allocation10 + $0x28] ss:$16 sps:$4 sm:$0xff]   ;;  %v4801_v51 = vld [vmem:[#allocation10 + $0x4] ss:$16 sps:$4 sm:$0xff]  }
 0x17a   :  { %971 = vmatprep.subr.bf16.mxu0 %v4777_v57  ;;  %1012 = vmatprep.subr.bf16.mxu1 %v4779_v54  ;;  %v4803_v57 = vld [vmem:[#allocation10 + $0xc] ss:$16 sps:$4 sm:$0xff]   ;;  %v4807_v54 = vld [vmem:[#allocation10] ss:$16 sps:$4 sm:$0xff]  }
 0x17d   :  { %972 = vmatpush1.bf16.msra.mxu0 %v4783_v48  ;;  %1013 = vmatpush1.bf16.msra.mxu1 %v4785_v0  ;;  %v4809_v48 = vld [vmem:[#allocation10 + $0x8] ss:$16 sps:$4 sm:$0xff]  }
 0x17e   :  { %973 = vmatprep.subr.bf16.mxu0 %v4789_v63  ;;  %1014 = vmatprep.subr.bf16.mxu1 %v4791_v50 }
 0x181   :  { %974 = vmatpush1.bf16.msra.mxu0 %v4795_v47  ;;  %1015 = vmatpush1.bf16.msra.mxu1 %v4797_v43 }
 0x182   :  { %975 = vmatprep.subr.bf16.mxu0 %v4801_v51  ;;  %1016 = vmatprep.subr.bf16.mxu1 %v4803_v57 }
 0x185   :  { %976 = vmatpush1.bf16.msra.mxu0 %v4807_v54  ;;  %1017 = vmatpush1.bf16.msra.mxu1 %v4809_v48 }
 0x186   :  { %1083 = vmatprep.subr.bf16.mxu0 %v4467_v1  ;;  %1124 = vmatprep.subr.bf16.mxu1 %v4469_v2  ;;  %v6562_v1 = vld [vmem:[#allocation20_spill] sm:$0xff]  ;;  %v6563_v2 = vld [vmem:[#allocation21_spill] sm:$0xff] }
 0x188   :  { %994 = vmatmul.mubr.bf16.vlgmr.msra.gmra.mxu0 %v6548_v55  ;;  %1035 = vmatmul.mubr.bf16.vlgmr.msra.gmra.mxu1 %v6548_v55 }
 0x189   :  { %1084 = vmatpush1.bf16.msra.mxu0 %v4472_v3  ;;  %1125 = vmatpush1.bf16.msra.mxu1 %v4474_v4  ;;  %v6564_v3 = vld [vmem:[#allocation22_spill] sm:$0xff]  ;;  %v6565_v4 = vld [vmem:[#allocation23_spill] sm:$0xff] }
 0x18a   :  { %1085 = vmatprep.subr.bf16.mxu0 %v4477_v5  ;;  %1126 = vmatprep.subr.bf16.mxu1 %v4481_v6  ;;  %v6566_v5 = vld [vmem:[#allocation24_spill] sm:$0xff]  ;;  %v6567_v6 = vld [vmem:[#allocation25_spill] sm:$0xff] }
 0x18b   :  { %1115 = vmatprep.mubr.bf16.mxu0 %v6548_v55  ;;  %1156 = vmatprep.mubr.bf16.mxu1 %v6548_v55 }
 0x18d   :  { %1086 = vmatpush1.bf16.msra.mxu0 %v4483_v7  ;;  %1127 = vmatpush1.bf16.msra.mxu1 %v4486_v8  ;;  %v6568_v7 = vld [vmem:[#allocation26_spill] sm:$0xff]  ;;  %v6569_v8 = vld [vmem:[#allocation27_spill] sm:$0xff] }
 0x18e   :  { %1087 = vmatprep.subr.bf16.mxu0 %v4489_v9  ;;  %1128 = vmatprep.subr.bf16.mxu1 %v4491_v10  ;;  %v6570_v9 = vld [vmem:[#allocation28_spill] sm:$0xff]  ;;  %v6571_v10 = vld [vmem:[#allocation29_spill] sm:$0xff] }
 0x191   :  { %1088 = vmatpush1.bf16.msra.mxu0 %v4493_v11  ;;  %1129 = vmatpush1.bf16.msra.mxu1 %v4495_v12  ;;  %v6572_v11 = vld [vmem:[#allocation30_spill] sm:$0xff]  ;;  %v6573_v12 = vld [vmem:[#allocation31_spill] sm:$0xff] }
 0x192   :  { %1089 = vmatprep.subr.bf16.mxu0 %v4499_v13  ;;  %1130 = vmatprep.subr.bf16.mxu1 %v4503_v14  ;;  %v6574_v13 = vld [vmem:[#allocation32_spill] sm:$0xff]  ;;  %v6575_v14 = vld [vmem:[#allocation33_spill] sm:$0xff] }
 0x195   :  { %1090 = vmatpush1.bf16.msra.mxu0 %v4505_v15  ;;  %1131 = vmatpush1.bf16.msra.mxu1 %v4509_v16  ;;  %v6576_v15 = vld [vmem:[#allocation34_spill] sm:$0xff]  ;;  %v6577_v16 = vld [vmem:[#allocation35_spill] sm:$0xff] }
 0x196   :  { %1091 = vmatprep.subr.bf16.mxu0 %v4511_v17  ;;  %1132 = vmatprep.subr.bf16.mxu1 %v4515_v18  ;;  %v6578_v17 = vld [vmem:[#allocation36_spill] sm:$0xff]  ;;  %v6579_v18 = vld [vmem:[#allocation37_spill] sm:$0xff] }
 0x199   :  { %1092 = vmatpush1.bf16.msra.mxu0 %v4517_v19  ;;  %1133 = vmatpush1.bf16.msra.mxu1 %v4519_v20  ;;  %v6580_v19 = vld [vmem:[#allocation38_spill] sm:$0xff]  ;;  %v6581_v20 = vld [vmem:[#allocation39_spill] sm:$0xff] }
 0x19a   :  { %1093 = vmatprep.subr.bf16.mxu0 %v4523_v21  ;;  %1134 = vmatprep.subr.bf16.mxu1 %v4527_v22  ;;  %v6582_v21 = vld [vmem:[#allocation40_spill] sm:$0xff]  ;;  %v6583_v22 = vld [vmem:[#allocation41_spill] sm:$0xff] }
 0x19d   :  { %1094 = vmatpush1.bf16.msra.mxu0 %v4531_v23  ;;  %1135 = vmatpush1.bf16.msra.mxu1 %v4533_v24  ;;  %v6584_v23 = vld [vmem:[#allocation42_spill] sm:$0xff]  ;;  %v6585_v24 = vld [vmem:[#allocation43_spill] sm:$0xff] }
 0x19e   :  { %1095 = vmatprep.subr.bf16.mxu0 %v4537_v25  ;;  %1136 = vmatprep.subr.bf16.mxu1 %v4539_v26  ;;  %v6586_v25 = vld [vmem:[#allocation44_spill] sm:$0xff] }
 0x1a1   :  { %1096 = vmatpush1.bf16.msra.mxu0 %v4543_v28  ;;  %1137 = vmatpush1.bf16.msra.mxu1 %v4545_v29 }
 0x1a2   :  { %1097 = vmatprep.subr.bf16.mxu0 %v4548_v30  ;;  %1138 = vmatprep.subr.bf16.mxu1 %v4550_v31 }
 0x1a5   :  { %1098 = vmatpush1.bf16.msra.mxu0 %v4556_v32  ;;  %1139 = vmatpush1.bf16.msra.mxu1 %v4558_v33 }
 0x1a6   :  { %1194 = vmatprep.subr.bf16.mxu0 %v4570_v34  ;;  %1235 = vmatprep.subr.bf16.mxu1 %v4572_v35 }
 0x1a8   :  { %1116 = vmatmul.mubr.bf16.vlgmr.msra.gmra.mxu0 %v4723_v62  ;;  %1157 = vmatmul.mubr.bf16.vlgmr.msra.gmra.mxu1 %v4723_v62 }
 0x1a9   :  { %1195 = vmatpush1.bf16.msra.mxu0 %v4574_v36  ;;  %1236 = vmatpush1.bf16.msra.mxu1 %v4576_v37 }
 0x1aa   :  { %1196 = vmatprep.subr.bf16.mxu0 %v4582_v38  ;;  %1237 = vmatprep.subr.bf16.mxu1 %v4584_v39 }
 0x1ab   :  { %1226 = vmatprep.mubr.bf16.mxu0 %v6548_v55  ;;  %1267 = vmatprep.mubr.bf16.mxu1 %v6548_v55 }
 0x1ad   :  { %1197 = vmatpush1.bf16.msra.mxu0 %v4586_v40  ;;  %1238 = vmatpush1.bf16.msra.mxu1 %v4588_v41 }
 0x1ae   :  { %1198 = vmatprep.subr.bf16.mxu0 %v4594_v42  ;;  %1239 = vmatprep.subr.bf16.mxu1 %v6562_v1 }
 0x1b1   :  { %1199 = vmatpush1.bf16.msra.mxu0 %v6563_v2  ;;  %1240 = vmatpush1.bf16.msra.mxu1 %v6564_v3 }
 0x1b2   :  { %1200 = vmatprep.subr.bf16.mxu0 %v6565_v4  ;;  %1241 = vmatprep.subr.bf16.mxu1 %v6566_v5 }
 0x1b5   :  { %1201 = vmatpush1.bf16.msra.mxu0 %v6567_v6  ;;  %1242 = vmatpush1.bf16.msra.mxu1 %v6568_v7 }
 0x1b6   :  { %1202 = vmatprep.subr.bf16.mxu0 %v6569_v8  ;;  %1243 = vmatprep.subr.bf16.mxu1 %v6570_v9 }
 0x1b9   :  { %1203 = vmatpush1.bf16.msra.mxu0 %v6571_v10  ;;  %1244 = vmatpush1.bf16.msra.mxu1 %v6572_v11 }
 0x1ba   :  { %1204 = vmatprep.subr.bf16.mxu0 %v6573_v12  ;;  %1245 = vmatprep.subr.bf16.mxu1 %v6574_v13 }
 0x1bd   :  { %1205 = vmatpush1.bf16.msra.mxu0 %v6575_v14  ;;  %1246 = vmatpush1.bf16.msra.mxu1 %v6576_v15 }
 0x1be   :  { %1206 = vmatprep.subr.bf16.mxu0 %v6577_v16  ;;  %1247 = vmatprep.subr.bf16.mxu1 %v6578_v17 }
 0x1c1   :  { %1207 = vmatpush1.bf16.msra.mxu0 %v6579_v18  ;;  %1248 = vmatpush1.bf16.msra.mxu1 %v6580_v19 }
 0x1c2   :  { %1208 = vmatprep.subr.bf16.mxu0 %v6581_v20  ;;  %1249 = vmatprep.subr.bf16.mxu1 %v6582_v21  ;;  %v210_v21 = vld [vmem:[%s6152_s6] sm:$0xf]  ;;  %v6587_v20 = vld [vmem:[#allocation45_spill] sm:$0xff] }
 0x1c3   :  { %v4902_v19 = vrot.slane %v210_v21, %v4693_v52 }
 0x1c5   :  { %1209 = vmatpush1.bf16.msra.mxu0 %v6583_v22  ;;  %1250 = vmatpush1.bf16.msra.mxu1 %v6584_v23  ;;  %v4893_v22 = vrot.slane %v210_v21, %v6587_v20  ;;  %v4896_v23 = vrot.slane %v210_v21, %v4701_v56  ;;  %6592 = vst [vmem:[#allocation23_spill] sm:$0xff] %v4902_v19 }
 0x1c6   :  { %1277 = vmatprep.subr.bf16.mxu0 %v6585_v24  ;;  %1318 = vmatprep.subr.bf16.mxu1 %v6586_v25  ;;  %v6590_v24 = vld [vmem:[#allocation46_spill] sm:$0xff] }
 0x1c7   :  { %6588 = vst [vmem:[#allocation20_spill] sm:$0xff] %v4893_v22  ;;  %6589 = vst [vmem:[#allocation21_spill] sm:$0xff] %v4896_v23  ;;  %v4899_v25 = vrot.slane %v210_v21, %v6590_v24 }
 0x1c9   :  { %6591 = vst [vmem:[#allocation22_spill] sm:$0xff] %v4899_v25 }
 0x228   :  { %v753_v26 = vpop.f32.mrf.mxu0  ;;  %v794_v28 = vpop.f32.mrf.mxu1 }
 0x22a   :  { %v755_v29 = vpop.f32.mrf.mxu0  ;;  %v796_v30 = vpop.f32.mrf.mxu1 }
 0x22b   :  { %v756_v18 = vadd.f32 %v755_v29, %v4899_v25  ;;  %v797_v20 = vadd.f32 %v796_v30, %v4902_v19 }
 0x22c   :  { %v757_v31 = vpop.f32.mrf.mxu0  ;;  %v798_v32 = vpop.f32.mrf.mxu1 }
 0x22d   :  { %v754_v31 = vadd.f32 %v753_v26, %v4893_v22  ;;  %v795_v32 = vadd.f32 %v794_v28, %v4896_v23 }
 0x22e   :  { %v758_v33 = vpop.f32.mrf.mxu0  ;;  %v799_v62 = vpop.f32.mrf.mxu1 }
 0x248   :  { %v995_v33 = vpop.f32.mrf.mxu0  ;;  %v1036_v62 = vpop.f32.mrf.mxu1 }
 0x249   :  { %v1043_v17 = vadd.f32 %v995_v33, %v754_v31  ;;  %v1045_v16 = vadd.f32 %v1036_v62, %v795_v32  ;;  %v1073_v31 = vpop.permute.xlu0 %1072  ;;  %v6593_v32 = vld [vmem:[#allocation47_spill] sm:$0xff]  ;;  %v4378_v33 = vmov 2   ;;  %v6595_v62 = vld [vmem:[#allocation49_spill] sm:$0xff] }
 0x24a   :  { %v997_v56 = vpop.f32.mrf.mxu0  ;;  %v1038_v15 = vpop.f32.mrf.mxu1  ;;  %3615 = vset.pattern.permute.xlu1 %v4378_v33 }
 0x24b   :  { %v3494_v14 = vmul.f32 -1.442695, %v1043_v17  ;;  %v1044_v24 = vadd.f32 %v997_v56, %v756_v18  ;;  %v4908_v13 = vadd.f32 %v1038_v15, %v797_v20  ;;  %v1075_v17 = vmul.f32 %v1073_v31, %v6593_v32  ;;  %v6594_v18 = vld [vmem:[#allocation48_spill] sm:$0xff]  ;;  %v6596_v20 = vld [vmem:[#allocation19_spill] sm:$0xff] }
 0x24c   :  { %v999_v52 = vpop.f32.mrf.mxu0  ;;  %v1040_v21 = vpop.f32.mrf.mxu1  ;;  %v1076_v15 = vmul.f32 %v1073_v31, %v6594_v18  ;;  %1388 = vperm.xlu1 %3615, %v6596_v20   ;;  %v6598_v18 = vld [vmem:[#allocation51_spill] sm:$0xff] }
 0x24d   :  { %3782 = vpow2.f32 %v3494_v14  ;;  %v3495_v26 = vmul.f32 -1.442695, %v1044_v24  ;;  %v1079_v14 = vadd.f32 %v1075_v17, %v6595_v62  ;;  %v1078_v19 = vmul.f32 %v1073_v31, %v6598_v18 }
 0x24e   :  { %v1000_v22 = vpop.f32.mrf.mxu0  ;;  %v1041_v28 = vpop.f32.mrf.mxu1 }
 0x24f   :  { %3784 = vpow2.f32 %v3495_v26  ;;  %v6597_v22 = vld [vmem:[#allocation50_spill] sm:$0xff] }
 0x250   :  { %3786 = vtanh.f32 %v1045_v16  ;;  %v1080_v56 = vadd.f32 %v1076_v15, %v6597_v22 }
 0x25a   :  { %v3783_v23 = vpop.eup %3782 }
 0x25b   :  { %v1050_v12 = vadd.f32 1.0, %v3783_v23 }
 0x25c   :  { %v3785_v29 = vpop.eup %3784 }
 0x25d   :  { %3788 = vrcp.f32 %v1050_v12  ;;  %v1056_v30 = vadd.f32 1.0, %v3785_v29  ;;  %v3787_v52 = vpop.eup %3786 }
 0x25f   :  { %3790 = vrcp.f32 %v1056_v30 }
 0x268   :  { %v1117_v24 = vpop.f32.mrf.mxu0  ;;  %v1158_v23 = vpop.f32.mrf.mxu1 }
 0x269   :  { %v1165_v16 = vadd.f32 %v1117_v24, %v1079_v14  ;;  %v1082_v14 = vadd.f32 %v1078_v19, %v4705_v58  ;;  %v6599_v24 = vld [vmem:[#allocation52_spill] sm:$0xff] }
 0x26a   :  { %v3789_v12 = vpop.eup %3788  ;;  %v1119_v21 = vpop.f32.mrf.mxu0  ;;  %v1077_v11 = vmul.f32 %v1073_v31, %v6599_v24 }
 0x26b   :  { %v1160_v26 = vpop.f32.mrf.mxu1  ;;  %v1067_v28 = vmul.f32 %v3789_v12, %v3787_v52  ;;  %v3497_v29 = vmul.f32 -1.442695, %v1165_v16  ;;  %v1166_v30 = vadd.f32 %v1119_v21, %v1080_v56 }
 0x26c   :  { %v3791_v32 = vpop.eup %3790  ;;  %v1121_v33 = vpop.f32.mrf.mxu0  ;;  %v1168_v52 = vadd.f32 %v1160_v26, %v1082_v14  ;;  %v1081_v56 = vadd.f32 %v1077_v11, %v4713_v49  ;;  %v3496_v11 = vmul.f32 -1.442695, %v4908_v13  ;;  %v6600_v13 = vld [vmem:[#allocation53_spill] sm:$0xff] }
 0x26d   :  { %v1162_v25 = vpop.f32.mrf.mxu1  ;;  %v1066_v17 = vmul.f32 0.0, %v3791_v32  ;;  %3792 = vpow2.f32 %v3497_v29  ;;  %v3498_v20 = vmul.f32 -1.442695, %v1166_v30 }
 0x26e   :  { %v1122_v62 = vpop.f32.mrf.mxu0  ;;  %v3499_v16 = vmul.f32 -1.442695, %v1168_v52  ;;  %v1167_v21 = vadd.f32 %v1158_v23, %v1081_v56  ;;  %v6601_v56 = vld [vmem:[#allocation54_spill] sm:$0xff] }
 0x26f   :  { %v1163_v15 = vpop.f32.mrf.mxu1  ;;  %v4916_v22 = vadd.f32 %v1067_v28, %v1066_v17  ;;  %3794 = vpow2.f32 %v3498_v20 }
 0x270   :  { %3796 = vpow2.f32 %v3499_v16  ;;  %v6602_v16 = vld [vmem:[#allocation55_spill] sm:$0xff] }
 0x27a   :  { %v3793_v12 = vpop.eup %3792 }
 0x27b   :  { %v1172_v33 = vadd.f32 1.0, %v3793_v12  ;;  %v6603_v12 = vld [vmem:[#allocation56_spill] sm:$0xff] }
 0x27c   :  { %v3795_v25 = vpop.eup %3794 }
 0x27d   :  { %3798 = vrcp.f32 %v1172_v33  ;;  %v1178_v32 = vadd.f32 1.0, %v3795_v25  ;;  %v3797_v62 = vpop.eup %3796  ;;  %v6605_v33 = vld [vmem:[#allocation58_spill] sm:$0xff]  ;;  %v6606_v25 = vld [vmem:[#allocation59_spill] sm:$0xff] }
 0x27e   :  { %3800 = vtanh.f32 %v1167_v21  ;;  %v1185_v19 = vadd.f32 1.0, %v3797_v62  ;;  %v6604_v21 = vld [vmem:[#allocation57_spill] sm:$0xff] }
 0x27f   :  { %3802 = vrcp.f32 %v1178_v32  ;;  %v6607_v32 = vld [vmem:[#allocation60_spill] sm:$0xff]  ;;  %v6608_v62 = vld [vmem:[#allocation61_spill] sm:$0xff] }
 0x280   :  { %3804 = vrcp.f32 %v1185_v19  ;;  %v6612_v19 = vld [vmem:[#allocation65_spill] sm:$0xff] }
 0x28a   :  { %v3799_v28 = vpop.eup %3798 }
 0x28b   :  { %v3801_v29 = vpop.eup %3800 }
 0x28c   :  { %v3803_v30 = vpop.eup %3802  ;;  %v1189_v17 = vmul.f32 %v3801_v29, %v3799_v28  ;;  %v6609_v28 = vld [vmem:[#allocation62_spill] sm:$0xff]  ;;  %v6610_v29 = vld [vmem:[#allocation63_spill] sm:$0xff] }
 0x28d   :  { %v1188_v31 = vmul.f32 %v3803_v30, %v4716_v46  ;;  %v3805_v23 = vpop.eup %3804  ;;  %v6611_v30 = vld [vmem:[#allocation64_spill] sm:$0xff] }
 0x28f   :  { %v4922_v26 = vadd.f32 %v1189_v17, %v1188_v31  ;;  %v6613_v17 = vld [vmem:[#allocation66_spill] sm:$0xff] }
 0x291   :  { %3806 = vtanh.f32 %v4922_v26 }
 0x292   :  { %3808 = vpow2.f32 %v3496_v11 }
 0x293   :  { %3810 = vtanh.f32 %v4916_v22 }
 0x29e   :  { %v3807_v20 = vpop.eup %3806 }
 0x29f   :  { %v1192_v15 = vmul.f32 %v3807_v20, %v3805_v23  ;;  %v3809_v46 = vpop.eup %3808 }
 0x2a0   :  { %v1063_v52 = vadd.f32 1.0, %v3809_v46  ;;  %v3811_v31 = vpop.eup %3810  ;;  %v4966_v46 = vld [vmem:[#allocation7 + $0xec] ss:$16 sps:$4 sm:$0xff]  }
 0x2a1   :  { %v4926_v14 = vpack.c.bf16 %v1192_v15, %v1192_v15  ;;  %v4963_v15 = vld [vmem:[#allocation7 + $0xe4] ss:$16 sps:$4 sm:$0xff]   ;;  %6614 = vst [vmem:[#allocation24_spill] sm:$0xff] %v4966_v46 }
 0x2a2   :  { %3812 = vrcp.f32 %v1063_v52  ;;  %v4969_v52 = vld [vmem:[#allocation7 + $0xe0] ss:$16 sps:$4 sm:$0xff]  }
 0x2a3   :  { %1227 = vmatmul.mubr.bf16.vlgmr.msra.gmra.mxu0 %v4926_v14  ;;  %1268 = vmatmul.mubr.bf16.vlgmr.msra.gmra.mxu1 %v4926_v14  ;;  %6615 = vst [vmem:[#allocation25_spill] sm:$0xff] %v4969_v52 }
 0x2a4   :  { %1278 = vmatpush1.bf16.msra.mxu0 %v4719_v60  ;;  %1319 = vmatpush1.bf16.msra.mxu1 %v4721_v59 }
 0x2a5   :  { %1279 = vmatprep.subr.bf16.mxu0 %v4725_v27  ;;  %1320 = vmatprep.subr.bf16.mxu1 %v4727_v61 }
 0x2a6   :  { %1309 = vmatprep.mubr.bf16.mxu0 %v6548_v55  ;;  %1350 = vmatprep.mubr.bf16.mxu1 %v6548_v55 }
 0x2a8   :  { %1280 = vmatpush1.bf16.msra.mxu0 %v4733_v53  ;;  %1321 = vmatpush1.bf16.msra.mxu1 %v4735_v45 }
 0x2a9   :  { %1281 = vmatprep.subr.bf16.mxu0 %v4739_v44  ;;  %1322 = vmatprep.subr.bf16.mxu1 %v6600_v13 }
 0x2ac   :  { %1282 = vmatpush1.bf16.msra.mxu0 %v6601_v56  ;;  %1323 = vmatpush1.bf16.msra.mxu1 %v6602_v16 }
 0x2ad   :  { %1283 = vmatprep.subr.bf16.mxu0 %v6603_v12  ;;  %1324 = vmatprep.subr.bf16.mxu1 %v6604_v21 }
 0x2af   :  { %v3813_v11 = vpop.eup %3812 }
 0x2b0   :  { %1284 = vmatpush1.bf16.msra.mxu0 %v6605_v33  ;;  %1325 = vmatpush1.bf16.msra.mxu1 %v6606_v25  ;;  %v1070_v23 = vmul.f32 %v3813_v11, %v3811_v31  ;;  %v4972_v31 = vld [vmem:[#allocation7 + $0xe8] ss:$16 sps:$4 sm:$0xff]   ;;  %v4975_v11 = vld [vmem:[#allocation7 + $0xc4] ss:$16 sps:$4 sm:$0xff]  }
 0x2b1   :  { %1285 = vmatprep.subr.bf16.mxu0 %v6607_v32  ;;  %1326 = vmatprep.subr.bf16.mxu1 %v6608_v62  ;;  %6616 = vst [vmem:[#allocation26_spill] sm:$0xff] %v4972_v31  ;;  %6617 = vst [vmem:[#allocation27_spill] sm:$0xff] %v4975_v11 }
 0x2b2   :  { %v1276_v20 = vpack.c.bf16 %v1070_v23, %v1070_v23  ;;  %v4978_v23 = vld [vmem:[#allocation7 + $0xcc] ss:$16 sps:$4 sm:$0xff]  }
 0x2b3   :  { %6618 = vst [vmem:[#allocation28_spill] sm:$0xff] %v4978_v23 }
 0x2b4   :  { %1286 = vmatpush1.bf16.msra.mxu0 %v6609_v28  ;;  %1327 = vmatpush1.bf16.msra.mxu1 %v6610_v29 }
 0x2b5   :  { %1287 = vmatprep.subr.bf16.mxu0 %v6611_v30  ;;  %1328 = vmatprep.subr.bf16.mxu1 %v6612_v19 }
 0x2b8   :  { %1288 = vmatpush1.bf16.msra.mxu0 %v6613_v17  ;;  %1329 = vmatpush1.bf16.msra.mxu1 %v4785_v0 }
 0x2b9   :  { %1289 = vmatprep.subr.bf16.mxu0 %v4789_v63  ;;  %1330 = vmatprep.subr.bf16.mxu1 %v4791_v50 }
 0x2bc   :  { %1290 = vmatpush1.bf16.msra.mxu0 %v4795_v47  ;;  %1331 = vmatpush1.bf16.msra.mxu1 %v4797_v43 }
 0x2bd   :  { %1291 = vmatprep.subr.bf16.mxu0 %v4801_v51  ;;  %1332 = vmatprep.subr.bf16.mxu1 %v4803_v57 }
 0x2c0   :  { %1292 = vmatpush1.bf16.msra.mxu0 %v4807_v54  ;;  %1333 = vmatpush1.bf16.msra.mxu1 %v4809_v48 }
 0x2c1   :  { %1399 = vmatprep.subr.bf16.mxu0 %v4963_v15  ;;  %1440 = vmatprep.subr.bf16.mxu1 %v4966_v46  ;;  %v4998_v46 = vld [vmem:[#allocation7 + $0xa8] ss:$16 sps:$4 sm:$0xff]  }
 0x2c2   :  { %6624 = vst [vmem:[#allocation52_spill] sm:$0xff] %v4998_v46 }
 0x2c3   :  { %1310 = vmatmul.mubr.bf16.vlgmr.msra.gmra.mxu0 %v1276_v20  ;;  %1351 = vmatmul.mubr.bf16.vlgmr.msra.gmra.mxu1 %v1276_v20  ;;  %v4983_v20 = vld [vmem:[#allocation7 + $0xc0] ss:$16 sps:$4 sm:$0xff]  }
 0x2c4   :  { %1400 = vmatpush1.bf16.msra.mxu0 %v4969_v52  ;;  %1441 = vmatpush1.bf16.msra.mxu1 %v4972_v31  ;;  %6619 = vst [vmem:[#allocation29_spill] sm:$0xff] %v4983_v20  ;;  %v4986_v52 = vld [vmem:[#allocation7 + $0xc8] ss:$16 sps:$4 sm:$0xff]   ;;  %v4989_v31 = vld [vmem:[#allocation7 + $0xa4] ss:$16 sps:$4 sm:$0xff]  }
 0x2c5   :  { %1401 = vmatprep.subr.bf16.mxu0 %v4975_v11  ;;  %1442 = vmatprep.subr.bf16.mxu1 %v4978_v23  ;;  %6620 = vst [vmem:[#allocation45_spill] sm:$0xff] %v4986_v52  ;;  %6621 = vst [vmem:[#allocation46_spill] sm:$0xff] %v4989_v31  ;;  %v4992_v11 = vld [vmem:[#allocation7 + $0xac] ss:$16 sps:$4 sm:$0xff]   ;;  %v4995_v23 = vld [vmem:[#allocation7 + $0xa0] ss:$16 sps:$4 sm:$0xff]  }
 0x2c6   :  { %1431 = vmatprep.mubr.bf16.mxu0 %v6548_v55  ;;  %1472 = vmatprep.mubr.bf16.mxu1 %v6548_v55  ;;  %6622 = vst [vmem:[#allocation19_spill] sm:$0xff] %v4992_v11  ;;  %6623 = vst [vmem:[#allocation51_spill] sm:$0xff] %v4995_v23 }
 0x2c8   :  { %1402 = vmatpush1.bf16.msra.mxu0 %v4983_v20  ;;  %1443 = vmatpush1.bf16.msra.mxu1 %v4986_v52  ;;  %v5001_v20 = vld [vmem:[#allocation7 + $0x84] ss:$16 sps:$4 sm:$0xff]   ;;  %v5004_v52 = vld [vmem:[#allocation7 + $0x8c] ss:$16 sps:$4 sm:$0xff]  }
 0x2c9   :  { %1403 = vmatprep.subr.bf16.mxu0 %v4989_v31  ;;  %1444 = vmatprep.subr.bf16.mxu1 %v4992_v11  ;;  %6625 = vst [vmem:[#allocation53_spill] sm:$0xff] %v5001_v20  ;;  %6626 = vst [vmem:[#allocation54_spill] sm:$0xff] %v5004_v52  ;;  %v5007_v31 = vld [vmem:[#allocation7 + $0x80] ss:$16 sps:$4 sm:$0xff]   ;;  %v5010_v11 = vld [vmem:[#allocation7 + $0x88] ss:$16 sps:$4 sm:$0xff]  }
 0x2ca   :  { %6627 = vst [vmem:[#allocation55_spill] sm:$0xff] %v5007_v31  ;;  %6628 = vst [vmem:[#allocation56_spill] sm:$0xff] %v5010_v11 }
 0x2cc   :  { %1404 = vmatpush1.bf16.msra.mxu0 %v4995_v23  ;;  %1445 = vmatpush1.bf16.msra.mxu1 %v4998_v46  ;;  %v5013_v23 = vld [vmem:[#allocation7 + $0x64] ss:$16 sps:$4 sm:$0xff]   ;;  %v5016_v46 = vld [vmem:[#allocation7 + $0x6c] ss:$16 sps:$4 sm:$0xff]  }
 0x2cd   :  { %1405 = vmatprep.subr.bf16.mxu0 %v5001_v20  ;;  %1446 = vmatprep.subr.bf16.mxu1 %v5004_v52  ;;  %6629 = vst [vmem:[#allocation57_spill] sm:$0xff] %v5013_v23  ;;  %6630 = vst [vmem:[#allocation58_spill] sm:$0xff] %v5016_v46  ;;  %v5019_v20 = vld [vmem:[#allocation7 + $0x60] ss:$16 sps:$4 sm:$0xff]   ;;  %v5022_v52 = vld [vmem:[#allocation7 + $0x68] ss:$16 sps:$4 sm:$0xff]  }
 0x2ce   :  { %6631 = vst [vmem:[#allocation59_spill] sm:$0xff] %v5019_v20  ;;  %6632 = vst [vmem:[#allocation60_spill] sm:$0xff] %v5022_v52 }
 0x2d0   :  { %1406 = vmatpush1.bf16.msra.mxu0 %v5007_v31  ;;  %1447 = vmatpush1.bf16.msra.mxu1 %v5010_v11  ;;  %v5025_v31 = vld [vmem:[#allocation7 + $0x44] ss:$16 sps:$4 sm:$0xff]   ;;  %v5028_v11 = vld [vmem:[#allocation7 + $0x4c] ss:$16 sps:$4 sm:$0xff]  }
 0x2d1   :  { %1407 = vmatprep.subr.bf16.mxu0 %v5013_v23  ;;  %1448 = vmatprep.subr.bf16.mxu1 %v5016_v46  ;;  %6633 = vst [vmem:[#allocation61_spill] sm:$0xff] %v5025_v31  ;;  %6634 = vst [vmem:[#allocation62_spill] sm:$0xff] %v5028_v11  ;;  %v5031_v23 = vld [vmem:[#allocation7 + $0x40] ss:$16 sps:$4 sm:$0xff]   ;;  %v5034_v46 = vld [vmem:[#allocation7 + $0x48] ss:$16 sps:$4 sm:$0xff]  }
 0x2d2   :  { %6635 = vst [vmem:[#allocation63_spill] sm:$0xff] %v5031_v23  ;;  %6636 = vst [vmem:[#allocation64_spill] sm:$0xff] %v5034_v46 }
 0x2d4   :  { %1408 = vmatpush1.bf16.msra.mxu0 %v5019_v20  ;;  %1449 = vmatpush1.bf16.msra.mxu1 %v5022_v52  ;;  %v5037_v20 = vld [vmem:[#allocation7 + $0x24] ss:$16 sps:$4 sm:$0xff]   ;;  %v5040_v52 = vld [vmem:[#allocation7 + $0x2c] ss:$16 sps:$4 sm:$0xff]  }
 0x2d5   :  { %1409 = vmatprep.subr.bf16.mxu0 %v5025_v31  ;;  %1450 = vmatprep.subr.bf16.mxu1 %v5028_v11  ;;  %6637 = vst [vmem:[#allocation65_spill] sm:$0xff] %v5037_v20  ;;  %6638 = vst [vmem:[#allocation66_spill] sm:$0xff] %v5040_v52  ;;  %v5043_v31 = vld [vmem:[#allocation7 + $0x20] ss:$16 sps:$4 sm:$0xff]   ;;  %v5046_v11 = vld [vmem:[#allocation7 + $0x28] ss:$16 sps:$4 sm:$0xff]  }
 0x2d8   :  { %1410 = vmatpush1.bf16.msra.mxu0 %v5031_v23  ;;  %1451 = vmatpush1.bf16.msra.mxu1 %v5034_v46  ;;  %v5049_v23 = vld [vmem:[#allocation7 + $0x4] ss:$16 sps:$4 sm:$0xff]   ;;  %v5052_v46 = vld [vmem:[#allocation7 + $0xc] ss:$16 sps:$4 sm:$0xff]  }
 0x2d9   :  { %1411 = vmatprep.subr.bf16.mxu0 %v5037_v20  ;;  %1452 = vmatprep.subr.bf16.mxu1 %v5040_v52  ;;  %6639 = vst [vmem:[#allocation67_spill] sm:$0xff] %v5049_v23  ;;  %6640 = vst [vmem:[#allocation68_spill] sm:$0xff] %v5052_v46  ;;  %v5055_v20 = vld [vmem:[#allocation7] ss:$16 sps:$4 sm:$0xff]   ;;  %v5058_v52 = vld [vmem:[#allocation7 + $0x8] ss:$16 sps:$4 sm:$0xff]  }
 0x2da   :  { %6641 = vst [vmem:[#allocation69_spill] sm:$0xff] %v5055_v20  ;;  %6642 = vst [vmem:[#allocation70_spill] sm:$0xff] %v5058_v52 }
 0x2dc   :  { %1412 = vmatpush1.bf16.msra.mxu0 %v5043_v31  ;;  %1453 = vmatpush1.bf16.msra.mxu1 %v5046_v11 }
 0x2dd   :  { %1413 = vmatprep.subr.bf16.mxu0 %v5049_v23  ;;  %1454 = vmatprep.subr.bf16.mxu1 %v5052_v46 }
 0x2e0   :  { %1414 = vmatpush1.bf16.msra.mxu0 %v5055_v20  ;;  %1455 = vmatpush1.bf16.msra.mxu1 %v5058_v52 }
 0x2e1   :  { %1510 = vmatprep.subr.bf16.mxu0 %v4570_v34  ;;  %1551 = vmatprep.subr.bf16.mxu1 %v4572_v35  ;;  %v6643_v34 = vld [vmem:[#allocation30_spill] sm:$0xff]  ;;  %v6644_v35 = vld [vmem:[#allocation31_spill] sm:$0xff] }
 0x2e3   :  { %1432 = vmatmul.mubr.bf16.vlgmr.msra.gmra.mxu0 %v4926_v14  ;;  %1473 = vmatmul.mubr.bf16.vlgmr.msra.gmra.mxu1 %v4926_v14 }
 0x2e4   :  { %1511 = vmatpush1.bf16.msra.mxu0 %v4574_v36  ;;  %1552 = vmatpush1.bf16.msra.mxu1 %v4576_v37  ;;  %v6645_v36 = vld [vmem:[#allocation32_spill] sm:$0xff]  ;;  %v6646_v37 = vld [vmem:[#allocation33_spill] sm:$0xff] }
 0x2e5   :  { %1512 = vmatprep.subr.bf16.mxu0 %v4582_v38  ;;  %1553 = vmatprep.subr.bf16.mxu1 %v4584_v39  ;;  %v6647_v38 = vld [vmem:[#allocation34_spill] sm:$0xff]  ;;  %v6648_v39 = vld [vmem:[#allocation35_spill] sm:$0xff] }
 0x2e6   :  { %1542 = vmatprep.mubr.bf16.mxu0 %v6548_v55  ;;  %1583 = vmatprep.mubr.bf16.mxu1 %v6548_v55 }
 0x2e8   :  { %1513 = vmatpush1.bf16.msra.mxu0 %v4586_v40  ;;  %1554 = vmatpush1.bf16.msra.mxu1 %v4588_v41  ;;  %v6649_v40 = vld [vmem:[#allocation36_spill] sm:$0xff]  ;;  %v6650_v41 = vld [vmem:[#allocation37_spill] sm:$0xff] }
 0x2e9   :  { %1514 = vmatprep.subr.bf16.mxu0 %v4594_v42  ;;  %1555 = vmatprep.subr.bf16.mxu1 %v6562_v1  ;;  %v6651_v42 = vld [vmem:[#allocation38_spill] sm:$0xff]  ;;  %v6652_v1 = vld [vmem:[#allocation39_spill] sm:$0xff] }
 0x2ec   :  { %1515 = vmatpush1.bf16.msra.mxu0 %v6563_v2  ;;  %1556 = vmatpush1.bf16.msra.mxu1 %v6564_v3  ;;  %v6653_v2 = vld [vmem:[#allocation40_spill] sm:$0xff]  ;;  %v6654_v3 = vld [vmem:[#allocation41_spill] sm:$0xff] }
 0x2ed   :  { %1516 = vmatprep.subr.bf16.mxu0 %v6565_v4  ;;  %1557 = vmatprep.subr.bf16.mxu1 %v6566_v5  ;;  %v6655_v4 = vld [vmem:[#allocation42_spill] sm:$0xff]  ;;  %v6656_v5 = vld [vmem:[#allocation43_spill] sm:$0xff] }
 0x2f0   :  { %1517 = vmatpush1.bf16.msra.mxu0 %v6567_v6  ;;  %1558 = vmatpush1.bf16.msra.mxu1 %v6568_v7  ;;  %v6657_v6 = vld [vmem:[#allocation44_spill] sm:$0xff] }
 0x2f1   :  { %1518 = vmatprep.subr.bf16.mxu0 %v6569_v8  ;;  %1559 = vmatprep.subr.bf16.mxu1 %v6570_v9 }
 0x2f4   :  { %1519 = vmatpush1.bf16.msra.mxu0 %v6571_v10  ;;  %1560 = vmatpush1.bf16.msra.mxu1 %v6643_v34 }
 0x2f5   :  { %1520 = vmatprep.subr.bf16.mxu0 %v6644_v35  ;;  %1561 = vmatprep.subr.bf16.mxu1 %v6645_v36 }
 0x2f8   :  { %1521 = vmatpush1.bf16.msra.mxu0 %v6646_v37  ;;  %1562 = vmatpush1.bf16.msra.mxu1 %v6647_v38  ;;  %v6658_v37 = vld [vmem:[#allocation20_spill] sm:$0xff] }
 0x2f9   :  { %1522 = vmatprep.subr.bf16.mxu0 %v6648_v39  ;;  %1563 = vmatprep.subr.bf16.mxu1 %v6649_v40  ;;  %v6659_v39 = vld [vmem:[#allocation21_spill] sm:$0xff] }
 0x2fc   :  { %1523 = vmatpush1.bf16.msra.mxu0 %v6650_v41  ;;  %1564 = vmatpush1.bf16.msra.mxu1 %v6651_v42 }
 0x2fd   :  { %1524 = vmatprep.subr.bf16.mxu0 %v6652_v1  ;;  %1565 = vmatprep.subr.bf16.mxu1 %v6653_v2  ;;  %v6660_v1 = vld [vmem:[#allocation22_spill] sm:$0xff] }
 0x300   :  { %1525 = vmatpush1.bf16.msra.mxu0 %v6654_v3  ;;  %1566 = vmatpush1.bf16.msra.mxu1 %v6655_v4  ;;  %v6661_v3 = vld [vmem:[#allocation23_spill] sm:$0xff] }
 0x301   :  { %1593 = vmatprep.subr.bf16.mxu0 %v6656_v5  ;;  %1634 = vmatprep.subr.bf16.mxu1 %v6657_v6 }
 0x363   :  { %v1228_v7 = vpop.f32.mrf.mxu0  ;;  %v1269_v8 = vpop.f32.mrf.mxu1 }
 0x364   :  { %v1229_v38 = vadd.f32 %v1228_v7, %v6658_v37  ;;  %v1270_v40 = vadd.f32 %v1269_v8, %v6659_v39 }
 0x365   :  { %v1230_v9 = vpop.f32.mrf.mxu0  ;;  %v1271_v10 = vpop.f32.mrf.mxu1 }
 0x366   :  { %v1231_v2 = vadd.f32 %v1230_v9, %v6660_v1  ;;  %v1272_v4 = vadd.f32 %v1271_v10, %v6661_v3 }
 0x367   :  { %v1232_v14 = vpop.f32.mrf.mxu0  ;;  %v1273_v34 = vpop.f32.mrf.mxu1 }
 0x369   :  { %v1233_v35 = vpop.f32.mrf.mxu0  ;;  %v1274_v36 = vpop.f32.mrf.mxu1 }
 0x383   :  { %v1311_v41 = vpop.f32.mrf.mxu0  ;;  %v1352_v42 = vpop.f32.mrf.mxu1 }
 0x384   :  { %v1359_v5 = vadd.f32 %v1311_v41, %v1229_v38  ;;  %v1361_v6 = vadd.f32 %v1352_v42, %v1270_v40  ;;  %v1389_v38 = vpop.permute.xlu1 %1388  ;;  %v6662_v40 = vld [vmem:[#allocation47_spill] sm:$0xff]  ;;  %v4379_v42 = vmov 3  }
 0x385   :  { %v1313_v52 = vpop.f32.mrf.mxu0  ;;  %v1354_v20 = vpop.f32.mrf.mxu1  ;;  %v1391_v41 = vmul.f32 %v1389_v38, %v6662_v40  ;;  %3616 = vset.pattern.permute.xlu1 %v4379_v42  ;;  %v1394_v42 = vmul.f32 %v1389_v38, %v6598_v18 }
 0x386   :  { %v3500_v46 = vmul.f32 -1.442695, %v1359_v5  ;;  %v1360_v23 = vadd.f32 %v1313_v52, %v1231_v2  ;;  %v5103_v14 = vadd.f32 %v1354_v20, %v1272_v4  ;;  %v6663_v52 = vld [vmem:[#allocation48_spill] sm:$0xff]  ;;  %v6664_v2 = vld [vmem:[#allocation49_spill] sm:$0xff]  ;;  %v6666_v4 = vld [vmem:[#allocation50_spill] sm:$0xff] }
 0x387   :  { %v1315_v34 = vpop.f32.mrf.mxu0  ;;  %v1356_v35 = vpop.f32.mrf.mxu1  ;;  %v1392_v20 = vmul.f32 %v1389_v38, %v6663_v52 }
 0x388   :  { %3814 = vpow2.f32 %v3500_v46  ;;  %v3501_v7 = vmul.f32 -1.442695, %v1360_v23  ;;  %v1395_v46 = vadd.f32 %v1391_v41, %v6664_v2  ;;  %v5108_v23 = vld [vmem:[#allocation2] sm:$0xff] }
 0x389   :  { %v1316_v36 = vpop.f32.mrf.mxu0  ;;  %v1357_v8 = vpop.f32.mrf.mxu1  ;;  %6665 = vst [vmem:[#allocation30_spill] sm:$0xff] %v5108_v23  ;;  %1704 = vperm.xlu1 %3616, %v5108_v23  }
 0x38a   :  { %3816 = vpow2.f32 %v3501_v7 }
 0x38b   :  { %3818 = vtanh.f32 %v1361_v6 }
 0x395   :  { %v3815_v39 = vpop.eup %3814 }
 0x396   :  { %v1366_v37 = vadd.f32 1.0, %v3815_v39  ;;  %v1396_v39 = vadd.f32 %v1392_v20, %v6666_v4 }
 0x397   :  { %v3817_v9 = vpop.eup %3816 }
 0x398   :  { %3820 = vrcp.f32 %v1366_v37  ;;  %v1372_v10 = vadd.f32 1.0, %v3817_v9  ;;  %v3819_v37 = vpop.eup %3818 }
 0x39a   :  { %3822 = vrcp.f32 %v1372_v10 }
 0x3a3   :  { %v1433_v5 = vpop.f32.mrf.mxu0  ;;  %v1474_v6 = vpop.f32.mrf.mxu1 }
 0x3a4   :  { %v1481_v34 = vadd.f32 %v1433_v5, %v1395_v46  ;;  %v1398_v46 = vadd.f32 %v1394_v42, %v4705_v58  ;;  %v1393_v5 = vmul.f32 %v1389_v38, %v6599_v24 }
 0x3a5   :  { %v3821_v35 = vpop.eup %3820  ;;  %v1435_v7 = vpop.f32.mrf.mxu0 }
 0x3a6   :  { %v1476_v36 = vpop.f32.mrf.mxu1  ;;  %v1383_v8 = vmul.f32 %v3821_v35, %v3819_v37  ;;  %v3503_v9 = vmul.f32 -1.442695, %v1481_v34  ;;  %v1482_v10 = vadd.f32 %v1435_v7, %v1396_v39  ;;  %v1397_v39 = vadd.f32 %v1393_v5, %v4713_v49  ;;  %v6693_v5 = vld [vmem:[#allocation68_spill] sm:$0xff] }
 0x3a7   :  { %v3823_v52 = vpop.eup %3822  ;;  %v1437_v41 = vpop.f32.mrf.mxu0  ;;  %v1484_v37 = vadd.f32 %v1476_v36, %v1398_v46 }
 0x3a8   :  { %v1478_v2 = vpop.f32.mrf.mxu1  ;;  %v1382_v40 = vmul.f32 %v3823_v52, %v4916_v22  ;;  %3824 = vpow2.f32 %v3503_v9  ;;  %v3504_v23 = vmul.f32 -1.442695, %v1482_v10  ;;  %v1483_v7 = vadd.f32 %v1474_v6, %v1397_v39  ;;  %v6695_v39 = vld [vmem:[#allocation70_spill] sm:$0xff] }
 0x3a9   :  { %v1438_v20 = vpop.f32.mrf.mxu0  ;;  %v3505_v34 = vmul.f32 -1.442695, %v1484_v37  ;;  %v3502_v6 = vmul.f32 -1.442695, %v5103_v14  ;;  %v6692_v14 = vld [vmem:[#allocation67_spill] sm:$0xff]  ;;  %v6694_v37 = vld [vmem:[#allocation69_spill] sm:$0xff] }
 0x3aa   :  { %v1479_v4 = vpop.f32.mrf.mxu1  ;;  %v5114_v3 = vadd.f32 %v1383_v8, %v1382_v40  ;;  %3826 = vpow2.f32 %v3504_v23 }
 0x3ab   :  { %3828 = vpow2.f32 %v3505_v34  ;;  %v5195_v34 = vld [vmem:[#allocation8 + $0xe4] ss:$16 sps:$4 sm:$0xff]  }
 0x3b5   :  { %v3825_v35 = vpop.eup %3824 }
 0x3b6   :  { %v1488_v2 = vadd.f32 1.0, %v3825_v35  ;;  %v5198_v35 = vld [vmem:[#allocation8 + $0xec] ss:$16 sps:$4 sm:$0xff]  }
 0x3b7   :  { %v3827_v41 = vpop.eup %3826  ;;  %6696 = vst [vmem:[#allocation31_spill] sm:$0xff] %v5198_v35 }
 0x3b8   :  { %3830 = vrcp.f32 %v1488_v2  ;;  %v1494_v22 = vadd.f32 1.0, %v3827_v41  ;;  %v3829_v40 = vpop.eup %3828  ;;  %v5206_v2 = vld [vmem:[#allocation8 + $0xe8] ss:$16 sps:$4 sm:$0xff]   ;;  %v5209_v41 = vld [vmem:[#allocation8 + $0xc4] ss:$16 sps:$4 sm:$0xff]  }
 0x3b9   :  { %3832 = vtanh.f32 %v1483_v7  ;;  %v1501_v8 = vadd.f32 1.0, %v3829_v40  ;;  %v5203_v7 = vld [vmem:[#allocation8 + $0xe0] ss:$16 sps:$4 sm:$0xff]   ;;  %6698 = vst [vmem:[#allocation33_spill] sm:$0xff] %v5206_v2  ;;  %6699 = vst [vmem:[#allocation34_spill] sm:$0xff] %v5209_v41 }
 0x3ba   :  { %3834 = vrcp.f32 %v1494_v22  ;;  %6697 = vst [vmem:[#allocation32_spill] sm:$0xff] %v5203_v7  ;;  %v5212_v22 = vld [vmem:[#allocation8 + $0xcc] ss:$16 sps:$4 sm:$0xff]   ;;  %v5217_v40 = vld [vmem:[#allocation8 + $0xc0] ss:$16 sps:$4 sm:$0xff]  }
 0x3bb   :  { %3836 = vrcp.f32 %v1501_v8  ;;  %6700 = vst [vmem:[#allocation35_spill] sm:$0xff] %v5212_v22  ;;  %6701 = vst [vmem:[#allocation36_spill] sm:$0xff] %v5217_v40  ;;  %v5229_v8 = vld [vmem:[#allocation8 + $0xa0] ss:$16 sps:$4 sm:$0xff]  }
 0x3bc   :  { %6705 = vst [vmem:[#allocation40_spill] sm:$0xff] %v5229_v8 }
 0x3c5   :  { %v3831_v52 = vpop.eup %3830 }
 0x3c6   :  { %v3833_v23 = vpop.eup %3832 }
 0x3c7   :  { %v3835_v4 = vpop.eup %3834  ;;  %v1505_v9 = vmul.f32 %v3833_v23, %v3831_v52  ;;  %v5220_v52 = vld [vmem:[#allocation8 + $0xc8] ss:$16 sps:$4 sm:$0xff]   ;;  %v5223_v23 = vld [vmem:[#allocation8 + $0xa4] ss:$16 sps:$4 sm:$0xff]  }
 0x3c8   :  { %v1504_v38 = vmul.f32 %v3835_v4, %v4922_v26  ;;  %v3837_v10 = vpop.eup %3836  ;;  %6702 = vst [vmem:[#allocation37_spill] sm:$0xff] %v5220_v52  ;;  %6703 = vst [vmem:[#allocation38_spill] sm:$0xff] %v5223_v23  ;;  %v5226_v4 = vld [vmem:[#allocation8 + $0xac] ss:$16 sps:$4 sm:$0xff]  }
 0x3c9   :  { %6704 = vst [vmem:[#allocation39_spill] sm:$0xff] %v5226_v4 }
 0x3ca   :  { %v5120_v36 = vadd.f32 %v1505_v9, %v1504_v38  ;;  %v5232_v9 = vld [vmem:[#allocation8 + $0xa8] ss:$16 sps:$4 sm:$0xff]   ;;  %v5235_v38 = vld [vmem:[#allocation8 + $0x84] ss:$16 sps:$4 sm:$0xff]  }
 0x3cb   :  { %6706 = vst [vmem:[#allocation41_spill] sm:$0xff] %v5232_v9  ;;  %6707 = vst [vmem:[#allocation42_spill] sm:$0xff] %v5235_v38 }
 0x3cc   :  { %3838 = vtanh.f32 %v5120_v36 }
 0x3cd   :  { %3840 = vpow2.f32 %v3502_v6  ;;  %v5238_v6 = vld [vmem:[#allocation8 + $0x8c] ss:$16 sps:$4 sm:$0xff]  }
 0x3ce   :  { %3842 = vtanh.f32 %v5114_v3  ;;  %6708 = vst [vmem:[#allocation43_spill] sm:$0xff] %v5238_v6 }
 0x3d9   :  { %v3839_v42 = vpop.eup %3838 }
 0x3da   :  { %v1508_v20 = vmul.f32 %v3839_v42, %v3837_v10  ;;  %v3841_v26 = vpop.eup %3840  ;;  %v5241_v10 = vld [vmem:[#allocation8 + $0x80] ss:$16 sps:$4 sm:$0xff]   ;;  %v5244_v42 = vld [vmem:[#allocation8 + $0x88] ss:$16 sps:$4 sm:$0xff]  }
 0x3db   :  { %6709 = vst [vmem:[#allocation44_spill] sm:$0xff] %v5241_v10  ;;  %6710 = vst [vmem:[#allocation22_spill] sm:$0xff] %v5244_v42 }
 0x3dc   :  { %v5124_v46 = vpack.c.bf16 %v1508_v20, %v1508_v20  ;;  %v5247_v20 = vld [vmem:[#allocation8 + $0x64] ss:$16 sps:$4 sm:$0xff]  }
 0x3de   :  { %1543 = vmatmul.mubr.bf16.vlgmr.msra.gmra.mxu0 %v5124_v46  ;;  %1584 = vmatmul.mubr.bf16.vlgmr.msra.gmra.mxu1 %v5124_v46 }
 0x3df   :  { %1594 = vmatpush1.bf16.msra.mxu0 %v4719_v60  ;;  %1635 = vmatpush1.bf16.msra.mxu1 %v4721_v59  ;;  %v1379_v60 = vadd.f32 1.0, %v3841_v26  ;;  %v3843_v59 = vpop.eup %3842  ;;  %v5253_v26 = vld [vmem:[#allocation8 + $0x60] ss:$16 sps:$4 sm:$0xff]  }
 0x3e0   :  { %1595 = vmatprep.subr.bf16.mxu0 %v4725_v27  ;;  %1636 = vmatprep.subr.bf16.mxu1 %v4727_v61 }
 0x3e1   :  { %1625 = vmatprep.mubr.bf16.mxu0 %v6548_v55  ;;  %1666 = vmatprep.mubr.bf16.mxu1 %v6548_v55  ;;  %3844 = vrcp.f32 %v1379_v60  ;;  %v5256_v60 = vld [vmem:[#allocation8 + $0x68] ss:$16 sps:$4 sm:$0xff]  }
 0x3e3   :  { %1596 = vmatpush1.bf16.msra.mxu0 %v4733_v53  ;;  %1637 = vmatpush1.bf16.msra.mxu1 %v4735_v45  ;;  %v6667_v45 = vld [vmem:[#allocation24_spill] sm:$0xff] }
 0x3e4   :  { %1597 = vmatprep.subr.bf16.mxu0 %v4739_v44  ;;  %1638 = vmatprep.subr.bf16.mxu1 %v6600_v13  ;;  %v6668_v44 = vld [vmem:[#allocation25_spill] sm:$0xff]  ;;  %6711 = vst [vmem:[#allocation24_spill] sm:$0xff] %v5247_v20 }
 0x3e5   :  { %v6678_v13 = vld [vmem:[#allocation53_spill] sm:$0xff] }
 0x3e7   :  { %1598 = vmatpush1.bf16.msra.mxu0 %v6601_v56  ;;  %1639 = vmatpush1.bf16.msra.mxu1 %v6602_v16  ;;  %v6679_v56 = vld [vmem:[#allocation54_spill] sm:$0xff]  ;;  %v6680_v16 = vld [vmem:[#allocation55_spill] sm:$0xff] }
 0x3e8   :  { %1599 = vmatprep.subr.bf16.mxu0 %v6603_v12  ;;  %1640 = vmatprep.subr.bf16.mxu1 %v6604_v21  ;;  %v6681_v12 = vld [vmem:[#allocation56_spill] sm:$0xff]  ;;  %v6682_v21 = vld [vmem:[#allocation57_spill] sm:$0xff] }
 0x3eb   :  { %1600 = vmatpush1.bf16.msra.mxu0 %v6605_v33  ;;  %1641 = vmatpush1.bf16.msra.mxu1 %v6606_v25  ;;  %v6683_v33 = vld [vmem:[#allocation58_spill] sm:$0xff]  ;;  %v6684_v25 = vld [vmem:[#allocation59_spill] sm:$0xff] }
 0x3ec   :  { %1601 = vmatprep.subr.bf16.mxu0 %v6607_v32  ;;  %1642 = vmatprep.subr.bf16.mxu1 %v6608_v62  ;;  %v6685_v32 = vld [vmem:[#allocation60_spill] sm:$0xff]  ;;  %v6686_v62 = vld [vmem:[#allocation61_spill] sm:$0xff] }
 0x3ee   :  { %v3845_v27 = vpop.eup %3844 }
 0x3ef   :  { %1602 = vmatpush1.bf16.msra.mxu0 %v6609_v28  ;;  %1643 = vmatpush1.bf16.msra.mxu1 %v6610_v29  ;;  %v1386_v61 = vmul.f32 %v3845_v27, %v3843_v59  ;;  %v6687_v28 = vld [vmem:[#allocation62_spill] sm:$0xff]  ;;  %v6688_v29 = vld [vmem:[#allocation63_spill] sm:$0xff] }
 0x3f0   :  { %1603 = vmatprep.subr.bf16.mxu0 %v6611_v30  ;;  %1644 = vmatprep.subr.bf16.mxu1 %v6612_v19  ;;  %v6689_v30 = vld [vmem:[#allocation64_spill] sm:$0xff]  ;;  %v6690_v19 = vld [vmem:[#allocation65_spill] sm:$0xff] }
 0x3f1   :  { %v1592_v53 = vpack.c.bf16 %v1386_v61, %v1386_v61  ;;  %v5259_v59 = vld [vmem:[#allocation8 + $0x44] ss:$16 sps:$4 sm:$0xff]   ;;  %v5262_v27 = vld [vmem:[#allocation8 + $0x4c] ss:$16 sps:$4 sm:$0xff]   ;;  %v5265_v61 = vld [vmem:[#allocation8 + $0x40] ss:$16 sps:$4 sm:$0xff]  }
 0x3f3   :  { %1604 = vmatpush1.bf16.msra.mxu0 %v6613_v17  ;;  %1645 = vmatpush1.bf16.msra.mxu1 %v4785_v0  ;;  %v6669_v0 = vld [vmem:[#allocation26_spill] sm:$0xff] }
 0x3f4   :  { %1605 = vmatprep.subr.bf16.mxu0 %v4789_v63  ;;  %1646 = vmatprep.subr.bf16.mxu1 %v4791_v50  ;;  %v6675_v63 = vld [vmem:[#allocation19_spill] sm:$0xff]  ;;  %v6691_v17 = vld [vmem:[#allocation66_spill] sm:$0xff]  ;;  %6713 = vst [vmem:[#allocation26_spill] sm:$0xff] %v5253_v26 }
 0x3f5   :  { %v6676_v50 = vld [vmem:[#allocation51_spill] sm:$0xff] }
 0x3f7   :  { %1606 = vmatpush1.bf16.msra.mxu0 %v4795_v47  ;;  %1647 = vmatpush1.bf16.msra.mxu1 %v4797_v43  ;;  %v6670_v43 = vld [vmem:[#allocation27_spill] sm:$0xff]  ;;  %v6677_v47 = vld [vmem:[#allocation52_spill] sm:$0xff] }
 0x3f8   :  { %1607 = vmatprep.subr.bf16.mxu0 %v4801_v51  ;;  %1648 = vmatprep.subr.bf16.mxu1 %v4803_v57  ;;  %v6671_v51 = vld [vmem:[#allocation28_spill] sm:$0xff]  ;;  %v6672_v57 = vld [vmem:[#allocation29_spill] sm:$0xff]  ;;  %6714 = vst [vmem:[#allocation27_spill] sm:$0xff] %v5256_v60 }
 0x3f9   :  { %6715 = vst [vmem:[#allocation28_spill] sm:$0xff] %v5259_v59  ;;  %6716 = vst [vmem:[#allocation29_spill] sm:$0xff] %v5262_v27 }
 0x3fb   :  { %1608 = vmatpush1.bf16.msra.mxu0 %v4807_v54  ;;  %1649 = vmatpush1.bf16.msra.mxu1 %v4809_v48  ;;  %v6673_v54 = vld [vmem:[#allocation45_spill] sm:$0xff]  ;;  %v6674_v48 = vld [vmem:[#allocation46_spill] sm:$0xff] }
 0x3fc   :  { %1715 = vmatprep.subr.bf16.mxu0 %v4963_v15  ;;  %1756 = vmatprep.subr.bf16.mxu1 %v6667_v45  ;;  %6717 = vst [vmem:[#allocation45_spill] sm:$0xff] %v5265_v61 }
 0x3fe   :  { %1626 = vmatmul.mubr.bf16.vlgmr.msra.gmra.mxu0 %v1592_v53  ;;  %1667 = vmatmul.mubr.bf16.vlgmr.msra.gmra.mxu1 %v1592_v53  ;;  %v5268_v53 = vld [vmem:[#allocation8 + $0x48] ss:$16 sps:$4 sm:$0xff]  }
 0x3ff   :  { %1716 = vmatpush1.bf16.msra.mxu0 %v6668_v44  ;;  %1757 = vmatpush1.bf16.msra.mxu1 %v6669_v0  ;;  %6718 = vst [vmem:[#allocation46_spill] sm:$0xff] %v5268_v53 }
 0x400   :  { %1717 = vmatprep.subr.bf16.mxu0 %v6670_v43  ;;  %1758 = vmatprep.subr.bf16.mxu1 %v6671_v51 }
 0x401   :  { %1747 = vmatprep.mubr.bf16.mxu0 %v6548_v55  ;;  %1788 = vmatprep.mubr.bf16.mxu1 %v6548_v55 }
 0x403   :  { %1718 = vmatpush1.bf16.msra.mxu0 %v6672_v57  ;;  %1759 = vmatpush1.bf16.msra.mxu1 %v6673_v54 }
 0x404   :  { %1719 = vmatprep.subr.bf16.mxu0 %v6674_v48  ;;  %1760 = vmatprep.subr.bf16.mxu1 %v6675_v63 }
 0x407   :  { %1720 = vmatpush1.bf16.msra.mxu0 %v6676_v50  ;;  %1761 = vmatpush1.bf16.msra.mxu1 %v6677_v47 }
 0x408   :  { %1721 = vmatprep.subr.bf16.mxu0 %v6678_v13  ;;  %1762 = vmatprep.subr.bf16.mxu1 %v6679_v56 }
 0x40b   :  { %1722 = vmatpush1.bf16.msra.mxu0 %v6680_v16  ;;  %1763 = vmatpush1.bf16.msra.mxu1 %v6681_v12 }
 0x40c   :  { %1723 = vmatprep.subr.bf16.mxu0 %v6682_v21  ;;  %1764 = vmatprep.subr.bf16.mxu1 %v6683_v33 }
 0x40f   :  { %1724 = vmatpush1.bf16.msra.mxu0 %v6684_v25  ;;  %1765 = vmatpush1.bf16.msra.mxu1 %v6685_v32 }
 0x410   :  { %1725 = vmatprep.subr.bf16.mxu0 %v6686_v62  ;;  %1766 = vmatprep.subr.bf16.mxu1 %v6687_v28 }
 0x413   :  { %1726 = vmatpush1.bf16.msra.mxu0 %v6688_v29  ;;  %1767 = vmatpush1.bf16.msra.mxu1 %v6689_v30 }
 0x414   :  { %1727 = vmatprep.subr.bf16.mxu0 %v6690_v19  ;;  %1768 = vmatprep.subr.bf16.mxu1 %v6691_v17 }
 0x417   :  { %1728 = vmatpush1.bf16.msra.mxu0 %v5043_v31  ;;  %1769 = vmatpush1.bf16.msra.mxu1 %v5046_v11 }
 0x418   :  { %1729 = vmatprep.subr.bf16.mxu0 %v6692_v14  ;;  %1770 = vmatprep.subr.bf16.mxu1 %v6693_v5 }
 0x41b   :  { %1730 = vmatpush1.bf16.msra.mxu0 %v6694_v37  ;;  %1771 = vmatpush1.bf16.msra.mxu1 %v6695_v39 }
 0x41c   :  { %1826 = vmatprep.subr.bf16.mxu0 %v5195_v34  ;;  %1867 = vmatprep.subr.bf16.mxu1 %v5198_v35 }
 0x41e   :  { %1748 = vmatmul.mubr.bf16.vlgmr.msra.gmra.mxu0 %v5124_v46  ;;  %1789 = vmatmul.mubr.bf16.vlgmr.msra.gmra.mxu1 %v5124_v46  ;;  %v5250_v46 = vld [vmem:[#allocation8 + $0x6c] ss:$16 sps:$4 sm:$0xff]  }
 0x41f   :  { %1827 = vmatpush1.bf16.msra.mxu0 %v5203_v7  ;;  %1868 = vmatpush1.bf16.msra.mxu1 %v5206_v2  ;;  %6712 = vst [vmem:[#allocation25_spill] sm:$0xff] %v5250_v46 }
 0x420   :  { %1828 = vmatprep.subr.bf16.mxu0 %v5209_v41  ;;  %1869 = vmatprep.subr.bf16.mxu1 %v5212_v22 }
 0x421   :  { %1858 = vmatprep.mubr.bf16.mxu0 %v6548_v55  ;;  %1899 = vmatprep.mubr.bf16.mxu1 %v6548_v55 }
 0x423   :  { %1829 = vmatpush1.bf16.msra.mxu0 %v5217_v40  ;;  %1870 = vmatpush1.bf16.msra.mxu1 %v5220_v52  ;;  %v6731_v52 = vld [vmem:[#allocation23_spill] sm:$0xff] }
 0x424   :  { %1830 = vmatprep.subr.bf16.mxu0 %v5223_v23  ;;  %1871 = vmatprep.subr.bf16.mxu1 %v5226_v4 }
 0x427   :  { %1831 = vmatpush1.bf16.msra.mxu0 %v5229_v8  ;;  %1872 = vmatpush1.bf16.msra.mxu1 %v5232_v9  ;;  %v6730_v8 = vld [vmem:[#allocation21_spill] sm:$0xff] }
 0x428   :  { %1832 = vmatprep.subr.bf16.mxu0 %v5235_v38  ;;  %1873 = vmatprep.subr.bf16.mxu1 %v5238_v6  ;;  %v6729_v38 = vld [vmem:[#allocation20_spill] sm:$0xff] }
 0x42b   :  { %1833 = vmatpush1.bf16.msra.mxu0 %v5241_v10  ;;  %1874 = vmatpush1.bf16.msra.mxu1 %v5244_v42 }
 0x42c   :  { %1834 = vmatprep.subr.bf16.mxu0 %v5247_v20  ;;  %1875 = vmatprep.subr.bf16.mxu1 %v5250_v46 }
 0x42f   :  { %1835 = vmatpush1.bf16.msra.mxu0 %v5253_v26  ;;  %1876 = vmatpush1.bf16.msra.mxu1 %v5256_v60  ;;  %v5271_v26 = vld [vmem:[#allocation8 + $0x24] ss:$16 sps:$4 sm:$0xff]   ;;  %v5274_v60 = vld [vmem:[#allocation8 + $0x2c] ss:$16 sps:$4 sm:$0xff]  }
 0x430   :  { %1836 = vmatprep.subr.bf16.mxu0 %v5259_v59  ;;  %1877 = vmatprep.subr.bf16.mxu1 %v5262_v27  ;;  %6719 = vst [vmem:[#allocation19_spill] sm:$0xff] %v5271_v26  ;;  %6720 = vst [vmem:[#allocation51_spill] sm:$0xff] %v5274_v60  ;;  %v5277_v59 = vld [vmem:[#allocation8 + $0x20] ss:$16 sps:$4 sm:$0xff]   ;;  %v5280_v27 = vld [vmem:[#allocation8 + $0x28] ss:$16 sps:$4 sm:$0xff]  }
 0x431   :  { %6721 = vst [vmem:[#allocation52_spill] sm:$0xff] %v5277_v59  ;;  %6722 = vst [vmem:[#allocation53_spill] sm:$0xff] %v5280_v27 }
 0x433   :  { %1837 = vmatpush1.bf16.msra.mxu0 %v5265_v61  ;;  %1878 = vmatpush1.bf16.msra.mxu1 %v5268_v53  ;;  %v5283_v61 = vld [vmem:[#allocation8 + $0x4] ss:$16 sps:$4 sm:$0xff]   ;;  %v5286_v53 = vld [vmem:[#allocation8 + $0xc] ss:$16 sps:$4 sm:$0xff]  }
 0x434   :  { %1838 = vmatprep.subr.bf16.mxu0 %v5271_v26  ;;  %1879 = vmatprep.subr.bf16.mxu1 %v5274_v60  ;;  %6723 = vst [vmem:[#allocation54_spill] sm:$0xff] %v5283_v61  ;;  %6724 = vst [vmem:[#allocation55_spill] sm:$0xff] %v5286_v53  ;;  %v5289_v26 = vld [vmem:[#allocation8] ss:$16 sps:$4 sm:$0xff]   ;;  %v5292_v60 = vld [vmem:[#allocation8 + $0x8] ss:$16 sps:$4 sm:$0xff]  }
 0x435   :  { %6725 = vst [vmem:[#allocation56_spill] sm:$0xff] %v5289_v26  ;;  %6726 = vst [vmem:[#allocation57_spill] sm:$0xff] %v5292_v60 }
 0x437   :  { %1839 = vmatpush1.bf16.msra.mxu0 %v5277_v59  ;;  %1880 = vmatpush1.bf16.msra.mxu1 %v5280_v27  ;;  %v5295_v59 = vld [vmem:[#allocation10 + $0xe4] ss:$16 sps:$4 sm:$0xff]   ;;  %v5298_v27 = vld [vmem:[#allocation10 + $0xec] ss:$16 sps:$4 sm:$0xff]  }
 0x438   :  { %1840 = vmatprep.subr.bf16.mxu0 %v5283_v61  ;;  %1881 = vmatprep.subr.bf16.mxu1 %v5286_v53  ;;  %6727 = vst [vmem:[#allocation58_spill] sm:$0xff] %v5295_v59  ;;  %6728 = vst [vmem:[#allocation59_spill] sm:$0xff] %v5298_v27 }
 0x43b   :  { %1841 = vmatpush1.bf16.msra.mxu0 %v5289_v26  ;;  %1882 = vmatpush1.bf16.msra.mxu1 %v5292_v60 }
 0x43c   :  { %1909 = vmatprep.subr.bf16.mxu0 %v5295_v59  ;;  %1950 = vmatprep.subr.bf16.mxu1 %v5298_v27 }
 0x49e   :  { %v1544_v61 = vpop.f32.mrf.mxu0  ;;  %v1585_v46 = vpop.f32.mrf.mxu1 }
 0x49f   :  { %v1545_v9 = vadd.f32 %v1544_v61, %v6729_v38  ;;  %v1586_v60 = vadd.f32 %v1585_v46, %v6730_v8 }
 0x4a0   :  { %v1546_v20 = vpop.f32.mrf.mxu0  ;;  %v1587_v53 = vpop.f32.mrf.mxu1 }
 0x4a1   :  { %v1547_v59 = vadd.f32 %v1546_v20, %v6660_v1  ;;  %v1588_v40 = vadd.f32 %v1587_v53, %v6731_v52 }
 0x4a2   :  { %v1548_v42 = vpop.f32.mrf.mxu0  ;;  %v1589_v10 = vpop.f32.mrf.mxu1 }
 0x4a4   :  { %v1549_v6 = vpop.f32.mrf.mxu0  ;;  %v1590_v26 = vpop.f32.mrf.mxu1 }
 0x4be   :  { %v1627_v4 = vpop.f32.mrf.mxu0  ;;  %v1668_v23 = vpop.f32.mrf.mxu1 }
 0x4bf   :  { %v1675_v22 = vadd.f32 %v1627_v4, %v1545_v9  ;;  %v1677_v27 = vadd.f32 %v1668_v23, %v1586_v60  ;;  %v1705_v23 = vpop.permute.xlu1 %1704  ;;  %v6732_v9 = vld [vmem:[#allocation47_spill] sm:$0xff]  ;;  %v6734_v60 = vld [vmem:[#allocation49_spill] sm:$0xff] }
 0x4c0   :  { %v1629_v41 = vpop.f32.mrf.mxu0  ;;  %v1670_v2 = vpop.f32.mrf.mxu1 }
 0x4c1   :  { %v3506_v7 = vmul.f32 -1.442695, %v1675_v22  ;;  %v1676_v35 = vadd.f32 %v1629_v41, %v1547_v59  ;;  %v5305_v42 = vadd.f32 %v1670_v2, %v1588_v40  ;;  %v1707_v22 = vmul.f32 %v1705_v23, %v6732_v9  ;;  %v6733_v41 = vld [vmem:[#allocation48_spill] sm:$0xff]  ;;  %v6736_v59 = vld [vmem:[#allocation50_spill] sm:$0xff] }
 0x4c2   :  { %v1631_v6 = vpop.f32.mrf.mxu0  ;;  %v1672_v10 = vpop.f32.mrf.mxu1  ;;  %v1708_v2 = vmul.f32 %v1705_v23, %v6733_v41  ;;  %v4380_v40 = vmov 4   ;;  %v1710_v41 = vmul.f32 %v1705_v23, %v6598_v18 }
 0x4c3   :  { %3846 = vpow2.f32 %v3506_v7  ;;  %v3507_v26 = vmul.f32 -1.442695, %v1676_v35  ;;  %3617 = vset.pattern.permute.xlu1 %v4380_v40  ;;  %v1711_v7 = vadd.f32 %v1707_v22, %v6734_v60  ;;  %v6735_v35 = vld [vmem:[#allocation30_spill] sm:$0xff] }
 0x4c4   :  { %v1632_v61 = vpop.f32.mrf.mxu0  ;;  %v1673_v46 = vpop.f32.mrf.mxu1  ;;  %2020 = vperm.xlu1 %3617, %v6735_v35   ;;  %v1712_v53 = vadd.f32 %v1708_v2, %v6736_v59 }
 0x4c5   :  { %3848 = vpow2.f32 %v3507_v26 }
 0x4c6   :  { %3850 = vtanh.f32 %v1677_v27 }
 0x4d0   :  { %v3847_v8 = vpop.eup %3846 }
 0x4d1   :  { %v1682_v38 = vadd.f32 1.0, %v3847_v8 }
 0x4d2   :  { %v3849_v20 = vpop.eup %3848 }
 0x4d3   :  { %3852 = vrcp.f32 %v1682_v38  ;;  %v1688_v4 = vadd.f32 1.0, %v3849_v20  ;;  %v3851_v10 = vpop.eup %3850 }
 0x4d5   :  { %3854 = vrcp.f32 %v1688_v4 }
 0x4de   :  { %v1749_v6 = vpop.f32.mrf.mxu0  ;;  %v1790_v8 = vpop.f32.mrf.mxu1 }
 0x4df   :  { %v1797_v27 = vadd.f32 %v1749_v6, %v1711_v7  ;;  %v1714_v7 = vadd.f32 %v1710_v41, %v4705_v58  ;;  %v1709_v6 = vmul.f32 %v1705_v23, %v6599_v24 }
 0x4e0   :  { %v3853_v38 = vpop.eup %3852  ;;  %v1751_v26 = vpop.f32.mrf.mxu0 }
 0x4e1   :  { %v1792_v61 = vpop.f32.mrf.mxu1  ;;  %v1699_v46 = vmul.f32 %v3853_v38, %v3851_v10  ;;  %v3509_v20 = vmul.f32 -1.442695, %v1797_v27  ;;  %v1798_v4 = vadd.f32 %v1751_v26, %v1712_v53  ;;  %v1713_v53 = vadd.f32 %v1709_v6, %v4713_v49  ;;  %v5328_v6 = vld [vmem:[#allocation10 + $0xe0] ss:$16 sps:$4 sm:$0xff]  }
 0x4e2   :  { %v3855_v9 = vpop.eup %3854  ;;  %v1753_v40 = vpop.f32.mrf.mxu0  ;;  %v1800_v10 = vadd.f32 %v1792_v61, %v1714_v7 }
 0x4e3   :  { %v1794_v52 = vpop.f32.mrf.mxu1  ;;  %v1698_v22 = vmul.f32 %v3855_v9, %v5114_v3  ;;  %3856 = vpow2.f32 %v3509_v20  ;;  %v3510_v35 = vmul.f32 -1.442695, %v1798_v4  ;;  %v1799_v26 = vadd.f32 %v1790_v8, %v1713_v53 }
 0x4e4   :  { %v1754_v2 = vpop.f32.mrf.mxu0  ;;  %v3511_v27 = vmul.f32 -1.442695, %v1800_v10  ;;  %v3508_v8 = vmul.f32 -1.442695, %v5305_v42  ;;  %v5334_v10 = vld [vmem:[#allocation10 + $0xc4] ss:$16 sps:$4 sm:$0xff]  }
 0x4e5   :  { %v1795_v59 = vpop.f32.mrf.mxu1  ;;  %v5314_v60 = vadd.f32 %v1699_v46, %v1698_v22  ;;  %3858 = vpow2.f32 %v3510_v35  ;;  %v5337_v42 = vld [vmem:[#allocation10 + $0xcc] ss:$16 sps:$4 sm:$0xff]  }
 0x4e6   :  { %3860 = vpow2.f32 %v3511_v27  ;;  %v5342_v27 = vld [vmem:[#allocation10 + $0xc0] ss:$16 sps:$4 sm:$0xff]  }
 0x4f0   :  { %v3857_v38 = vpop.eup %3856 }
 0x4f1   :  { %v1804_v52 = vadd.f32 1.0, %v3857_v38  ;;  %v5345_v38 = vld [vmem:[#allocation10 + $0xc8] ss:$16 sps:$4 sm:$0xff]  }
 0x4f2   :  { %v3859_v40 = vpop.eup %3858 }
 0x4f3   :  { %3862 = vrcp.f32 %v1804_v52  ;;  %v1810_v3 = vadd.f32 1.0, %v3859_v40  ;;  %v3861_v9 = vpop.eup %3860  ;;  %v5351_v52 = vld [vmem:[#allocation10 + $0xac] ss:$16 sps:$4 sm:$0xff]  }
 0x4f4   :  { %3864 = vtanh.f32 %v1799_v26  ;;  %v1817_v41 = vadd.f32 1.0, %v3861_v9  ;;  %v5348_v26 = vld [vmem:[#allocation10 + $0xa4] ss:$16 sps:$4 sm:$0xff]   ;;  %v5357_v9 = vld [vmem:[#allocation10 + $0xa8] ss:$16 sps:$4 sm:$0xff]  }
 0x4f5   :  { %3866 = vrcp.f32 %v1810_v3  ;;  %v5354_v3 = vld [vmem:[#allocation10 + $0xa0] ss:$16 sps:$4 sm:$0xff]  }
 0x4f6   :  { %3868 = vrcp.f32 %v1817_v41  ;;  %v5370_v41 = vld [vmem:[#allocation10 + $0x88] ss:$16 sps:$4 sm:$0xff]  }
 0x4f7   :  { %6737 = vst [vmem:[#allocation60_spill] sm:$0xff] %v5370_v41 }
 0x500   :  { %v3863_v59 = vpop.eup %3862 }
 0x501   :  { %v3865_v35 = vpop.eup %3864 }
 0x502   :  { %v3867_v46 = vpop.eup %3866  ;;  %v1821_v20 = vmul.f32 %v3865_v35, %v3863_v59  ;;  %v5360_v59 = vld [vmem:[#allocation10 + $0x84] ss:$16 sps:$4 sm:$0xff]   ;;  %v5363_v35 = vld [vmem:[#allocation10 + $0x8c] ss:$16 sps:$4 sm:$0xff]  }
 0x503   :  { %v1820_v23 = vmul.f32 %v3867_v46, %v5120_v36  ;;  %v3869_v4 = vpop.eup %3868  ;;  %v5331_v36 = vld [vmem:[#allocation10 + $0xe8] ss:$16 sps:$4 sm:$0xff]   ;;  %v5367_v46 = vld [vmem:[#allocation10 + $0x80] ss:$16 sps:$4 sm:$0xff]  }
 0x505   :  { %v5320_v61 = vadd.f32 %v1821_v20, %v1820_v23  ;;  %v5373_v20 = vld [vmem:[#allocation10 + $0x64] ss:$16 sps:$4 sm:$0xff]   ;;  %v5376_v23 = vld [vmem:[#allocation10 + $0x6c] ss:$16 sps:$4 sm:$0xff]  }
 0x506   :  { %6738 = vst [vmem:[#allocation61_spill] sm:$0xff] %v5373_v20  ;;  %6739 = vst [vmem:[#allocation62_spill] sm:$0xff] %v5376_v23 }
 0x507   :  { %3870 = vtanh.f32 %v5320_v61 }
 0x508   :  { %3872 = vpow2.f32 %v3508_v8  ;;  %v5379_v8 = vld [vmem:[#allocation10 + $0x60] ss:$16 sps:$4 sm:$0xff]  }
 0x509   :  { %3874 = vtanh.f32 %v5314_v60  ;;  %6740 = vst [vmem:[#allocation63_spill] sm:$0xff] %v5379_v8 }
 0x514   :  { %v3871_v22 = vpop.eup %3870 }
 0x515   :  { %v1824_v2 = vmul.f32 %v3871_v22, %v3869_v4  ;;  %v3873_v53 = vpop.eup %3872  ;;  %v5382_v4 = vld [vmem:[#allocation10 + $0x68] ss:$16 sps:$4 sm:$0xff]   ;;  %v5385_v22 = vld [vmem:[#allocation10 + $0x44] ss:$16 sps:$4 sm:$0xff]  }
 0x516   :  { %v1695_v40 = vadd.f32 1.0, %v3873_v53  ;;  %6741 = vst [vmem:[#allocation64_spill] sm:$0xff] %v5382_v4  ;;  %6742 = vst [vmem:[#allocation65_spill] sm:$0xff] %v5385_v22  ;;  %v5391_v53 = vld [vmem:[#allocation10 + $0x40] ss:$16 sps:$4 sm:$0xff]  }
 0x517   :  { %v5324_v7 = vpack.c.bf16 %v1824_v2, %v1824_v2  ;;  %v5388_v2 = vld [vmem:[#allocation10 + $0x4c] ss:$16 sps:$4 sm:$0xff]   ;;  %6744 = vst [vmem:[#allocation67_spill] sm:$0xff] %v5391_v53 }
 0x518   :  { %3876 = vrcp.f32 %v1695_v40  ;;  %6743 = vst [vmem:[#allocation66_spill] sm:$0xff] %v5388_v2  ;;  %v5394_v40 = vld [vmem:[#allocation10 + $0x48] ss:$16 sps:$4 sm:$0xff]  }
 0x519   :  { %1859 = vmatmul.mubr.bf16.vlgmr.msra.gmra.mxu0 %v5324_v7  ;;  %1900 = vmatmul.mubr.bf16.vlgmr.msra.gmra.mxu1 %v5324_v7  ;;  %6745 = vst [vmem:[#allocation68_spill] sm:$0xff] %v5394_v40 }
 0x51a   :  { %1910 = vmatpush1.bf16.msra.mxu0 %v5328_v6  ;;  %1951 = vmatpush1.bf16.msra.mxu1 %v5331_v36 }
 0x51b   :  { %1911 = vmatprep.subr.bf16.mxu0 %v5334_v10  ;;  %1952 = vmatprep.subr.bf16.mxu1 %v5337_v42 }
 0x51c   :  { %1941 = vmatprep.mubr.bf16.mxu0 %v6548_v55  ;;  %1982 = vmatprep.mubr.bf16.mxu1 %v6548_v55 }
 0x51e   :  { %1912 = vmatpush1.bf16.msra.mxu0 %v5342_v27  ;;  %1953 = vmatpush1.bf16.msra.mxu1 %v5345_v38 }
 0x51f   :  { %1913 = vmatprep.subr.bf16.mxu0 %v5348_v26  ;;  %1954 = vmatprep.subr.bf16.mxu1 %v5351_v52 }
 0x522   :  { %1914 = vmatpush1.bf16.msra.mxu0 %v5354_v3  ;;  %1955 = vmatpush1.bf16.msra.mxu1 %v5357_v9 }
 0x523   :  { %1915 = vmatprep.subr.bf16.mxu0 %v5360_v59  ;;  %1956 = vmatprep.subr.bf16.mxu1 %v5363_v35 }
 0x526   :  { %1916 = vmatpush1.bf16.msra.mxu0 %v5367_v46  ;;  %1957 = vmatpush1.bf16.msra.mxu1 %v5370_v41  ;;  %v5418_v41 = vld [vmem:[#allocation10 + $0x8] ss:$16 sps:$4 sm:$0xff]  }
 0x527   :  { %1917 = vmatprep.subr.bf16.mxu0 %v5373_v20  ;;  %1958 = vmatprep.subr.bf16.mxu1 %v5376_v23  ;;  %v5403_v20 = vld [vmem:[#allocation10 + $0x20] ss:$16 sps:$4 sm:$0xff]  }
 0x528   :  { %6748 = vst [vmem:[#allocation71_spill] sm:$0xff] %v5403_v20 }
 0x52a   :  { %1918 = vmatpush1.bf16.msra.mxu0 %v5379_v8  ;;  %1959 = vmatpush1.bf16.msra.mxu1 %v5382_v4  ;;  %v5397_v8 = vld [vmem:[#allocation10 + $0x24] ss:$16 sps:$4 sm:$0xff]   ;;  %v5400_v4 = vld [vmem:[#allocation10 + $0x2c] ss:$16 sps:$4 sm:$0xff]  }
 0x52b   :  { %1919 = vmatprep.subr.bf16.mxu0 %v5385_v22  ;;  %1960 = vmatprep.subr.bf16.mxu1 %v5388_v2  ;;  %6746 = vst [vmem:[#allocation69_spill] sm:$0xff] %v5397_v8  ;;  %6747 = vst [vmem:[#allocation70_spill] sm:$0xff] %v5400_v4  ;;  %v3875_v22 = vpop.eup %3874  ;;  %v5406_v2 = vld [vmem:[#allocation10 + $0x28] ss:$16 sps:$4 sm:$0xff]  }
 0x52c   :  { %v3877_v23 = vpop.eup %3876 }
 0x52e   :  { %1920 = vmatpush1.bf16.msra.mxu0 %v5391_v53  ;;  %1961 = vmatpush1.bf16.msra.mxu1 %v5394_v40  ;;  %v5409_v53 = vld [vmem:[#allocation10 + $0x4] ss:$16 sps:$4 sm:$0xff]   ;;  %v5412_v40 = vld [vmem:[#allocation10 + $0xc] ss:$16 sps:$4 sm:$0xff]  }
 0x52f   :  { %1921 = vmatprep.subr.bf16.mxu0 %v5397_v8  ;;  %1962 = vmatprep.subr.bf16.mxu1 %v5400_v4  ;;  %v1702_v8 = vmul.f32 %v3877_v23, %v3875_v22  ;;  %v5415_v4 = vld [vmem:[#allocation10] ss:$16 sps:$4 sm:$0xff]  }
 0x532   :  { %1922 = vmatpush1.bf16.msra.mxu0 %v5403_v20  ;;  %1963 = vmatpush1.bf16.msra.mxu1 %v5406_v2  ;;  %v1908_v20 = vpack.c.bf16 %v1702_v8, %v1702_v8 }
 0x533   :  { %1923 = vmatprep.subr.bf16.mxu0 %v5409_v53  ;;  %1964 = vmatprep.subr.bf16.mxu1 %v5412_v40 }
 0x536   :  { %1924 = vmatpush1.bf16.msra.mxu0 %v5415_v4  ;;  %1965 = vmatpush1.bf16.msra.mxu1 %v5418_v41 }
 0x537   :  { %2031 = vmatprep.subr.bf16.mxu0 %v4963_v15  ;;  %2072 = vmatprep.subr.bf16.mxu1 %v6667_v45  ;;  %v6749_v15 = vld [vmem:[#allocation31_spill] sm:$0xff]  ;;  %v6750_v45 = vld [vmem:[#allocation32_spill] sm:$0xff] }
 0x539   :  { %1942 = vmatmul.mubr.bf16.vlgmr.msra.gmra.mxu0 %v1908_v20  ;;  %1983 = vmatmul.mubr.bf16.vlgmr.msra.gmra.mxu1 %v1908_v20 }
 0x53a   :  { %2032 = vmatpush1.bf16.msra.mxu0 %v6668_v44  ;;  %2073 = vmatpush1.bf16.msra.mxu1 %v6669_v0  ;;  %v6753_v44 = vld [vmem:[#allocation35_spill] sm:$0xff]  ;;  %v6754_v0 = vld [vmem:[#allocation36_spill] sm:$0xff] }
 0x53b   :  { %2033 = vmatprep.subr.bf16.mxu0 %v6670_v43  ;;  %2074 = vmatprep.subr.bf16.mxu1 %v6671_v51  ;;  %v6755_v43 = vld [vmem:[#allocation37_spill] sm:$0xff]  ;;  %v6756_v51 = vld [vmem:[#allocation38_spill] sm:$0xff] }
 0x53c   :  { %2063 = vmatprep.mubr.bf16.mxu0 %v6548_v55  ;;  %2104 = vmatprep.mubr.bf16.mxu1 %v6548_v55 }
 0x53e   :  { %2034 = vmatpush1.bf16.msra.mxu0 %v6672_v57  ;;  %2075 = vmatpush1.bf16.msra.mxu1 %v6673_v54  ;;  %v6757_v57 = vld [vmem:[#allocation39_spill] sm:$0xff]  ;;  %v6758_v54 = vld [vmem:[#allocation40_spill] sm:$0xff] }
 0x53f   :  { %2035 = vmatprep.subr.bf16.mxu0 %v6674_v48  ;;  %2076 = vmatprep.subr.bf16.mxu1 %v6675_v63  ;;  %v6759_v48 = vld [vmem:[#allocation41_spill] sm:$0xff]  ;;  %v6760_v63 = vld [vmem:[#allocation42_spill] sm:$0xff] }
 0x542   :  { %2036 = vmatpush1.bf16.msra.mxu0 %v6676_v50  ;;  %2077 = vmatpush1.bf16.msra.mxu1 %v6677_v47  ;;  %v6761_v50 = vld [vmem:[#allocation43_spill] sm:$0xff]  ;;  %v6762_v47 = vld [vmem:[#allocation44_spill] sm:$0xff] }
 0x543   :  { %2037 = vmatprep.subr.bf16.mxu0 %v6678_v13  ;;  %2078 = vmatprep.subr.bf16.mxu1 %v6679_v56  ;;  %v6763_v13 = vld [vmem:[#allocation22_spill] sm:$0xff]  ;;  %v6764_v56 = vld [vmem:[#allocation24_spill] sm:$0xff] }
 0x546   :  { %2038 = vmatpush1.bf16.msra.mxu0 %v6680_v16  ;;  %2079 = vmatpush1.bf16.msra.mxu1 %v6681_v12  ;;  %v6765_v16 = vld [vmem:[#allocation25_spill] sm:$0xff]  ;;  %v6766_v12 = vld [vmem:[#allocation26_spill] sm:$0xff] }
 0x547   :  { %2039 = vmatprep.subr.bf16.mxu0 %v6682_v21  ;;  %2080 = vmatprep.subr.bf16.mxu1 %v6683_v33  ;;  %v6767_v21 = vld [vmem:[#allocation27_spill] sm:$0xff]  ;;  %v6768_v33 = vld [vmem:[#allocation28_spill] sm:$0xff] }
 0x54a   :  { %2040 = vmatpush1.bf16.msra.mxu0 %v6684_v25  ;;  %2081 = vmatpush1.bf16.msra.mxu1 %v6685_v32  ;;  %v6769_v25 = vld [vmem:[#allocation29_spill] sm:$0xff] }
 0x54b   :  { %2041 = vmatprep.subr.bf16.mxu0 %v6686_v62  ;;  %2082 = vmatprep.subr.bf16.mxu1 %v6687_v28  ;;  %v6770_v32 = vld [vmem:[#allocation45_spill] sm:$0xff]  ;;  %v6771_v62 = vld [vmem:[#allocation46_spill] sm:$0xff]  ;;  %v6772_v28 = vld [vmem:[#allocation19_spill] sm:$0xff] }
 0x54e   :  { %2042 = vmatpush1.bf16.msra.mxu0 %v6688_v29  ;;  %2083 = vmatpush1.bf16.msra.mxu1 %v6689_v30  ;;  %v6773_v29 = vld [vmem:[#allocation51_spill] sm:$0xff]  ;;  %v6774_v30 = vld [vmem:[#allocation52_spill] sm:$0xff] }
 0x54f   :  { %2043 = vmatprep.subr.bf16.mxu0 %v6690_v19  ;;  %2084 = vmatprep.subr.bf16.mxu1 %v6691_v17  ;;  %v6775_v19 = vld [vmem:[#allocation53_spill] sm:$0xff]  ;;  %v6776_v17 = vld [vmem:[#allocation54_spill] sm:$0xff] }
 0x552   :  { %2044 = vmatpush1.bf16.msra.mxu0 %v5043_v31  ;;  %2085 = vmatpush1.bf16.msra.mxu1 %v5046_v11  ;;  %v6751_v31 = vld [vmem:[#allocation33_spill] sm:$0xff]  ;;  %v6752_v11 = vld [vmem:[#allocation34_spill] sm:$0xff] }
 0x553   :  { %2045 = vmatprep.subr.bf16.mxu0 %v6692_v14  ;;  %2086 = vmatprep.subr.bf16.mxu1 %v6693_v5  ;;  %v6777_v14 = vld [vmem:[#allocation55_spill] sm:$0xff]  ;;  %v6778_v5 = vld [vmem:[#allocation56_spill] sm:$0xff] }
 0x556   :  { %2046 = vmatpush1.bf16.msra.mxu0 %v6694_v37  ;;  %2087 = vmatpush1.bf16.msra.mxu1 %v6695_v39  ;;  %v6779_v37 = vld [vmem:[#allocation57_spill] sm:$0xff]  ;;  %v6780_v39 = vld [vmem:[#allocation58_spill] sm:$0xff] }
 0x557   :  { %2142 = vmatprep.subr.bf16.mxu0 %v5195_v34  ;;  %2183 = vmatprep.subr.bf16.mxu1 %v6749_v15 }
 0x559   :  { %2064 = vmatmul.mubr.bf16.vlgmr.msra.gmra.mxu0 %v5324_v7  ;;  %2105 = vmatmul.mubr.bf16.vlgmr.msra.gmra.mxu1 %v5324_v7  ;;  %v6781_v7 = vld [vmem:[#allocation59_spill] sm:$0xff] }
 0x55a   :  { %2143 = vmatpush1.bf16.msra.mxu0 %v6750_v45  ;;  %2184 = vmatpush1.bf16.msra.mxu1 %v6751_v31 }
 0x55b   :  { %2144 = vmatprep.subr.bf16.mxu0 %v6752_v11  ;;  %2185 = vmatprep.subr.bf16.mxu1 %v6753_v44 }
 0x55c   :  { %2174 = vmatprep.mubr.bf16.mxu0 %v6548_v55  ;;  %2215 = vmatprep.mubr.bf16.mxu1 %v6548_v55 }
 0x55e   :  { %2145 = vmatpush1.bf16.msra.mxu0 %v6754_v0  ;;  %2186 = vmatpush1.bf16.msra.mxu1 %v6755_v43 }
 0x55f   :  { %2146 = vmatprep.subr.bf16.mxu0 %v6756_v51  ;;  %2187 = vmatprep.subr.bf16.mxu1 %v6757_v57 }
 0x562   :  { %2147 = vmatpush1.bf16.msra.mxu0 %v6758_v54  ;;  %2188 = vmatpush1.bf16.msra.mxu1 %v6759_v48 }
 0x563   :  { %2148 = vmatprep.subr.bf16.mxu0 %v6760_v63  ;;  %2189 = vmatprep.subr.bf16.mxu1 %v6761_v50 }
 0x566   :  { %2149 = vmatpush1.bf16.msra.mxu0 %v6762_v47  ;;  %2190 = vmatpush1.bf16.msra.mxu1 %v6763_v13 }
 0x567   :  { %2150 = vmatprep.subr.bf16.mxu0 %v6764_v56  ;;  %2191 = vmatprep.subr.bf16.mxu1 %v6765_v16 }
 0x56a   :  { %2151 = vmatpush1.bf16.msra.mxu0 %v6766_v12  ;;  %2192 = vmatpush1.bf16.msra.mxu1 %v6767_v21 }
 0x56b   :  { %2152 = vmatprep.subr.bf16.mxu0 %v6768_v33  ;;  %2193 = vmatprep.subr.bf16.mxu1 %v6769_v25  ;;  %v6784_v33 = vld [vmem:[#allocation23_spill] sm:$0xff] }
 0x56e   :  { %2153 = vmatpush1.bf16.msra.mxu0 %v6770_v32  ;;  %2194 = vmatpush1.bf16.msra.mxu1 %v6771_v62  ;;  %v6782_v62 = vld [vmem:[#allocation20_spill] sm:$0xff]  ;;  %v6783_v32 = vld [vmem:[#allocation21_spill] sm:$0xff] }
 0x56f   :  { %2154 = vmatprep.subr.bf16.mxu0 %v6772_v28  ;;  %2195 = vmatprep.subr.bf16.mxu1 %v6773_v29 }
 0x572   :  { %2155 = vmatpush1.bf16.msra.mxu0 %v6774_v30  ;;  %2196 = vmatpush1.bf16.msra.mxu1 %v6775_v19 }
 0x573   :  { %2156 = vmatprep.subr.bf16.mxu0 %v6776_v17  ;;  %2197 = vmatprep.subr.bf16.mxu1 %v6777_v14 }
 0x576   :  { %2157 = vmatpush1.bf16.msra.mxu0 %v6778_v5  ;;  %2198 = vmatpush1.bf16.msra.mxu1 %v6779_v37 }
 0x577   :  { %2225 = vmatprep.subr.bf16.mxu0 %v6780_v39  ;;  %2266 = vmatprep.subr.bf16.mxu1 %v6781_v7 }
 0x5d9   :  { %v1860_v20 = vpop.f32.mrf.mxu0  ;;  %v1901_v23 = vpop.f32.mrf.mxu1 }
 0x5da   :  { %v1861_v17 = vadd.f32 %v1860_v20, %v6782_v62  ;;  %v1902_v14 = vadd.f32 %v1901_v23, %v6783_v32 }
 0x5db   :  { %v1862_v8 = vpop.f32.mrf.mxu0  ;;  %v1903_v22 = vpop.f32.mrf.mxu1 }
 0x5dc   :  { %v1863_v37 = vadd.f32 %v1862_v8, %v6660_v1  ;;  %v1904_v39 = vadd.f32 %v1903_v22, %v6784_v33 }
 0x5dd   :  { %v1864_v29 = vpop.f32.mrf.mxu0  ;;  %v1905_v30 = vpop.f32.mrf.mxu1 }
 0x5df   :  { %v1865_v28 = vpop.f32.mrf.mxu0  ;;  %v1906_v19 = vpop.f32.mrf.mxu1 }
 0x5f9   :  { %v1943_v25 = vpop.f32.mrf.mxu0  ;;  %v1984_v5 = vpop.f32.mrf.mxu1 }
 0x5fa   :  { %v1991_v21 = vadd.f32 %v1943_v25, %v1861_v17  ;;  %v1993_v7 = vadd.f32 %v1984_v5, %v1902_v14  ;;  %v2021_v17 = vpop.permute.xlu1 %2020  ;;  %v6785_v14 = vld [vmem:[#allocation47_spill] sm:$0xff]  ;;  %v4381_v5 = vmov 5  }
 0x5fb   :  { %v1945_v12 = vpop.f32.mrf.mxu0  ;;  %v1986_v16 = vpop.f32.mrf.mxu1  ;;  %3618 = vset.pattern.permute.xlu0 %v4381_v5 }
 0x5fc   :  { %v3512_v56 = vmul.f32 -1.442695, %v1991_v21  ;;  %v1992_v13 = vadd.f32 %v1945_v12, %v1863_v37  ;;  %v5497_v29 = vadd.f32 %v1986_v16, %v1904_v39  ;;  %v2023_v21 = vmul.f32 %v2021_v17, %v6785_v14  ;;  %v6786_v12 = vld [vmem:[#allocation48_spill] sm:$0xff]  ;;  %v6787_v37 = vld [vmem:[#allocation49_spill] sm:$0xff]  ;;  %v6789_v39 = vld [vmem:[#allocation50_spill] sm:$0xff] }
 0x5fd   :  { %v1947_v28 = vpop.f32.mrf.mxu0  ;;  %v1988_v30 = vpop.f32.mrf.mxu1  ;;  %v2024_v16 = vmul.f32 %v2021_v17, %v6786_v12  ;;  %v2026_v12 = vmul.f32 %v2021_v17, %v6598_v18 }
 0x5fe   :  { %3878 = vpow2.f32 %v3512_v56  ;;  %v3513_v19 = vmul.f32 -1.442695, %v1992_v13  ;;  %v2027_v56 = vadd.f32 %v2023_v21, %v6787_v37  ;;  %v6788_v13 = vld [vmem:[#allocation30_spill] sm:$0xff] }
 0x5ff   :  { %v1948_v20 = vpop.f32.mrf.mxu0  ;;  %v1989_v23 = vpop.f32.mrf.mxu1  ;;  %2336 = vperm.xlu0 %3618, %v6788_v13   ;;  %v2028_v22 = vadd.f32 %v2024_v16, %v6789_v39 }
 0x600   :  { %3880 = vpow2.f32 %v3513_v19 }
 0x601   :  { %3882 = vtanh.f32 %v1993_v7 }
 0x60b   :  { %v3879_v32 = vpop.eup %3878 }
 0x60c   :  { %v1998_v62 = vadd.f32 1.0, %v3879_v32 }
 0x60d   :  { %v3881_v8 = vpop.eup %3880 }
 0x60e   :  { %3884 = vrcp.f32 %v1998_v62  ;;  %v2004_v25 = vadd.f32 1.0, %v3881_v8  ;;  %v3883_v30 = vpop.eup %3882 }
 0x610   :  { %3886 = vrcp.f32 %v2004_v25 }
 0x619   :  { %v2065_v28 = vpop.f32.mrf.mxu0  ;;  %v2106_v32 = vpop.f32.mrf.mxu1 }
 0x61a   :  { %v2113_v7 = vadd.f32 %v2065_v28, %v2027_v56  ;;  %v2030_v56 = vadd.f32 %v2026_v12, %v4705_v58  ;;  %v2025_v28 = vmul.f32 %v2021_v17, %v6599_v24 }
 0x61b   :  { %v3885_v62 = vpop.eup %3884  ;;  %v2067_v19 = vpop.f32.mrf.mxu0 }
 0x61c   :  { %v2108_v20 = vpop.f32.mrf.mxu1  ;;  %v2015_v23 = vmul.f32 %v3885_v62, %v3883_v30  ;;  %v3515_v8 = vmul.f32 -1.442695, %v2113_v7  ;;  %v2114_v25 = vadd.f32 %v2067_v19, %v2028_v22  ;;  %v2029_v22 = vadd.f32 %v2025_v28, %v4713_v49  ;;  %v6790_v28 = vld [vmem:[#allocation60_spill] sm:$0xff] }
 0x61d   :  { %v3887_v14 = vpop.eup %3886  ;;  %v2069_v5 = vpop.f32.mrf.mxu0  ;;  %v2116_v30 = vadd.f32 %v2108_v20, %v2030_v56 }
 0x61e   :  { %v2110_v33 = vpop.f32.mrf.mxu1  ;;  %v2014_v21 = vmul.f32 %v3887_v14, %v5314_v60  ;;  %3888 = vpow2.f32 %v3515_v8  ;;  %v3516_v13 = vmul.f32 -1.442695, %v2114_v25  ;;  %v2115_v19 = vadd.f32 %v2106_v32, %v2029_v22  ;;  %v6792_v22 = vld [vmem:[#allocation62_spill] sm:$0xff] }
 0x61f   :  { %v2070_v16 = vpop.f32.mrf.mxu0  ;;  %v3517_v7 = vmul.f32 -1.442695, %v2116_v30  ;;  %v3514_v32 = vmul.f32 -1.442695, %v5497_v29  ;;  %v6791_v30 = vld [vmem:[#allocation61_spill] sm:$0xff] }
 0x620   :  { %v2111_v39 = vpop.f32.mrf.mxu1  ;;  %v5506_v37 = vadd.f32 %v2015_v23, %v2014_v21  ;;  %3890 = vpow2.f32 %v3516_v13 }
 0x621   :  { %3892 = vpow2.f32 %v3517_v7  ;;  %v6793_v7 = vld [vmem:[#allocation63_spill] sm:$0xff] }
 0x62b   :  { %v3889_v62 = vpop.eup %3888 }
 0x62c   :  { %v2120_v33 = vadd.f32 1.0, %v3889_v62  ;;  %v6794_v62 = vld [vmem:[#allocation64_spill] sm:$0xff] }
 0x62d   :  { %v3891_v5 = vpop.eup %3890 }
 0x62e   :  { %3894 = vrcp.f32 %v2120_v33  ;;  %v2126_v60 = vadd.f32 1.0, %v3891_v5  ;;  %v3893_v14 = vpop.eup %3892  ;;  %v6796_v33 = vld [vmem:[#allocation66_spill] sm:$0xff]  ;;  %v6797_v5 = vld [vmem:[#allocation67_spill] sm:$0xff] }
 0x62f   :  { %3896 = vtanh.f32 %v2115_v19  ;;  %v2133_v12 = vadd.f32 1.0, %v3893_v14  ;;  %v6795_v19 = vld [vmem:[#allocation65_spill] sm:$0xff] }
 0x630   :  { %3898 = vrcp.f32 %v2126_v60  ;;  %v6798_v60 = vld [vmem:[#allocation68_spill] sm:$0xff]  ;;  %v6799_v14 = vld [vmem:[#allocation69_spill] sm:$0xff] }
 0x631   :  { %3900 = vrcp.f32 %v2133_v12  ;;  %v6801_v12 = vld [vmem:[#allocation71_spill] sm:$0xff] }
 0x63b   :  { %v3895_v39 = vpop.eup %3894 }
 0x63c   :  { %v3897_v23 = vpop.eup %3896 }
 0x63d   :  { %v3899_v8 = vpop.eup %3898  ;;  %v2137_v25 = vmul.f32 %v3897_v23, %v3895_v39  ;;  %v6800_v39 = vld [vmem:[#allocation70_spill] sm:$0xff] }
 0x63e   :  { %v2136_v17 = vmul.f32 %v3899_v8, %v5320_v61  ;;  %v3901_v21 = vpop.eup %3900 }
 0x640   :  { %v5512_v20 = vadd.f32 %v2137_v25, %v2136_v17 }
 0x642   :  { %3902 = vtanh.f32 %v5512_v20 }
 0x643   :  { %3904 = vpow2.f32 %v3514_v32  ;;  %v5553_v32 = vld [vmem:[#allocation7 + $0xe4] ss:$16 sps:$4 sm:$0xff]  }
 0x644   :  { %3906 = vtanh.f32 %v5506_v37 }
 0x64f   :  { %v3903_v13 = vpop.eup %3902 }
 0x650   :  { %v2140_v16 = vmul.f32 %v3903_v13, %v3901_v21  ;;  %v3905_v61 = vpop.eup %3904  ;;  %v5556_v21 = vld [vmem:[#allocation7 + $0xec] ss:$16 sps:$4 sm:$0xff]   ;;  %v5559_v13 = vld [vmem:[#allocation7 + $0xe0] ss:$16 sps:$4 sm:$0xff]  }
 0x651   :  { %v2011_v29 = vadd.f32 1.0, %v3905_v61  ;;  %v3907_v23 = vpop.eup %3906  ;;  %v5565_v61 = vld [vmem:[#allocation7 + $0xc4] ss:$16 sps:$4 sm:$0xff]  }
 0x652   :  { %v5516_v56 = vpack.c.bf16 %v2140_v16, %v2140_v16  ;;  %v5562_v16 = vld [vmem:[#allocation7 + $0xe8] ss:$16 sps:$4 sm:$0xff]   ;;  %6803 = vst [vmem:[#allocation32_spill] sm:$0xff] %v5565_v61 }
 0x653   :  { %3908 = vrcp.f32 %v2011_v29  ;;  %6802 = vst [vmem:[#allocation31_spill] sm:$0xff] %v5562_v16  ;;  %v5568_v29 = vld [vmem:[#allocation7 + $0xcc] ss:$16 sps:$4 sm:$0xff]  }
 0x654   :  { %2175 = vmatmul.mubr.bf16.vlgmr.msra.gmra.mxu0 %v5516_v56  ;;  %2216 = vmatmul.mubr.bf16.vlgmr.msra.gmra.mxu1 %v5516_v56  ;;  %6804 = vst [vmem:[#allocation33_spill] sm:$0xff] %v5568_v29 }
 0x655   :  { %2226 = vmatpush1.bf16.msra.mxu0 %v5328_v6  ;;  %2267 = vmatpush1.bf16.msra.mxu1 %v5331_v36 }
 0x656   :  { %2227 = vmatprep.subr.bf16.mxu0 %v5334_v10  ;;  %2268 = vmatprep.subr.bf16.mxu1 %v5337_v42 }
 0x657   :  { %2257 = vmatprep.mubr.bf16.mxu0 %v6548_v55  ;;  %2298 = vmatprep.mubr.bf16.mxu1 %v6548_v55 }
 0x659   :  { %2228 = vmatpush1.bf16.msra.mxu0 %v5342_v27  ;;  %2269 = vmatpush1.bf16.msra.mxu1 %v5345_v38 }
 0x65a   :  { %2229 = vmatprep.subr.bf16.mxu0 %v5348_v26  ;;  %2270 = vmatprep.subr.bf16.mxu1 %v5351_v52 }
 0x65d   :  { %2230 = vmatpush1.bf16.msra.mxu0 %v5354_v3  ;;  %2271 = vmatpush1.bf16.msra.mxu1 %v5357_v9 }
 0x65e   :  { %2231 = vmatprep.subr.bf16.mxu0 %v5360_v59  ;;  %2272 = vmatprep.subr.bf16.mxu1 %v5363_v35 }
 0x660   :  { %v3909_v8 = vpop.eup %3908 }
 0x661   :  { %2232 = vmatpush1.bf16.msra.mxu0 %v5367_v46  ;;  %2273 = vmatpush1.bf16.msra.mxu1 %v6790_v28  ;;  %v2018_v25 = vmul.f32 %v3909_v8, %v3907_v23  ;;  %v5573_v23 = vld [vmem:[#allocation7 + $0xc0] ss:$16 sps:$4 sm:$0xff]   ;;  %v5576_v8 = vld [vmem:[#allocation7 + $0xc8] ss:$16 sps:$4 sm:$0xff]  }
 0x662   :  { %2233 = vmatprep.subr.bf16.mxu0 %v6791_v30  ;;  %2274 = vmatprep.subr.bf16.mxu1 %v6792_v22  ;;  %6805 = vst [vmem:[#allocation34_spill] sm:$0xff] %v5573_v23  ;;  %6806 = vst [vmem:[#allocation35_spill] sm:$0xff] %v5576_v8 }
 0x663   :  { %v2224_v17 = vpack.c.bf16 %v2018_v25, %v2018_v25  ;;  %v5579_v25 = vld [vmem:[#allocation7 + $0xa4] ss:$16 sps:$4 sm:$0xff]  }
 0x664   :  { %6807 = vst [vmem:[#allocation36_spill] sm:$0xff] %v5579_v25 }
 0x665   :  { %2234 = vmatpush1.bf16.msra.mxu0 %v6793_v7  ;;  %2275 = vmatpush1.bf16.msra.mxu1 %v6794_v62 }
 0x666   :  { %2235 = vmatprep.subr.bf16.mxu0 %v6795_v19  ;;  %2276 = vmatprep.subr.bf16.mxu1 %v6796_v33 }
 0x669   :  { %2236 = vmatpush1.bf16.msra.mxu0 %v6797_v5  ;;  %2277 = vmatpush1.bf16.msra.mxu1 %v6798_v60 }
 0x66a   :  { %2237 = vmatprep.subr.bf16.mxu0 %v6799_v14  ;;  %2278 = vmatprep.subr.bf16.mxu1 %v6800_v39 }
 0x66d   :  { %2238 = vmatpush1.bf16.msra.mxu0 %v6801_v12  ;;  %2279 = vmatpush1.bf16.msra.mxu1 %v5406_v2 }
 0x66e   :  { %2239 = vmatprep.subr.bf16.mxu0 %v5409_v53  ;;  %2280 = vmatprep.subr.bf16.mxu1 %v5412_v40 }
 0x671   :  { %2240 = vmatpush1.bf16.msra.mxu0 %v5415_v4  ;;  %2281 = vmatpush1.bf16.msra.mxu1 %v5418_v41 }
 0x672   :  { %2347 = vmatprep.subr.bf16.mxu0 %v5553_v32  ;;  %2388 = vmatprep.subr.bf16.mxu1 %v5556_v21 }
 0x674   :  { %2258 = vmatmul.mubr.bf16.vlgmr.msra.gmra.mxu0 %v2224_v17  ;;  %2299 = vmatmul.mubr.bf16.vlgmr.msra.gmra.mxu1 %v2224_v17  ;;  %v5582_v17 = vld [vmem:[#allocation7 + $0xac] ss:$16 sps:$4 sm:$0xff]  }
 0x675   :  { %2348 = vmatpush1.bf16.msra.mxu0 %v5559_v13  ;;  %2389 = vmatpush1.bf16.msra.mxu1 %v5562_v16  ;;  %6808 = vst [vmem:[#allocation37_spill] sm:$0xff] %v5582_v17 }
 0x676   :  { %2349 = vmatprep.subr.bf16.mxu0 %v5565_v61  ;;  %2390 = vmatprep.subr.bf16.mxu1 %v5568_v29  ;;  %v5585_v29 = vld [vmem:[#allocation7 + $0xa0] ss:$16 sps:$4 sm:$0xff]   ;;  %v5588_v61 = vld [vmem:[#allocation7 + $0xa8] ss:$16 sps:$4 sm:$0xff]  }
 0x677   :  { %2379 = vmatprep.mubr.bf16.mxu0 %v6548_v55  ;;  %2420 = vmatprep.mubr.bf16.mxu1 %v6548_v55  ;;  %6809 = vst [vmem:[#allocation38_spill] sm:$0xff] %v5585_v29  ;;  %6810 = vst [vmem:[#allocation39_spill] sm:$0xff] %v5588_v61 }
 0x679   :  { %2350 = vmatpush1.bf16.msra.mxu0 %v5573_v23  ;;  %2391 = vmatpush1.bf16.msra.mxu1 %v5576_v8  ;;  %v5591_v23 = vld [vmem:[#allocation7 + $0x84] ss:$16 sps:$4 sm:$0xff]   ;;  %v5594_v8 = vld [vmem:[#allocation7 + $0x8c] ss:$16 sps:$4 sm:$0xff]  }
 0x67a   :  { %2351 = vmatprep.subr.bf16.mxu0 %v5579_v25  ;;  %2392 = vmatprep.subr.bf16.mxu1 %v5582_v17  ;;  %6811 = vst [vmem:[#allocation40_spill] sm:$0xff] %v5591_v23  ;;  %6812 = vst [vmem:[#allocation41_spill] sm:$0xff] %v5594_v8  ;;  %v5597_v25 = vld [vmem:[#allocation7 + $0x80] ss:$16 sps:$4 sm:$0xff]   ;;  %v5600_v17 = vld [vmem:[#allocation7 + $0x88] ss:$16 sps:$4 sm:$0xff]  }
 0x67b   :  { %6813 = vst [vmem:[#allocation42_spill] sm:$0xff] %v5597_v25  ;;  %6814 = vst [vmem:[#allocation43_spill] sm:$0xff] %v5600_v17 }
 0x67d   :  { %2352 = vmatpush1.bf16.msra.mxu0 %v5585_v29  ;;  %2393 = vmatpush1.bf16.msra.mxu1 %v5588_v61  ;;  %v5603_v29 = vld [vmem:[#allocation7 + $0x64] ss:$16 sps:$4 sm:$0xff]   ;;  %v5606_v61 = vld [vmem:[#allocation7 + $0x6c] ss:$16 sps:$4 sm:$0xff]  }
 0x67e   :  { %2353 = vmatprep.subr.bf16.mxu0 %v5591_v23  ;;  %2394 = vmatprep.subr.bf16.mxu1 %v5594_v8  ;;  %6815 = vst [vmem:[#allocation44_spill] sm:$0xff] %v5603_v29  ;;  %6816 = vst [vmem:[#allocation30_spill] sm:$0xff] %v5606_v61  ;;  %v5609_v23 = vld [vmem:[#allocation7 + $0x60] ss:$16 sps:$4 sm:$0xff]   ;;  %v5612_v8 = vld [vmem:[#allocation7 + $0x68] ss:$16 sps:$4 sm:$0xff]  }
 0x67f   :  { %6817 = vst [vmem:[#allocation60_spill] sm:$0xff] %v5609_v23  ;;  %6818 = vst [vmem:[#allocation61_spill] sm:$0xff] %v5612_v8 }
 0x681   :  { %2354 = vmatpush1.bf16.msra.mxu0 %v5597_v25  ;;  %2395 = vmatpush1.bf16.msra.mxu1 %v5600_v17  ;;  %v5615_v25 = vld [vmem:[#allocation7 + $0x44] ss:$16 sps:$4 sm:$0xff]   ;;  %v5618_v17 = vld [vmem:[#allocation7 + $0x4c] ss:$16 sps:$4 sm:$0xff]  }
 0x682   :  { %2355 = vmatprep.subr.bf16.mxu0 %v5603_v29  ;;  %2396 = vmatprep.subr.bf16.mxu1 %v5606_v61  ;;  %6819 = vst [vmem:[#allocation62_spill] sm:$0xff] %v5615_v25  ;;  %6820 = vst [vmem:[#allocation63_spill] sm:$0xff] %v5618_v17  ;;  %v5621_v29 = vld [vmem:[#allocation7 + $0x40] ss:$16 sps:$4 sm:$0xff]   ;;  %v5624_v61 = vld [vmem:[#allocation7 + $0x48] ss:$16 sps:$4 sm:$0xff]  }
 0x683   :  { %6821 = vst [vmem:[#allocation64_spill] sm:$0xff] %v5621_v29  ;;  %6822 = vst [vmem:[#allocation65_spill] sm:$0xff] %v5624_v61 }
 0x685   :  { %2356 = vmatpush1.bf16.msra.mxu0 %v5609_v23  ;;  %2397 = vmatpush1.bf16.msra.mxu1 %v5612_v8  ;;  %v5627_v23 = vld [vmem:[#allocation7 + $0x24] ss:$16 sps:$4 sm:$0xff]   ;;  %v5630_v8 = vld [vmem:[#allocation7 + $0x2c] ss:$16 sps:$4 sm:$0xff]  }
 0x686   :  { %2357 = vmatprep.subr.bf16.mxu0 %v5615_v25  ;;  %2398 = vmatprep.subr.bf16.mxu1 %v5618_v17  ;;  %6823 = vst [vmem:[#allocation66_spill] sm:$0xff] %v5627_v23  ;;  %6824 = vst [vmem:[#allocation67_spill] sm:$0xff] %v5630_v8  ;;  %v5633_v25 = vld [vmem:[#allocation7 + $0x20] ss:$16 sps:$4 sm:$0xff]   ;;  %v5636_v17 = vld [vmem:[#allocation7 + $0x28] ss:$16 sps:$4 sm:$0xff]  }
 0x687   :  { %6825 = vst [vmem:[#allocation68_spill] sm:$0xff] %v5633_v25  ;;  %6826 = vst [vmem:[#allocation69_spill] sm:$0xff] %v5636_v17 }
 0x689   :  { %2358 = vmatpush1.bf16.msra.mxu0 %v5621_v29  ;;  %2399 = vmatpush1.bf16.msra.mxu1 %v5624_v61  ;;  %v5639_v29 = vld [vmem:[#allocation7 + $0x4] ss:$16 sps:$4 sm:$0xff]   ;;  %v5642_v61 = vld [vmem:[#allocation7 + $0xc] ss:$16 sps:$4 sm:$0xff]  }
 0x68a   :  { %2359 = vmatprep.subr.bf16.mxu0 %v5627_v23  ;;  %2400 = vmatprep.subr.bf16.mxu1 %v5630_v8  ;;  %6827 = vst [vmem:[#allocation70_spill] sm:$0xff] %v5639_v29  ;;  %6828 = vst [vmem:[#allocation71_spill] sm:$0xff] %v5642_v61  ;;  %v5645_v23 = vld [vmem:[#allocation7] ss:$16 sps:$4 sm:$0xff]   ;;  %v5648_v8 = vld [vmem:[#allocation7 + $0x8] ss:$16 sps:$4 sm:$0xff]  }
 0x68b   :  { %6829 = vst [vmem:[#allocation72_spill] sm:$0xff] %v5645_v23  ;;  %6830 = vst [vmem:[#allocation73_spill] sm:$0xff] %v5648_v8 }
 0x68d   :  { %2360 = vmatpush1.bf16.msra.mxu0 %v5633_v25  ;;  %2401 = vmatpush1.bf16.msra.mxu1 %v5636_v17 }
 0x68e   :  { %2361 = vmatprep.subr.bf16.mxu0 %v5639_v29  ;;  %2402 = vmatprep.subr.bf16.mxu1 %v5642_v61 }
 0x691   :  { %2362 = vmatpush1.bf16.msra.mxu0 %v5645_v23  ;;  %2403 = vmatpush1.bf16.msra.mxu1 %v5648_v8  ;;  %v6852_v23 = vld [vmem:[#allocation23_spill] sm:$0xff] }
 0x692   :  { %2458 = vmatprep.subr.bf16.mxu0 %v5195_v34  ;;  %2499 = vmatprep.subr.bf16.mxu1 %v6749_v15  ;;  %v6831_v34 = vld [vmem:[#allocation22_spill] sm:$0xff]  ;;  %v6832_v15 = vld [vmem:[#allocation24_spill] sm:$0xff] }
 0x694   :  { %2380 = vmatmul.mubr.bf16.vlgmr.msra.gmra.mxu0 %v5516_v56  ;;  %2421 = vmatmul.mubr.bf16.vlgmr.msra.gmra.mxu1 %v5516_v56  ;;  %v6846_v56 = vld [vmem:[#allocation56_spill] sm:$0xff] }
 0x695   :  { %2459 = vmatpush1.bf16.msra.mxu0 %v6750_v45  ;;  %2500 = vmatpush1.bf16.msra.mxu1 %v6751_v31  ;;  %v6833_v45 = vld [vmem:[#allocation25_spill] sm:$0xff]  ;;  %v6834_v31 = vld [vmem:[#allocation26_spill] sm:$0xff] }
 0x696   :  { %2460 = vmatprep.subr.bf16.mxu0 %v6752_v11  ;;  %2501 = vmatprep.subr.bf16.mxu1 %v6753_v44  ;;  %v6835_v11 = vld [vmem:[#allocation27_spill] sm:$0xff]  ;;  %v6836_v44 = vld [vmem:[#allocation28_spill] sm:$0xff] }
 0x697   :  { %2490 = vmatprep.mubr.bf16.mxu0 %v6548_v55  ;;  %2531 = vmatprep.mubr.bf16.mxu1 %v6548_v55 }
 0x699   :  { %2461 = vmatpush1.bf16.msra.mxu0 %v6754_v0  ;;  %2502 = vmatpush1.bf16.msra.mxu1 %v6755_v43  ;;  %v6837_v0 = vld [vmem:[#allocation29_spill] sm:$0xff] }
 0x69a   :  { %2462 = vmatprep.subr.bf16.mxu0 %v6756_v51  ;;  %2503 = vmatprep.subr.bf16.mxu1 %v6757_v57  ;;  %v6838_v43 = vld [vmem:[#allocation45_spill] sm:$0xff]  ;;  %v6839_v51 = vld [vmem:[#allocation46_spill] sm:$0xff]  ;;  %v6840_v57 = vld [vmem:[#allocation19_spill] sm:$0xff] }
 0x69d   :  { %2463 = vmatpush1.bf16.msra.mxu0 %v6758_v54  ;;  %2504 = vmatpush1.bf16.msra.mxu1 %v6759_v48  ;;  %v6841_v54 = vld [vmem:[#allocation51_spill] sm:$0xff]  ;;  %v6842_v48 = vld [vmem:[#allocation52_spill] sm:$0xff] }
 0x69e   :  { %2464 = vmatprep.subr.bf16.mxu0 %v6760_v63  ;;  %2505 = vmatprep.subr.bf16.mxu1 %v6761_v50  ;;  %v6843_v63 = vld [vmem:[#allocation53_spill] sm:$0xff]  ;;  %v6844_v50 = vld [vmem:[#allocation54_spill] sm:$0xff] }
 0x6a1   :  { %2465 = vmatpush1.bf16.msra.mxu0 %v6762_v47  ;;  %2506 = vmatpush1.bf16.msra.mxu1 %v6831_v34  ;;  %v6845_v47 = vld [vmem:[#allocation55_spill] sm:$0xff]  ;;  %v6847_v34 = vld [vmem:[#allocation57_spill] sm:$0xff] }
 0x6a2   :  { %2466 = vmatprep.subr.bf16.mxu0 %v6832_v15  ;;  %2507 = vmatprep.subr.bf16.mxu1 %v6833_v45  ;;  %v6848_v15 = vld [vmem:[#allocation58_spill] sm:$0xff]  ;;  %v6849_v45 = vld [vmem:[#allocation59_spill] sm:$0xff] }
 0x6a5   :  { %2467 = vmatpush1.bf16.msra.mxu0 %v6834_v31  ;;  %2508 = vmatpush1.bf16.msra.mxu1 %v6835_v11 }
 0x6a6   :  { %2468 = vmatprep.subr.bf16.mxu0 %v6836_v44  ;;  %2509 = vmatprep.subr.bf16.mxu1 %v6837_v0 }
 0x6a9   :  { %2469 = vmatpush1.bf16.msra.mxu0 %v6838_v43  ;;  %2510 = vmatpush1.bf16.msra.mxu1 %v6839_v51 }
 0x6aa   :  { %2470 = vmatprep.subr.bf16.mxu0 %v6840_v57  ;;  %2511 = vmatprep.subr.bf16.mxu1 %v6841_v54 }
 0x6ad   :  { %2471 = vmatpush1.bf16.msra.mxu0 %v6842_v48  ;;  %2512 = vmatpush1.bf16.msra.mxu1 %v6843_v63  ;;  %v6850_v48 = vld [vmem:[#allocation20_spill] sm:$0xff] }
 0x6ae   :  { %2472 = vmatprep.subr.bf16.mxu0 %v6844_v50  ;;  %2513 = vmatprep.subr.bf16.mxu1 %v6845_v47  ;;  %v6851_v50 = vld [vmem:[#allocation21_spill] sm:$0xff] }
 0x6b1   :  { %2473 = vmatpush1.bf16.msra.mxu0 %v6846_v56  ;;  %2514 = vmatpush1.bf16.msra.mxu1 %v6847_v34 }
 0x6b2   :  { %2541 = vmatprep.subr.bf16.mxu0 %v6848_v15  ;;  %2582 = vmatprep.subr.bf16.mxu1 %v6849_v45 }
 0x714   :  { %v2176_v31 = vpop.f32.mrf.mxu0  ;;  %v2217_v11 = vpop.f32.mrf.mxu1 }
 0x715   :  { %v2177_v63 = vadd.f32 %v2176_v31, %v6850_v48  ;;  %v2218_v47 = vadd.f32 %v2217_v11, %v6851_v50 }
 0x716   :  { %v2178_v44 = vpop.f32.mrf.mxu0  ;;  %v2219_v0 = vpop.f32.mrf.mxu1 }
 0x717   :  { %v2179_v34 = vadd.f32 %v2178_v44, %v6660_v1  ;;  %v2220_v15 = vadd.f32 %v2219_v0, %v6852_v23  ;;  %v2337_v0 = vpop.permute.xlu0 %2336 }
 0x718   :  { %v2180_v43 = vpop.f32.mrf.mxu0  ;;  %v2221_v51 = vpop.f32.mrf.mxu1 }
 0x71a   :  { %v2181_v57 = vpop.f32.mrf.mxu0  ;;  %v2222_v54 = vpop.f32.mrf.mxu1 }
 0x734   :  { %v2259_v8 = vpop.f32.mrf.mxu0  ;;  %v2300_v56 = vpop.f32.mrf.mxu1 }
 0x735   :  { %v2307_v61 = vadd.f32 %v2259_v8, %v2177_v63  ;;  %v2309_v45 = vadd.f32 %v2300_v56, %v2218_v47  ;;  %v6853_v63 = vld [vmem:[#allocation47_spill] sm:$0xff]  ;;  %v4382_v47 = vmov 6   ;;  %v6855_v56 = vld [vmem:[#allocation49_spill] sm:$0xff] }
 0x736   :  { %v2261_v29 = vpop.f32.mrf.mxu0  ;;  %v2302_v17 = vpop.f32.mrf.mxu1  ;;  %3619 = vset.pattern.permute.xlu1 %v4382_v47  ;;  %v2342_v47 = vmul.f32 %v2337_v0, %v6598_v18 }
 0x737   :  { %v3518_v25 = vmul.f32 -1.442695, %v2307_v61  ;;  %v2308_v16 = vadd.f32 %v2261_v29, %v2179_v34  ;;  %v5693_v43 = vadd.f32 %v2302_v17, %v2220_v15  ;;  %v2339_v61 = vmul.f32 %v2337_v0, %v6853_v63  ;;  %v6854_v29 = vld [vmem:[#allocation48_spill] sm:$0xff]  ;;  %v6857_v34 = vld [vmem:[#allocation50_spill] sm:$0xff] }
 0x738   :  { %v2263_v51 = vpop.f32.mrf.mxu0  ;;  %v2304_v57 = vpop.f32.mrf.mxu1  ;;  %v2340_v17 = vmul.f32 %v2337_v0, %v6854_v29 }
 0x739   :  { %3910 = vpow2.f32 %v3518_v25  ;;  %v3519_v31 = vmul.f32 -1.442695, %v2308_v16  ;;  %v2343_v25 = vadd.f32 %v2339_v61, %v6855_v56  ;;  %v5698_v16 = vld [vmem:[#allocation2] sm:$0xff] }
 0x73a   :  { %v2264_v54 = vpop.f32.mrf.mxu0  ;;  %v2305_v11 = vpop.f32.mrf.mxu1  ;;  %6856 = vst [vmem:[#allocation22_spill] sm:$0xff] %v5698_v16  ;;  %2652 = vperm.xlu1 %3619, %v5698_v16  }
 0x73b   :  { %3912 = vpow2.f32 %v3519_v31 }
 0x73c   :  { %3914 = vtanh.f32 %v2309_v45 }
 0x746   :  { %v3911_v50 = vpop.eup %3910 }
 0x747   :  { %v2314_v48 = vadd.f32 1.0, %v3911_v50  ;;  %v2344_v50 = vadd.f32 %v2340_v17, %v6857_v34 }
 0x748   :  { %v3913_v44 = vpop.eup %3912 }
 0x749   :  { %3916 = vrcp.f32 %v2314_v48  ;;  %v2320_v8 = vadd.f32 1.0, %v3913_v44  ;;  %v3915_v48 = vpop.eup %3914 }
 0x74b   :  { %3918 = vrcp.f32 %v2320_v8 }
 0x754   :  { %v2381_v15 = vpop.f32.mrf.mxu0  ;;  %v2422_v45 = vpop.f32.mrf.mxu1 }
 0x755   :  { %v2429_v51 = vadd.f32 %v2381_v15, %v2343_v25  ;;  %v2346_v25 = vadd.f32 %v2342_v47, %v4705_v58  ;;  %v2341_v15 = vmul.f32 %v2337_v0, %v6599_v24 }
 0x756   :  { %v3917_v57 = vpop.eup %3916  ;;  %v2383_v31 = vpop.f32.mrf.mxu0 }
 0x757   :  { %v2424_v54 = vpop.f32.mrf.mxu1  ;;  %v2331_v11 = vmul.f32 %v3917_v57, %v3915_v48  ;;  %v3521_v44 = vmul.f32 -1.442695, %v2429_v51  ;;  %v2430_v8 = vadd.f32 %v2383_v31, %v2344_v50  ;;  %v2345_v50 = vadd.f32 %v2341_v15, %v4713_v49  ;;  %v6884_v15 = vld [vmem:[#allocation71_spill] sm:$0xff] }
 0x758   :  { %v3919_v29 = vpop.eup %3918  ;;  %v2385_v61 = vpop.f32.mrf.mxu0  ;;  %v2432_v48 = vadd.f32 %v2424_v54, %v2346_v25 }
 0x759   :  { %v2426_v56 = vpop.f32.mrf.mxu1  ;;  %v2330_v63 = vmul.f32 %v3919_v29, %v5506_v37  ;;  %3920 = vpow2.f32 %v3521_v44  ;;  %v3522_v16 = vmul.f32 -1.442695, %v2430_v8  ;;  %v2431_v31 = vadd.f32 %v2422_v45, %v2345_v50  ;;  %v6886_v50 = vld [vmem:[#allocation73_spill] sm:$0xff] }
 0x75a   :  { %v2386_v17 = vpop.f32.mrf.mxu0  ;;  %v3523_v51 = vmul.f32 -1.442695, %v2432_v48  ;;  %v3520_v45 = vmul.f32 -1.442695, %v5693_v43  ;;  %v6883_v43 = vld [vmem:[#allocation70_spill] sm:$0xff]  ;;  %v6885_v48 = vld [vmem:[#allocation72_spill] sm:$0xff] }
 0x75b   :  { %v2427_v34 = vpop.f32.mrf.mxu1  ;;  %v5704_v23 = vadd.f32 %v2331_v11, %v2330_v63  ;;  %3922 = vpow2.f32 %v3522_v16 }
 0x75c   :  { %3924 = vpow2.f32 %v3523_v51  ;;  %v5785_v51 = vld [vmem:[#allocation8 + $0xe4] ss:$16 sps:$4 sm:$0xff]  }
 0x766   :  { %v3921_v57 = vpop.eup %3920 }
 0x767   :  { %v2436_v56 = vadd.f32 1.0, %v3921_v57  ;;  %v5788_v57 = vld [vmem:[#allocation8 + $0xec] ss:$16 sps:$4 sm:$0xff]  }
 0x768   :  { %v3923_v61 = vpop.eup %3922  ;;  %6887 = vst [vmem:[#allocation24_spill] sm:$0xff] %v5788_v57 }
 0x769   :  { %3926 = vrcp.f32 %v2436_v56  ;;  %v2442_v37 = vadd.f32 1.0, %v3923_v61  ;;  %v3925_v63 = vpop.eup %3924  ;;  %v5796_v56 = vld [vmem:[#allocation8 + $0xe8] ss:$16 sps:$4 sm:$0xff]   ;;  %v5799_v61 = vld [vmem:[#allocation8 + $0xc4] ss:$16 sps:$4 sm:$0xff]  }
 0x76a   :  { %3928 = vtanh.f32 %v2431_v31  ;;  %v2449_v11 = vadd.f32 1.0, %v3925_v63  ;;  %v5793_v31 = vld [vmem:[#allocation8 + $0xe0] ss:$16 sps:$4 sm:$0xff]   ;;  %6889 = vst [vmem:[#allocation26_spill] sm:$0xff] %v5796_v56  ;;  %6890 = vst [vmem:[#allocation27_spill] sm:$0xff] %v5799_v61 }
 0x76b   :  { %3930 = vrcp.f32 %v2442_v37  ;;  %6888 = vst [vmem:[#allocation25_spill] sm:$0xff] %v5793_v31  ;;  %v5802_v37 = vld [vmem:[#allocation8 + $0xcc] ss:$16 sps:$4 sm:$0xff]   ;;  %v5807_v63 = vld [vmem:[#allocation8 + $0xc0] ss:$16 sps:$4 sm:$0xff]  }
 0x76c   :  { %3932 = vrcp.f32 %v2449_v11  ;;  %6891 = vst [vmem:[#allocation28_spill] sm:$0xff] %v5802_v37  ;;  %6892 = vst [vmem:[#allocation29_spill] sm:$0xff] %v5807_v63  ;;  %v5819_v11 = vld [vmem:[#allocation8 + $0xa0] ss:$16 sps:$4 sm:$0xff]  }
 0x76d   :  { %6896 = vst [vmem:[#allocation51_spill] sm:$0xff] %v5819_v11 }
 0x776   :  { %v3927_v29 = vpop.eup %3926 }
 0x777   :  { %v3929_v16 = vpop.eup %3928 }
 0x778   :  { %v3931_v34 = vpop.eup %3930  ;;  %v2453_v44 = vmul.f32 %v3929_v16, %v3927_v29  ;;  %v5810_v29 = vld [vmem:[#allocation8 + $0xc8] ss:$16 sps:$4 sm:$0xff]   ;;  %v5813_v16 = vld [vmem:[#allocation8 + $0xa4] ss:$16 sps:$4 sm:$0xff]  }
 0x779   :  { %v2452_v0 = vmul.f32 %v3931_v34, %v5512_v20  ;;  %v3933_v8 = vpop.eup %3932  ;;  %6893 = vst [vmem:[#allocation45_spill] sm:$0xff] %v5810_v29  ;;  %6894 = vst [vmem:[#allocation46_spill] sm:$0xff] %v5813_v16  ;;  %v5816_v34 = vld [vmem:[#allocation8 + $0xac] ss:$16 sps:$4 sm:$0xff]  }
 0x77a   :  { %6895 = vst [vmem:[#allocation19_spill] sm:$0xff] %v5816_v34 }
 0x77b   :  { %v5710_v54 = vadd.f32 %v2453_v44, %v2452_v0  ;;  %v5822_v44 = vld [vmem:[#allocation8 + $0xa8] ss:$16 sps:$4 sm:$0xff]   ;;  %v5825_v0 = vld [vmem:[#allocation8 + $0x84] ss:$16 sps:$4 sm:$0xff]  }
 0x77c   :  { %6897 = vst [vmem:[#allocation52_spill] sm:$0xff] %v5822_v44  ;;  %6898 = vst [vmem:[#allocation53_spill] sm:$0xff] %v5825_v0 }
 0x77d   :  { %3934 = vtanh.f32 %v5710_v54 }
 0x77e   :  { %3936 = vpow2.f32 %v3520_v45  ;;  %v5828_v45 = vld [vmem:[#allocation8 + $0x8c] ss:$16 sps:$4 sm:$0xff]  }
 0x77f   :  { %3938 = vtanh.f32 %v5704_v23  ;;  %6899 = vst [vmem:[#allocation54_spill] sm:$0xff] %v5828_v45 }
 0x78a   :  { %v3935_v47 = vpop.eup %3934 }
 0x78b   :  { %v2456_v17 = vmul.f32 %v3935_v47, %v3933_v8  ;;  %v3937_v20 = vpop.eup %3936  ;;  %v5831_v8 = vld [vmem:[#allocation8 + $0x80] ss:$16 sps:$4 sm:$0xff]   ;;  %v5834_v47 = vld [vmem:[#allocation8 + $0x88] ss:$16 sps:$4 sm:$0xff]  }
 0x78c   :  { %6900 = vst [vmem:[#allocation55_spill] sm:$0xff] %v5831_v8  ;;  %6901 = vst [vmem:[#allocation56_spill] sm:$0xff] %v5834_v47 }
 0x78d   :  { %v5714_v25 = vpack.c.bf16 %v2456_v17, %v2456_v17  ;;  %v5837_v17 = vld [vmem:[#allocation8 + $0x64] ss:$16 sps:$4 sm:$0xff]  }
 0x78e   :  { %6902 = vst [vmem:[#allocation57_spill] sm:$0xff] %v5837_v17 }
 0x78f   :  { %2491 = vmatmul.mubr.bf16.vlgmr.msra.gmra.mxu0 %v5714_v25  ;;  %2532 = vmatmul.mubr.bf16.vlgmr.msra.gmra.mxu1 %v5714_v25 }
 0x790   :  { %2542 = vmatpush1.bf16.msra.mxu0 %v5328_v6  ;;  %2583 = vmatpush1.bf16.msra.mxu1 %v5331_v36  ;;  %v2327_v6 = vadd.f32 1.0, %v3937_v20  ;;  %v3939_v36 = vpop.eup %3938  ;;  %v5843_v20 = vld [vmem:[#allocation8 + $0x60] ss:$16 sps:$4 sm:$0xff]  }
 0x791   :  { %2543 = vmatprep.subr.bf16.mxu0 %v5334_v10  ;;  %2584 = vmatprep.subr.bf16.mxu1 %v5337_v42  ;;  %6904 = vst [vmem:[#allocation59_spill] sm:$0xff] %v5843_v20 }
 0x792   :  { %2573 = vmatprep.mubr.bf16.mxu0 %v6548_v55  ;;  %2614 = vmatprep.mubr.bf16.mxu1 %v6548_v55  ;;  %3940 = vrcp.f32 %v2327_v6  ;;  %v5846_v6 = vld [vmem:[#allocation8 + $0x68] ss:$16 sps:$4 sm:$0xff]  }
 0x794   :  { %2544 = vmatpush1.bf16.msra.mxu0 %v5342_v27  ;;  %2585 = vmatpush1.bf16.msra.mxu1 %v5345_v38  ;;  %v6858_v38 = vld [vmem:[#allocation31_spill] sm:$0xff] }
 0x795   :  { %2545 = vmatprep.subr.bf16.mxu0 %v5348_v26  ;;  %2586 = vmatprep.subr.bf16.mxu1 %v5351_v52  ;;  %v6859_v26 = vld [vmem:[#allocation32_spill] sm:$0xff]  ;;  %v6860_v52 = vld [vmem:[#allocation33_spill] sm:$0xff]  ;;  %6905 = vst [vmem:[#allocation31_spill] sm:$0xff] %v5846_v6 }
 0x798   :  { %2546 = vmatpush1.bf16.msra.mxu0 %v5354_v3  ;;  %2587 = vmatpush1.bf16.msra.mxu1 %v5357_v9  ;;  %v6861_v3 = vld [vmem:[#allocation34_spill] sm:$0xff]  ;;  %v6862_v9 = vld [vmem:[#allocation35_spill] sm:$0xff] }
 0x799   :  { %2547 = vmatprep.subr.bf16.mxu0 %v5360_v59  ;;  %2588 = vmatprep.subr.bf16.mxu1 %v5363_v35  ;;  %v6863_v59 = vld [vmem:[#allocation36_spill] sm:$0xff]  ;;  %v6864_v35 = vld [vmem:[#allocation37_spill] sm:$0xff] }
 0x79c   :  { %2548 = vmatpush1.bf16.msra.mxu0 %v5367_v46  ;;  %2589 = vmatpush1.bf16.msra.mxu1 %v6790_v28  ;;  %v6865_v46 = vld [vmem:[#allocation38_spill] sm:$0xff]  ;;  %v6871_v28 = vld [vmem:[#allocation44_spill] sm:$0xff] }
 0x79d   :  { %2549 = vmatprep.subr.bf16.mxu0 %v6791_v30  ;;  %2590 = vmatprep.subr.bf16.mxu1 %v6792_v22  ;;  %v6872_v30 = vld [vmem:[#allocation30_spill] sm:$0xff]  ;;  %v6873_v22 = vld [vmem:[#allocation60_spill] sm:$0xff] }
 0x79f   :  { %v3941_v10 = vpop.eup %3940 }
 0x7a0   :  { %2550 = vmatpush1.bf16.msra.mxu0 %v6793_v7  ;;  %2591 = vmatpush1.bf16.msra.mxu1 %v6794_v62  ;;  %v2334_v42 = vmul.f32 %v3941_v10, %v3939_v36  ;;  %v6874_v7 = vld [vmem:[#allocation61_spill] sm:$0xff]  ;;  %v6875_v62 = vld [vmem:[#allocation62_spill] sm:$0xff] }
 0x7a1   :  { %2551 = vmatprep.subr.bf16.mxu0 %v6795_v19  ;;  %2592 = vmatprep.subr.bf16.mxu1 %v6796_v33  ;;  %v6876_v19 = vld [vmem:[#allocation63_spill] sm:$0xff]  ;;  %v6877_v33 = vld [vmem:[#allocation64_spill] sm:$0xff] }
 0x7a2   :  { %v2540_v27 = vpack.c.bf16 %v2334_v42, %v2334_v42  ;;  %v5849_v36 = vld [vmem:[#allocation8 + $0x44] ss:$16 sps:$4 sm:$0xff]   ;;  %v5852_v10 = vld [vmem:[#allocation8 + $0x4c] ss:$16 sps:$4 sm:$0xff]   ;;  %v5855_v42 = vld [vmem:[#allocation8 + $0x40] ss:$16 sps:$4 sm:$0xff]  }
 0x7a3   :  { %6906 = vst [vmem:[#allocation32_spill] sm:$0xff] %v5849_v36  ;;  %6907 = vst [vmem:[#allocation33_spill] sm:$0xff] %v5852_v10 }
 0x7a4   :  { %2552 = vmatpush1.bf16.msra.mxu0 %v6797_v5  ;;  %2593 = vmatpush1.bf16.msra.mxu1 %v6798_v60  ;;  %v6878_v5 = vld [vmem:[#allocation65_spill] sm:$0xff]  ;;  %v6879_v60 = vld [vmem:[#allocation66_spill] sm:$0xff]  ;;  %6908 = vst [vmem:[#allocation34_spill] sm:$0xff] %v5855_v42 }
 0x7a5   :  { %2553 = vmatprep.subr.bf16.mxu0 %v6799_v14  ;;  %2594 = vmatprep.subr.bf16.mxu1 %v6800_v39  ;;  %v6880_v14 = vld [vmem:[#allocation67_spill] sm:$0xff]  ;;  %v6881_v39 = vld [vmem:[#allocation68_spill] sm:$0xff] }
 0x7a8   :  { %2554 = vmatpush1.bf16.msra.mxu0 %v6801_v12  ;;  %2595 = vmatpush1.bf16.msra.mxu1 %v5406_v2  ;;  %v6868_v2 = vld [vmem:[#allocation41_spill] sm:$0xff] }
 0x7a9   :  { %2555 = vmatprep.subr.bf16.mxu0 %v5409_v53  ;;  %2596 = vmatprep.subr.bf16.mxu1 %v5412_v40  ;;  %v6869_v53 = vld [vmem:[#allocation42_spill] sm:$0xff]  ;;  %v6870_v40 = vld [vmem:[#allocation43_spill] sm:$0xff]  ;;  %v6882_v12 = vld [vmem:[#allocation69_spill] sm:$0xff] }
 0x7ac   :  { %2556 = vmatpush1.bf16.msra.mxu0 %v5415_v4  ;;  %2597 = vmatpush1.bf16.msra.mxu1 %v5418_v41  ;;  %v6866_v41 = vld [vmem:[#allocation39_spill] sm:$0xff]  ;;  %v6867_v4 = vld [vmem:[#allocation40_spill] sm:$0xff] }
 0x7ad   :  { %2663 = vmatprep.subr.bf16.mxu0 %v5553_v32  ;;  %2704 = vmatprep.subr.bf16.mxu1 %v5556_v21 }
 0x7af   :  { %2574 = vmatmul.mubr.bf16.vlgmr.msra.gmra.mxu0 %v2540_v27  ;;  %2615 = vmatmul.mubr.bf16.vlgmr.msra.gmra.mxu1 %v2540_v27  ;;  %v5858_v27 = vld [vmem:[#allocation8 + $0x48] ss:$16 sps:$4 sm:$0xff]  }
 0x7b0   :  { %2664 = vmatpush1.bf16.msra.mxu0 %v5559_v13  ;;  %2705 = vmatpush1.bf16.msra.mxu1 %v6858_v38  ;;  %6909 = vst [vmem:[#allocation35_spill] sm:$0xff] %v5858_v27 }
 0x7b1   :  { %2665 = vmatprep.subr.bf16.mxu0 %v6859_v26  ;;  %2706 = vmatprep.subr.bf16.mxu1 %v6860_v52 }
 0x7b2   :  { %2695 = vmatprep.mubr.bf16.mxu0 %v6548_v55  ;;  %2736 = vmatprep.mubr.bf16.mxu1 %v6548_v55 }
 0x7b4   :  { %2666 = vmatpush1.bf16.msra.mxu0 %v6861_v3  ;;  %2707 = vmatpush1.bf16.msra.mxu1 %v6862_v9 }
 0x7b5   :  { %2667 = vmatprep.subr.bf16.mxu0 %v6863_v59  ;;  %2708 = vmatprep.subr.bf16.mxu1 %v6864_v35 }
 0x7b8   :  { %2668 = vmatpush1.bf16.msra.mxu0 %v6865_v46  ;;  %2709 = vmatpush1.bf16.msra.mxu1 %v6866_v41 }
 0x7b9   :  { %2669 = vmatprep.subr.bf16.mxu0 %v6867_v4  ;;  %2710 = vmatprep.subr.bf16.mxu1 %v6868_v2 }
 0x7bc   :  { %2670 = vmatpush1.bf16.msra.mxu0 %v6869_v53  ;;  %2711 = vmatpush1.bf16.msra.mxu1 %v6870_v40 }
 0x7bd   :  { %2671 = vmatprep.subr.bf16.mxu0 %v6871_v28  ;;  %2712 = vmatprep.subr.bf16.mxu1 %v6872_v30 }
 0x7c0   :  { %2672 = vmatpush1.bf16.msra.mxu0 %v6873_v22  ;;  %2713 = vmatpush1.bf16.msra.mxu1 %v6874_v7 }
 0x7c1   :  { %2673 = vmatprep.subr.bf16.mxu0 %v6875_v62  ;;  %2714 = vmatprep.subr.bf16.mxu1 %v6876_v19 }
 0x7c4   :  { %2674 = vmatpush1.bf16.msra.mxu0 %v6877_v33  ;;  %2715 = vmatpush1.bf16.msra.mxu1 %v6878_v5 }
 0x7c5   :  { %2675 = vmatprep.subr.bf16.mxu0 %v6879_v60  ;;  %2716 = vmatprep.subr.bf16.mxu1 %v6880_v14 }
 0x7c8   :  { %2676 = vmatpush1.bf16.msra.mxu0 %v6881_v39  ;;  %2717 = vmatpush1.bf16.msra.mxu1 %v6882_v12 }
 0x7c9   :  { %2677 = vmatprep.subr.bf16.mxu0 %v6883_v43  ;;  %2718 = vmatprep.subr.bf16.mxu1 %v6884_v15 }
 0x7cc   :  { %2678 = vmatpush1.bf16.msra.mxu0 %v6885_v48  ;;  %2719 = vmatpush1.bf16.msra.mxu1 %v6886_v50 }
 0x7cd   :  { %2774 = vmatprep.subr.bf16.mxu0 %v5785_v51  ;;  %2815 = vmatprep.subr.bf16.mxu1 %v5788_v57 }
 0x7cf   :  { %2696 = vmatmul.mubr.bf16.vlgmr.msra.gmra.mxu0 %v5714_v25  ;;  %2737 = vmatmul.mubr.bf16.vlgmr.msra.gmra.mxu1 %v5714_v25  ;;  %v5840_v25 = vld [vmem:[#allocation8 + $0x6c] ss:$16 sps:$4 sm:$0xff]  }
 0x7d0   :  { %2775 = vmatpush1.bf16.msra.mxu0 %v5793_v31  ;;  %2816 = vmatpush1.bf16.msra.mxu1 %v5796_v56  ;;  %6903 = vst [vmem:[#allocation58_spill] sm:$0xff] %v5840_v25 }
 0x7d1   :  { %2776 = vmatprep.subr.bf16.mxu0 %v5799_v61  ;;  %2817 = vmatprep.subr.bf16.mxu1 %v5802_v37 }
 0x7d2   :  { %2806 = vmatprep.mubr.bf16.mxu0 %v6548_v55  ;;  %2847 = vmatprep.mubr.bf16.mxu1 %v6548_v55 }
 0x7d4   :  { %2777 = vmatpush1.bf16.msra.mxu0 %v5807_v63  ;;  %2818 = vmatpush1.bf16.msra.mxu1 %v5810_v29  ;;  %v6922_v29 = vld [vmem:[#allocation23_spill] sm:$0xff] }
 0x7d5   :  { %2778 = vmatprep.subr.bf16.mxu0 %v5813_v16  ;;  %2819 = vmatprep.subr.bf16.mxu1 %v5816_v34 }
 0x7d8   :  { %2779 = vmatpush1.bf16.msra.mxu0 %v5819_v11  ;;  %2820 = vmatpush1.bf16.msra.mxu1 %v5822_v44  ;;  %v6921_v11 = vld [vmem:[#allocation21_spill] sm:$0xff] }
 0x7d9   :  { %2780 = vmatprep.subr.bf16.mxu0 %v5825_v0  ;;  %2821 = vmatprep.subr.bf16.mxu1 %v5828_v45  ;;  %v6920_v0 = vld [vmem:[#allocation20_spill] sm:$0xff] }
 0x7dc   :  { %2781 = vmatpush1.bf16.msra.mxu0 %v5831_v8  ;;  %2822 = vmatpush1.bf16.msra.mxu1 %v5834_v47 }
 0x7dd   :  { %2782 = vmatprep.subr.bf16.mxu0 %v5837_v17  ;;  %2823 = vmatprep.subr.bf16.mxu1 %v5840_v25 }
 0x7e0   :  { %2783 = vmatpush1.bf16.msra.mxu0 %v5843_v20  ;;  %2824 = vmatpush1.bf16.msra.mxu1 %v5846_v6  ;;  %v5861_v20 = vld [vmem:[#allocation8 + $0x24] ss:$16 sps:$4 sm:$0xff]   ;;  %v5864_v6 = vld [vmem:[#allocation8 + $0x2c] ss:$16 sps:$4 sm:$0xff]  }
 0x7e1   :  { %2784 = vmatprep.subr.bf16.mxu0 %v5849_v36  ;;  %2825 = vmatprep.subr.bf16.mxu1 %v5852_v10  ;;  %6910 = vst [vmem:[#allocation36_spill] sm:$0xff] %v5861_v20  ;;  %6911 = vst [vmem:[#allocation37_spill] sm:$0xff] %v5864_v6  ;;  %v5867_v36 = vld [vmem:[#allocation8 + $0x20] ss:$16 sps:$4 sm:$0xff]   ;;  %v5870_v10 = vld [vmem:[#allocation8 + $0x28] ss:$16 sps:$4 sm:$0xff]  }
 0x7e2   :  { %6912 = vst [vmem:[#allocation38_spill] sm:$0xff] %v5867_v36  ;;  %6913 = vst [vmem:[#allocation39_spill] sm:$0xff] %v5870_v10 }
 0x7e4   :  { %2785 = vmatpush1.bf16.msra.mxu0 %v5855_v42  ;;  %2826 = vmatpush1.bf16.msra.mxu1 %v5858_v27  ;;  %v5873_v42 = vld [vmem:[#allocation8 + $0x4] ss:$16 sps:$4 sm:$0xff]   ;;  %v5876_v27 = vld [vmem:[#allocation8 + $0xc] ss:$16 sps:$4 sm:$0xff]  }
 0x7e5   :  { %2786 = vmatprep.subr.bf16.mxu0 %v5861_v20  ;;  %2827 = vmatprep.subr.bf16.mxu1 %v5864_v6  ;;  %6914 = vst [vmem:[#allocation40_spill] sm:$0xff] %v5873_v42  ;;  %6915 = vst [vmem:[#allocation41_spill] sm:$0xff] %v5876_v27  ;;  %v5879_v20 = vld [vmem:[#allocation8] ss:$16 sps:$4 sm:$0xff]   ;;  %v5882_v6 = vld [vmem:[#allocation8 + $0x8] ss:$16 sps:$4 sm:$0xff]  }
 0x7e6   :  { %6916 = vst [vmem:[#allocation42_spill] sm:$0xff] %v5879_v20  ;;  %6917 = vst [vmem:[#allocation43_spill] sm:$0xff] %v5882_v6 }
 0x7e8   :  { %2787 = vmatpush1.bf16.msra.mxu0 %v5867_v36  ;;  %2828 = vmatpush1.bf16.msra.mxu1 %v5870_v10  ;;  %v5885_v36 = vld [vmem:[#allocation10 + $0xe4] ss:$16 sps:$4 sm:$0xff]   ;;  %v5888_v10 = vld [vmem:[#allocation10 + $0xec] ss:$16 sps:$4 sm:$0xff]  }
 0x7e9   :  { %2788 = vmatprep.subr.bf16.mxu0 %v5873_v42  ;;  %2829 = vmatprep.subr.bf16.mxu1 %v5876_v27  ;;  %6918 = vst [vmem:[#allocation44_spill] sm:$0xff] %v5885_v36  ;;  %6919 = vst [vmem:[#allocation30_spill] sm:$0xff] %v5888_v10 }
 0x7ec   :  { %2789 = vmatpush1.bf16.msra.mxu0 %v5879_v20  ;;  %2830 = vmatpush1.bf16.msra.mxu1 %v5882_v6 }
 0x7ed   :  { %2857 = vmatprep.subr.bf16.mxu0 %v5885_v36  ;;  %2898 = vmatprep.subr.bf16.mxu1 %v5888_v10 }
 0x84f   :  { %v2492_v42 = vpop.f32.mrf.mxu0  ;;  %v2533_v25 = vpop.f32.mrf.mxu1 }
 0x850   :  { %v2493_v44 = vadd.f32 %v2492_v42, %v6920_v0  ;;  %v2534_v6 = vadd.f32 %v2533_v25, %v6921_v11 }
 0x851   :  { %v2494_v17 = vpop.f32.mrf.mxu0  ;;  %v2535_v27 = vpop.f32.mrf.mxu1 }
 0x852   :  { %v2495_v36 = vadd.f32 %v2494_v17, %v6660_v1  ;;  %v2536_v63 = vadd.f32 %v2535_v27, %v6922_v29 }
 0x853   :  { %v2496_v47 = vpop.f32.mrf.mxu0  ;;  %v2537_v8 = vpop.f32.mrf.mxu1 }
 0x855   :  { %v2497_v45 = vpop.f32.mrf.mxu0  ;;  %v2538_v20 = vpop.f32.mrf.mxu1 }
 0x86f   :  { %v2575_v34 = vpop.f32.mrf.mxu0  ;;  %v2616_v16 = vpop.f32.mrf.mxu1 }
 0x870   :  { %v2623_v37 = vadd.f32 %v2575_v34, %v2493_v44  ;;  %v2625_v10 = vadd.f32 %v2616_v16, %v2534_v6  ;;  %v2653_v16 = vpop.permute.xlu1 %2652  ;;  %v6923_v44 = vld [vmem:[#allocation47_spill] sm:$0xff]  ;;  %v6926_v6 = vld [vmem:[#allocation22_spill] sm:$0xff] }
 0x871   :  { %v2577_v61 = vpop.f32.mrf.mxu0  ;;  %v2618_v56 = vpop.f32.mrf.mxu1 }
 0x872   :  { %v3524_v31 = vmul.f32 -1.442695, %v2623_v37  ;;  %v2624_v57 = vadd.f32 %v2577_v61, %v2495_v36  ;;  %v5895_v47 = vadd.f32 %v2618_v56, %v2536_v63  ;;  %v2655_v37 = vmul.f32 %v2653_v16, %v6923_v44  ;;  %v6924_v61 = vld [vmem:[#allocation48_spill] sm:$0xff]  ;;  %v6927_v36 = vld [vmem:[#allocation50_spill] sm:$0xff] }
 0x873   :  { %v2579_v45 = vpop.f32.mrf.mxu0  ;;  %v2620_v8 = vpop.f32.mrf.mxu1  ;;  %v2656_v56 = vmul.f32 %v2653_v16, %v6924_v61  ;;  %v4383_v63 = vmov 7   ;;  %v2658_v44 = vmul.f32 %v2653_v16, %v6598_v18 }
 0x874   :  { %3942 = vpow2.f32 %v3524_v31  ;;  %v3525_v20 = vmul.f32 -1.442695, %v2624_v57  ;;  %3620 = vset.pattern.permute.xlu1 %v4383_v63  ;;  %3621 = vset.pattern.permute.xlu0 %v4383_v63  ;;  %v6925_v31 = vld [vmem:[#allocation49_spill] sm:$0xff] }
 0x875   :  { %v2580_v42 = vpop.f32.mrf.mxu0  ;;  %v2621_v25 = vpop.f32.mrf.mxu1  ;;  %v2659_v57 = vadd.f32 %v2655_v37, %v6925_v31  ;;  %2968 = vperm.xlu1 %3620, %v6926_v6   ;;  %v2660_v27 = vadd.f32 %v2656_v56, %v6927_v36 }
 0x876   :  { %3944 = vpow2.f32 %v3525_v20 }
 0x877   :  { %3946 = vtanh.f32 %v2625_v10 }
 0x881   :  { %v3943_v11 = vpop.eup %3942 }
 0x882   :  { %v2630_v0 = vadd.f32 1.0, %v3943_v11 }
 0x883   :  { %v3945_v17 = vpop.eup %3944 }
 0x884   :  { %3948 = vrcp.f32 %v2630_v0  ;;  %v2636_v34 = vadd.f32 1.0, %v3945_v17  ;;  %v3947_v10 = vpop.eup %3946 }
 0x886   :  { %3950 = vrcp.f32 %v2636_v34 }
 0x88f   :  { %v2697_v11 = vpop.f32.mrf.mxu0  ;;  %v2738_v45 = vpop.f32.mrf.mxu1 }
 0x890   :  { %v2745_v0 = vadd.f32 %v2697_v11, %v2659_v57  ;;  %v2662_v57 = vadd.f32 %v2658_v44, %v4705_v58  ;;  %v2657_v11 = vmul.f32 %v2653_v16, %v6599_v24 }
 0x891   :  { %v3949_v8 = vpop.eup %3948  ;;  %v2699_v20 = vpop.f32.mrf.mxu0 }
 0x892   :  { %v2740_v42 = vpop.f32.mrf.mxu1  ;;  %v2647_v25 = vmul.f32 %v3949_v8, %v3947_v10  ;;  %v3527_v17 = vmul.f32 -1.442695, %v2745_v0  ;;  %v2746_v34 = vadd.f32 %v2699_v20, %v2660_v27  ;;  %v2661_v27 = vadd.f32 %v2657_v11, %v4713_v49  ;;  %v5918_v11 = vld [vmem:[#allocation10 + $0xe0] ss:$16 sps:$4 sm:$0xff]  }
 0x893   :  { %v3951_v61 = vpop.eup %3950  ;;  %v2701_v63 = vpop.f32.mrf.mxu0  ;;  %v2748_v10 = vadd.f32 %v2740_v42, %v2662_v57 }
 0x894   :  { %v2742_v29 = vpop.f32.mrf.mxu1  ;;  %v2646_v37 = vmul.f32 %v3951_v61, %v5704_v23  ;;  %3952 = vpow2.f32 %v3527_v17  ;;  %v3528_v6 = vmul.f32 -1.442695, %v2746_v34  ;;  %v2747_v20 = vadd.f32 %v2738_v45, %v2661_v27 }
 0x895   :  { %v2702_v56 = vpop.f32.mrf.mxu0  ;;  %v3529_v0 = vmul.f32 -1.442695, %v2748_v10  ;;  %v3526_v45 = vmul.f32 -1.442695, %v5895_v47  ;;  %v5924_v10 = vld [vmem:[#allocation10 + $0xc4] ss:$16 sps:$4 sm:$0xff]  }
 0x896   :  { %v2743_v36 = vpop.f32.mrf.mxu1  ;;  %v5904_v31 = vadd.f32 %v2647_v25, %v2646_v37  ;;  %3954 = vpow2.f32 %v3528_v6  ;;  %v5927_v47 = vld [vmem:[#allocation10 + $0xcc] ss:$16 sps:$4 sm:$0xff]  }
 0x897   :  { %3956 = vpow2.f32 %v3529_v0  ;;  %v5932_v0 = vld [vmem:[#allocation10 + $0xc0] ss:$16 sps:$4 sm:$0xff]  }
 0x8a1   :  { %v3953_v8 = vpop.eup %3952 }
 0x8a2   :  { %v2752_v29 = vadd.f32 1.0, %v3953_v8  ;;  %v5935_v8 = vld [vmem:[#allocation10 + $0xc8] ss:$16 sps:$4 sm:$0xff]  }
 0x8a3   :  { %v3955_v63 = vpop.eup %3954 }
 0x8a4   :  { %3958 = vrcp.f32 %v2752_v29  ;;  %v2758_v23 = vadd.f32 1.0, %v3955_v63  ;;  %v3957_v61 = vpop.eup %3956  ;;  %v5941_v29 = vld [vmem:[#allocation10 + $0xac] ss:$16 sps:$4 sm:$0xff]  }
 0x8a5   :  { %3960 = vtanh.f32 %v2747_v20  ;;  %v2765_v44 = vadd.f32 1.0, %v3957_v61  ;;  %v5938_v20 = vld [vmem:[#allocation10 + $0xa4] ss:$16 sps:$4 sm:$0xff]   ;;  %v5947_v61 = vld [vmem:[#allocation10 + $0xa8] ss:$16 sps:$4 sm:$0xff]  }
 0x8a6   :  { %3962 = vrcp.f32 %v2758_v23  ;;  %v5944_v23 = vld [vmem:[#allocation10 + $0xa0] ss:$16 sps:$4 sm:$0xff]  }
 0x8a7   :  { %3964 = vrcp.f32 %v2765_v44  ;;  %v5960_v44 = vld [vmem:[#allocation10 + $0x88] ss:$16 sps:$4 sm:$0xff]  }
 0x8a8   :  { %6928 = vst [vmem:[#allocation60_spill] sm:$0xff] %v5960_v44 }
 0x8b1   :  { %v3959_v36 = vpop.eup %3958 }
 0x8b2   :  { %v3961_v25 = vpop.eup %3960 }
 0x8b3   :  { %v3963_v17 = vpop.eup %3962  ;;  %v2769_v34 = vmul.f32 %v3961_v25, %v3959_v36  ;;  %v5950_v36 = vld [vmem:[#allocation10 + $0x84] ss:$16 sps:$4 sm:$0xff]   ;;  %v5953_v25 = vld [vmem:[#allocation10 + $0x8c] ss:$16 sps:$4 sm:$0xff]  }
 0x8b4   :  { %v2768_v16 = vmul.f32 %v3963_v17, %v5710_v54  ;;  %v3965_v37 = vpop.eup %3964  ;;  %v5921_v54 = vld [vmem:[#allocation10 + $0xe8] ss:$16 sps:$4 sm:$0xff]   ;;  %v5957_v17 = vld [vmem:[#allocation10 + $0x80] ss:$16 sps:$4 sm:$0xff]  }
 0x8b6   :  { %v5910_v42 = vadd.f32 %v2769_v34, %v2768_v16  ;;  %v5963_v34 = vld [vmem:[#allocation10 + $0x64] ss:$16 sps:$4 sm:$0xff]   ;;  %v5966_v16 = vld [vmem:[#allocation10 + $0x6c] ss:$16 sps:$4 sm:$0xff]  }
 0x8b7   :  { %6929 = vst [vmem:[#allocation61_spill] sm:$0xff] %v5963_v34  ;;  %6930 = vst [vmem:[#allocation62_spill] sm:$0xff] %v5966_v16 }
 0x8b8   :  { %3966 = vtanh.f32 %v5910_v42 }
 0x8b9   :  { %3968 = vpow2.f32 %v3526_v45  ;;  %v5969_v45 = vld [vmem:[#allocation10 + $0x60] ss:$16 sps:$4 sm:$0xff]  }
 0x8ba   :  { %3970 = vtanh.f32 %v5904_v31  ;;  %6931 = vst [vmem:[#allocation63_spill] sm:$0xff] %v5969_v45 }
 0x8c5   :  { %v3967_v6 = vpop.eup %3966 }
 0x8c6   :  { %v2772_v56 = vmul.f32 %v3967_v6, %v3965_v37  ;;  %v3969_v27 = vpop.eup %3968  ;;  %v5972_v37 = vld [vmem:[#allocation10 + $0x68] ss:$16 sps:$4 sm:$0xff]   ;;  %v5975_v6 = vld [vmem:[#allocation10 + $0x44] ss:$16 sps:$4 sm:$0xff]  }
 0x8c7   :  { %v2643_v63 = vadd.f32 1.0, %v3969_v27  ;;  %6932 = vst [vmem:[#allocation64_spill] sm:$0xff] %v5972_v37  ;;  %6933 = vst [vmem:[#allocation65_spill] sm:$0xff] %v5975_v6  ;;  %v5981_v27 = vld [vmem:[#allocation10 + $0x40] ss:$16 sps:$4 sm:$0xff]  }
 0x8c8   :  { %v5914_v57 = vpack.c.bf16 %v2772_v56, %v2772_v56  ;;  %v5978_v56 = vld [vmem:[#allocation10 + $0x4c] ss:$16 sps:$4 sm:$0xff]   ;;  %6935 = vst [vmem:[#allocation67_spill] sm:$0xff] %v5981_v27 }
 0x8c9   :  { %3972 = vrcp.f32 %v2643_v63  ;;  %6934 = vst [vmem:[#allocation66_spill] sm:$0xff] %v5978_v56  ;;  %v5984_v63 = vld [vmem:[#allocation10 + $0x48] ss:$16 sps:$4 sm:$0xff]  }
 0x8ca   :  { %2807 = vmatmul.mubr.bf16.vlgmr.msra.gmra.mxu0 %v5914_v57  ;;  %2848 = vmatmul.mubr.bf16.vlgmr.msra.gmra.mxu1 %v5914_v57  ;;  %6936 = vst [vmem:[#allocation68_spill] sm:$0xff] %v5984_v63 }
 0x8cb   :  { %2858 = vmatpush1.bf16.msra.mxu0 %v5918_v11  ;;  %2899 = vmatpush1.bf16.msra.mxu1 %v5921_v54 }
 0x8cc   :  { %2859 = vmatprep.subr.bf16.mxu0 %v5924_v10  ;;  %2900 = vmatprep.subr.bf16.mxu1 %v5927_v47 }
 0x8cd   :  { %2889 = vmatprep.mubr.bf16.mxu0 %v6548_v55  ;;  %2930 = vmatprep.mubr.bf16.mxu1 %v6548_v55 }
 0x8cf   :  { %2860 = vmatpush1.bf16.msra.mxu0 %v5932_v0  ;;  %2901 = vmatpush1.bf16.msra.mxu1 %v5935_v8 }
 0x8d0   :  { %2861 = vmatprep.subr.bf16.mxu0 %v5938_v20  ;;  %2902 = vmatprep.subr.bf16.mxu1 %v5941_v29 }
 0x8d3   :  { %2862 = vmatpush1.bf16.msra.mxu0 %v5944_v23  ;;  %2903 = vmatpush1.bf16.msra.mxu1 %v5947_v61 }
 0x8d4   :  { %2863 = vmatprep.subr.bf16.mxu0 %v5950_v36  ;;  %2904 = vmatprep.subr.bf16.mxu1 %v5953_v25 }
 0x8d7   :  { %2864 = vmatpush1.bf16.msra.mxu0 %v5957_v17  ;;  %2905 = vmatpush1.bf16.msra.mxu1 %v5960_v44  ;;  %v6008_v44 = vld [vmem:[#allocation10 + $0x8] ss:$16 sps:$4 sm:$0xff]  }
 0x8d8   :  { %2865 = vmatprep.subr.bf16.mxu0 %v5963_v34  ;;  %2906 = vmatprep.subr.bf16.mxu1 %v5966_v16  ;;  %v5993_v34 = vld [vmem:[#allocation10 + $0x20] ss:$16 sps:$4 sm:$0xff]  }
 0x8d9   :  { %6939 = vst [vmem:[#allocation71_spill] sm:$0xff] %v5993_v34 }
 0x8db   :  { %2866 = vmatpush1.bf16.msra.mxu0 %v5969_v45  ;;  %2907 = vmatpush1.bf16.msra.mxu1 %v5972_v37  ;;  %v5987_v45 = vld [vmem:[#allocation10 + $0x24] ss:$16 sps:$4 sm:$0xff]   ;;  %v5990_v37 = vld [vmem:[#allocation10 + $0x2c] ss:$16 sps:$4 sm:$0xff]  }
 0x8dc   :  { %2867 = vmatprep.subr.bf16.mxu0 %v5975_v6  ;;  %2908 = vmatprep.subr.bf16.mxu1 %v5978_v56  ;;  %6937 = vst [vmem:[#allocation69_spill] sm:$0xff] %v5987_v45  ;;  %6938 = vst [vmem:[#allocation70_spill] sm:$0xff] %v5990_v37  ;;  %v3971_v6 = vpop.eup %3970  ;;  %v5996_v56 = vld [vmem:[#allocation10 + $0x28] ss:$16 sps:$4 sm:$0xff]  }
 0x8dd   :  { %v3973_v16 = vpop.eup %3972 }
 0x8df   :  { %2868 = vmatpush1.bf16.msra.mxu0 %v5981_v27  ;;  %2909 = vmatpush1.bf16.msra.mxu1 %v5984_v63  ;;  %v5999_v27 = vld [vmem:[#allocation10 + $0x4] ss:$16 sps:$4 sm:$0xff]   ;;  %v6002_v63 = vld [vmem:[#allocation10 + $0xc] ss:$16 sps:$4 sm:$0xff]  }
 0x8e0   :  { %2869 = vmatprep.subr.bf16.mxu0 %v5987_v45  ;;  %2910 = vmatprep.subr.bf16.mxu1 %v5990_v37  ;;  %v2650_v45 = vmul.f32 %v3973_v16, %v3971_v6  ;;  %v6005_v37 = vld [vmem:[#allocation10] ss:$16 sps:$4 sm:$0xff]  }
 0x8e3   :  { %2870 = vmatpush1.bf16.msra.mxu0 %v5993_v34  ;;  %2911 = vmatpush1.bf16.msra.mxu1 %v5996_v56  ;;  %v2856_v34 = vpack.c.bf16 %v2650_v45, %v2650_v45 }
 0x8e4   :  { %2871 = vmatprep.subr.bf16.mxu0 %v5999_v27  ;;  %2912 = vmatprep.subr.bf16.mxu1 %v6002_v63 }
 0x8e7   :  { %2872 = vmatpush1.bf16.msra.mxu0 %v6005_v37  ;;  %2913 = vmatpush1.bf16.msra.mxu1 %v6008_v44 }
 0x8e8   :  { %2979 = vmatprep.subr.bf16.mxu0 %v5553_v32  ;;  %3020 = vmatprep.subr.bf16.mxu1 %v5556_v21  ;;  %v6940_v32 = vld [vmem:[#allocation24_spill] sm:$0xff]  ;;  %v6941_v21 = vld [vmem:[#allocation25_spill] sm:$0xff] }
 0x8ea   :  { %2890 = vmatmul.mubr.bf16.vlgmr.msra.gmra.mxu0 %v2856_v34  ;;  %2931 = vmatmul.mubr.bf16.vlgmr.msra.gmra.mxu1 %v2856_v34 }
 0x8eb   :  { %2980 = vmatpush1.bf16.msra.mxu0 %v5559_v13  ;;  %3021 = vmatpush1.bf16.msra.mxu1 %v6858_v38  ;;  %v6942_v13 = vld [vmem:[#allocation26_spill] sm:$0xff]  ;;  %v6943_v38 = vld [vmem:[#allocation27_spill] sm:$0xff] }
 0x8ec   :  { %2981 = vmatprep.subr.bf16.mxu0 %v6859_v26  ;;  %3022 = vmatprep.subr.bf16.mxu1 %v6860_v52  ;;  %v6944_v26 = vld [vmem:[#allocation28_spill] sm:$0xff]  ;;  %v6945_v52 = vld [vmem:[#allocation29_spill] sm:$0xff] }
 0x8ed   :  { %3011 = vmatprep.mubr.bf16.mxu0 %v6548_v55  ;;  %3052 = vmatprep.mubr.bf16.mxu1 %v6548_v55 }
 0x8ef   :  { %2982 = vmatpush1.bf16.msra.mxu0 %v6861_v3  ;;  %3023 = vmatpush1.bf16.msra.mxu1 %v6862_v9  ;;  %v6946_v3 = vld [vmem:[#allocation45_spill] sm:$0xff]  ;;  %v6947_v9 = vld [vmem:[#allocation46_spill] sm:$0xff] }
 0x8f0   :  { %2983 = vmatprep.subr.bf16.mxu0 %v6863_v59  ;;  %3024 = vmatprep.subr.bf16.mxu1 %v6864_v35  ;;  %v6948_v59 = vld [vmem:[#allocation19_spill] sm:$0xff] }
 0x8f1   :  { %v6949_v35 = vld [vmem:[#allocation51_spill] sm:$0xff] }
 0x8f3   :  { %2984 = vmatpush1.bf16.msra.mxu0 %v6865_v46  ;;  %3025 = vmatpush1.bf16.msra.mxu1 %v6866_v41  ;;  %v6950_v46 = vld [vmem:[#allocation52_spill] sm:$0xff]  ;;  %v6951_v41 = vld [vmem:[#allocation53_spill] sm:$0xff] }
 0x8f4   :  { %2985 = vmatprep.subr.bf16.mxu0 %v6867_v4  ;;  %3026 = vmatprep.subr.bf16.mxu1 %v6868_v2  ;;  %v6952_v4 = vld [vmem:[#allocation54_spill] sm:$0xff]  ;;  %v6953_v2 = vld [vmem:[#allocation55_spill] sm:$0xff] }
 0x8f7   :  { %2986 = vmatpush1.bf16.msra.mxu0 %v6869_v53  ;;  %3027 = vmatpush1.bf16.msra.mxu1 %v6870_v40  ;;  %v6954_v53 = vld [vmem:[#allocation56_spill] sm:$0xff]  ;;  %v6955_v40 = vld [vmem:[#allocation57_spill] sm:$0xff] }
 0x8f8   :  { %2987 = vmatprep.subr.bf16.mxu0 %v6871_v28  ;;  %3028 = vmatprep.subr.bf16.mxu1 %v6872_v30  ;;  %v6956_v28 = vld [vmem:[#allocation58_spill] sm:$0xff]  ;;  %v6957_v30 = vld [vmem:[#allocation59_spill] sm:$0xff] }
 0x8fb   :  { %2988 = vmatpush1.bf16.msra.mxu0 %v6873_v22  ;;  %3029 = vmatpush1.bf16.msra.mxu1 %v6874_v7  ;;  %v6958_v22 = vld [vmem:[#allocation31_spill] sm:$0xff]  ;;  %v6959_v7 = vld [vmem:[#allocation32_spill] sm:$0xff] }
 0x8fc   :  { %2989 = vmatprep.subr.bf16.mxu0 %v6875_v62  ;;  %3030 = vmatprep.subr.bf16.mxu1 %v6876_v19  ;;  %v6960_v62 = vld [vmem:[#allocation33_spill] sm:$0xff]  ;;  %v6961_v19 = vld [vmem:[#allocation34_spill] sm:$0xff] }
 0x8ff   :  { %2990 = vmatpush1.bf16.msra.mxu0 %v6877_v33  ;;  %3031 = vmatpush1.bf16.msra.mxu1 %v6878_v5  ;;  %v6962_v33 = vld [vmem:[#allocation35_spill] sm:$0xff]  ;;  %v6963_v5 = vld [vmem:[#allocation36_spill] sm:$0xff] }
 0x900   :  { %2991 = vmatprep.subr.bf16.mxu0 %v6879_v60  ;;  %3032 = vmatprep.subr.bf16.mxu1 %v6880_v14  ;;  %v6964_v60 = vld [vmem:[#allocation37_spill] sm:$0xff]  ;;  %v6965_v14 = vld [vmem:[#allocation38_spill] sm:$0xff] }
 0x903   :  { %2992 = vmatpush1.bf16.msra.mxu0 %v6881_v39  ;;  %3033 = vmatpush1.bf16.msra.mxu1 %v6882_v12  ;;  %v6966_v39 = vld [vmem:[#allocation39_spill] sm:$0xff]  ;;  %v6967_v12 = vld [vmem:[#allocation40_spill] sm:$0xff] }
 0x904   :  { %2993 = vmatprep.subr.bf16.mxu0 %v6883_v43  ;;  %3034 = vmatprep.subr.bf16.mxu1 %v6884_v15  ;;  %v6968_v43 = vld [vmem:[#allocation41_spill] sm:$0xff]  ;;  %v6969_v15 = vld [vmem:[#allocation42_spill] sm:$0xff] }
 0x907   :  { %2994 = vmatpush1.bf16.msra.mxu0 %v6885_v48  ;;  %3035 = vmatpush1.bf16.msra.mxu1 %v6886_v50  ;;  %v6970_v48 = vld [vmem:[#allocation43_spill] sm:$0xff]  ;;  %v6971_v50 = vld [vmem:[#allocation44_spill] sm:$0xff] }
 0x908   :  { %3090 = vmatprep.subr.bf16.mxu0 %v5785_v51  ;;  %3131 = vmatprep.subr.bf16.mxu1 %v6940_v32  ;;  %v6972_v51 = vld [vmem:[#allocation30_spill] sm:$0xff] }
 0x90a   :  { %3012 = vmatmul.mubr.bf16.vlgmr.msra.gmra.mxu0 %v5914_v57  ;;  %3053 = vmatmul.mubr.bf16.vlgmr.msra.gmra.mxu1 %v5914_v57 }
 0x90b   :  { %3091 = vmatpush1.bf16.msra.mxu0 %v6941_v21  ;;  %3132 = vmatpush1.bf16.msra.mxu1 %v6942_v13 }
 0x90c   :  { %3092 = vmatprep.subr.bf16.mxu0 %v6943_v38  ;;  %3133 = vmatprep.subr.bf16.mxu1 %v6944_v26  ;;  %v6973_v38 = vld [vmem:[#allocation20_spill] sm:$0xff] }
 0x90d   :  { %3122 = vmatprep.mubr.bf16.mxu0 %v6548_v55  ;;  %3163 = vmatprep.mubr.bf16.mxu1 %v6548_v55 }
 0x90f   :  { %3093 = vmatpush1.bf16.msra.mxu0 %v6945_v52  ;;  %3134 = vmatpush1.bf16.msra.mxu1 %v6946_v3  ;;  %v6974_v52 = vld [vmem:[#allocation21_spill] sm:$0xff] }
 0x910   :  { %3094 = vmatprep.subr.bf16.mxu0 %v6947_v9  ;;  %3135 = vmatprep.subr.bf16.mxu1 %v6948_v59 }
 0x913   :  { %3095 = vmatpush1.bf16.msra.mxu0 %v6949_v35  ;;  %3136 = vmatpush1.bf16.msra.mxu1 %v6950_v46  ;;  %v6975_v46 = vld [vmem:[#allocation23_spill] sm:$0xff] }
 0x914   :  { %3096 = vmatprep.subr.bf16.mxu0 %v6951_v41  ;;  %3137 = vmatprep.subr.bf16.mxu1 %v6952_v4 }
 0x917   :  { %3097 = vmatpush1.bf16.msra.mxu0 %v6953_v2  ;;  %3138 = vmatpush1.bf16.msra.mxu1 %v6954_v53 }
 0x918   :  { %3098 = vmatprep.subr.bf16.mxu0 %v6955_v40  ;;  %3139 = vmatprep.subr.bf16.mxu1 %v6956_v28 }
 0x91b   :  { %3099 = vmatpush1.bf16.msra.mxu0 %v6957_v30  ;;  %3140 = vmatpush1.bf16.msra.mxu1 %v6958_v22 }
 0x91c   :  { %3100 = vmatprep.subr.bf16.mxu0 %v6959_v7  ;;  %3141 = vmatprep.subr.bf16.mxu1 %v6960_v62 }
 0x91f   :  { %3101 = vmatpush1.bf16.msra.mxu0 %v6961_v19  ;;  %3142 = vmatpush1.bf16.msra.mxu1 %v6962_v33 }
 0x920   :  { %3102 = vmatprep.subr.bf16.mxu0 %v6963_v5  ;;  %3143 = vmatprep.subr.bf16.mxu1 %v6964_v60 }
 0x923   :  { %3103 = vmatpush1.bf16.msra.mxu0 %v6965_v14  ;;  %3144 = vmatpush1.bf16.msra.mxu1 %v6966_v39 }
 0x924   :  { %3104 = vmatprep.subr.bf16.mxu0 %v6967_v12  ;;  %3145 = vmatprep.subr.bf16.mxu1 %v6968_v43  ;;  %v2969_v43 = vpop.permute.xlu1 %2968 }
 0x927   :  { %3105 = vmatpush1.bf16.msra.mxu0 %v6969_v15  ;;  %3146 = vmatpush1.bf16.msra.mxu1 %v6970_v48  ;;  %v6976_v15 = vld [vmem:[#allocation47_spill] sm:$0xff] }
 0x928   :  { %3173 = vmatprep.subr.bf16.mxu0 %v6971_v50  ;;  %3214 = vmatprep.subr.bf16.mxu1 %v6972_v51  ;;  %v2971_v48 = vmul.f32 %v2969_v43, %v6976_v15  ;;  %v6977_v50 = vld [vmem:[#allocation48_spill] sm:$0xff] }
 0x929   :  { %v2972_v51 = vmul.f32 %v2969_v43, %v6977_v50 }
 0x98a   :  { %v2808_v57 = vpop.f32.mrf.mxu0  ;;  %v2849_v34 = vpop.f32.mrf.mxu1 }
 0x98b   :  { %v2809_v26 = vadd.f32 %v2808_v57, %v6973_v38  ;;  %v2850_v3 = vadd.f32 %v2849_v34, %v6974_v52  ;;  %v6978_v57 = vld [vmem:[#allocation49_spill] sm:$0xff] }
 0x98c   :  { %v2810_v16 = vpop.f32.mrf.mxu0  ;;  %v2851_v45 = vpop.f32.mrf.mxu1  ;;  %v2975_v34 = vadd.f32 %v2971_v48, %v6978_v57 }
 0x98d   :  { %v2811_v35 = vadd.f32 %v2810_v16, %v6660_v1  ;;  %v2852_v41 = vadd.f32 %v2851_v45, %v6975_v46  ;;  %v6979_v16 = vld [vmem:[#allocation50_spill] sm:$0xff] }
 0x98e   :  { %v2812_v6 = vpop.f32.mrf.mxu0  ;;  %v2853_v32 = vpop.f32.mrf.mxu1  ;;  %v2976_v45 = vadd.f32 %v2972_v51, %v6979_v16 }
 0x990   :  { %v2813_v21 = vpop.f32.mrf.mxu0  ;;  %v2854_v13 = vpop.f32.mrf.mxu1 }
 0x9aa   :  { %v2891_v9 = vpop.f32.mrf.mxu0  ;;  %v2932_v59 = vpop.f32.mrf.mxu1 }
 0x9ab   :  { %v2939_v4 = vadd.f32 %v2891_v9, %v2809_v26  ;;  %v2941_v2 = vadd.f32 %v2932_v59, %v2850_v3 }
 0x9ac   :  { %v2893_v53 = vpop.f32.mrf.mxu0  ;;  %v2934_v40 = vpop.f32.mrf.mxu1 }
 0x9ad   :  { %v3530_v28 = vmul.f32 -1.442695, %v2939_v4  ;;  %v2940_v30 = vadd.f32 %v2893_v53, %v2811_v35  ;;  %v6087_v22 = vadd.f32 %v2934_v40, %v2852_v41 }
 0x9ae   :  { %v2895_v7 = vpop.f32.mrf.mxu0  ;;  %v2936_v62 = vpop.f32.mrf.mxu1 }
 0x9af   :  { %3974 = vpow2.f32 %v3530_v28  ;;  %v3531_v19 = vmul.f32 -1.442695, %v2940_v30 }
 0x9b0   :  { %v2896_v33 = vpop.f32.mrf.mxu0  ;;  %v2937_v5 = vpop.f32.mrf.mxu1 }
 0x9b1   :  { %3976 = vpow2.f32 %v3531_v19  ;;  %v2973_v5 = vmul.f32 %v2969_v43, %v6599_v24 }
 0x9b2   :  { %3978 = vtanh.f32 %v2941_v2  ;;  %v2974_v2 = vmul.f32 %v2969_v43, %v6598_v18 }
 0x9b4   :  { %v2978_v33 = vadd.f32 %v2974_v2, %v4705_v58  ;;  %v3288_v2 = vld [vmem:[#allocation11 + $0x28] sm:$0xff] }
 0x9bc   :  { %v3975_v60 = vpop.eup %3974 }
 0x9bd   :  { %v2946_v14 = vadd.f32 1.0, %v3975_v60 }
 0x9be   :  { %v3977_v39 = vpop.eup %3976 }
 0x9bf   :  { %3980 = vrcp.f32 %v2946_v14  ;;  %v2952_v12 = vadd.f32 1.0, %v3977_v39  ;;  %v3979_v21 = vpop.eup %3978  ;;  %v2977_v14 = vadd.f32 %v2973_v5, %v4713_v49  ;;  %v3532_v49 = vmul.f32 -1.442695, %v6087_v22  ;;  %v6991_v22 = vld [vmem:[#allocation71_spill] sm:$0xff] }
 0x9c1   :  { %3982 = vrcp.f32 %v2952_v12 }
 0x9ca   :  { %v3013_v6 = vpop.f32.mrf.mxu0  ;;  %v3054_v32 = vpop.f32.mrf.mxu1 }
 0x9cb   :  { %v3061_v13 = vadd.f32 %v3013_v6, %v2975_v34  ;;  %v3063_v12 = vadd.f32 %v3054_v32, %v2977_v14 }
 0x9cc   :  { %v3981_v26 = vpop.eup %3980  ;;  %v3015_v3 = vpop.f32.mrf.mxu0 }
 0x9cd   :  { %v3056_v9 = vpop.f32.mrf.mxu1  ;;  %v2963_v59 = vmul.f32 %v3981_v26, %v3979_v21  ;;  %v3533_v35 = vmul.f32 -1.442695, %v3061_v13  ;;  %v3062_v41 = vadd.f32 %v3015_v3, %v2976_v45  ;;  %v4384_v3 = vmov 0.0  }
 0x9ce   :  { %v3983_v4 = vpop.eup %3982  ;;  %v3017_v53 = vpop.f32.mrf.mxu0  ;;  %v3064_v60 = vadd.f32 %v3056_v9, %v2978_v33  ;;  %v3298_v9 = vld [vmem:[#allocation11 + $0x78] sm:$0xff] }
 0x9cf   :  { %v3058_v40 = vpop.f32.mrf.mxu1  ;;  %v2962_v28 = vmul.f32 %v3983_v4, %v5904_v31  ;;  %3984 = vpow2.f32 %v3533_v35  ;;  %v3534_v30 = vmul.f32 -1.442695, %v3062_v41  ;;  %v3291_v35 = vld [vmem:[#allocation11 + $0x40] sm:$0xff]  ;;  %v3290_v41 = vld [vmem:[#allocation11 + $0x38] sm:$0xff]  ;;  %v3289_v4 = vld [vmem:[#allocation11 + $0x30] sm:$0xff] }
 0x9d0   :  { %v3018_v7 = vpop.f32.mrf.mxu0  ;;  %v3535_v39 = vmul.f32 -1.442695, %v3064_v60  ;;  %v3287_v53 = vld [vmem:[#allocation11 + $0x20] sm:$0xff]  ;;  %v3286_v40 = vld [vmem:[#allocation11 + $0x18] sm:$0xff] }
 0x9d1   :  { %v3059_v62 = vpop.f32.mrf.mxu1  ;;  %v6095_v19 = vadd.f32 %v2963_v59, %v2962_v28  ;;  %3986 = vpow2.f32 %v3534_v30  ;;  %v3297_v59 = vld [vmem:[#allocation11 + $0x70] sm:$0xff]  ;;  %v3284_v30 = vld [vmem:[#allocation11 + $0x8] sm:$0xff]  ;;  %v3283_v7 = vld [vmem:[#allocation11] sm:$0xff] }
 0x9d2   :  { %3988 = vpow2.f32 %v3535_v39  ;;  %v3285_v28 = vld [vmem:[#allocation11 + $0x10] sm:$0xff] }
 0x9dc   :  { %v3985_v18 = vpop.eup %3984 }
 0x9dd   :  { %v3068_v15 = vadd.f32 1.0, %v3985_v18 }
 0x9de   :  { %v3987_v48 = vpop.eup %3986 }
 0x9df   :  { %3990 = vrcp.f32 %v3068_v15  ;;  %v3074_v31 = vadd.f32 1.0, %v3987_v48  ;;  %v3989_v50 = vpop.eup %3988 }
 0x9e0   :  { %3992 = vtanh.f32 %v3063_v12  ;;  %v3081_v58 = vadd.f32 1.0, %v3989_v50 }
 0x9e1   :  { %3994 = vrcp.f32 %v3074_v31 }
 0x9e2   :  { %3996 = vrcp.f32 %v3081_v58 }
 0x9ec   :  { %v3991_v51 = vpop.eup %3990 }
 0x9ed   :  { %v3993_v57 = vpop.eup %3992 }
 0x9ee   :  { %v3995_v34 = vpop.eup %3994  ;;  %v3085_v16 = vmul.f32 %v3993_v57, %v3991_v51 }
 0x9ef   :  { %v3084_v24 = vmul.f32 %v3995_v34, %v5910_v42  ;;  %v3997_v45 = vpop.eup %3996 }
 0x9f1   :  { %v3086_v43 = vadd.f32 %v3085_v16, %v3084_v24 }
 0x9f3   :  { %3998 = vtanh.f32 %v3086_v43 }
 0x9f4   :  { %4000 = vpow2.f32 %v3532_v49 }
 0x9f5   :  { %4002 = vtanh.f32 %v6095_v19 }
 0xa00   :  { %v3999_v6 = vpop.eup %3998 }
 0xa01   :  { %v3088_v32 = vmul.f32 %v3999_v6, %v3997_v45  ;;  %v4001_v42 = vpop.eup %4000 }
 0xa03   :  { %v3089_v21 = vpack.c.bf16 %v3088_v32, %v3088_v32 }
 0xa05   :  { %3123 = vmatmul.mubr.bf16.vlgmr.msra.gmra.mxu0 %v3089_v21  ;;  %3164 = vmatmul.mubr.bf16.vlgmr.msra.gmra.mxu1 %v3089_v21 }
 0xa06   :  { %3174 = vmatpush1.bf16.msra.mxu0 %v5918_v11  ;;  %3215 = vmatpush1.bf16.msra.mxu1 %v5921_v54  ;;  %v2959_v11 = vadd.f32 1.0, %v4001_v42  ;;  %v6981_v54 = vld [vmem:[#allocation61_spill] sm:$0xff] }
 0xa07   :  { %3175 = vmatprep.subr.bf16.mxu0 %v5924_v10  ;;  %3216 = vmatprep.subr.bf16.mxu1 %v5927_v47  ;;  %v6982_v10 = vld [vmem:[#allocation62_spill] sm:$0xff]  ;;  %v6983_v47 = vld [vmem:[#allocation63_spill] sm:$0xff] }
 0xa08   :  { %3205 = vmatprep.mubr.bf16.mxu0 %v6548_v55  ;;  %3246 = vmatprep.mubr.bf16.mxu1 %v6548_v55  ;;  %4004 = vrcp.f32 %v2959_v11  ;;  %v6980_v55 = vld [vmem:[#allocation60_spill] sm:$0xff] }
 0xa0a   :  { %3176 = vmatpush1.bf16.msra.mxu0 %v5932_v0  ;;  %3217 = vmatpush1.bf16.msra.mxu1 %v5935_v8  ;;  %v6984_v0 = vld [vmem:[#allocation64_spill] sm:$0xff]  ;;  %v6985_v8 = vld [vmem:[#allocation65_spill] sm:$0xff] }
 0xa0b   :  { %3177 = vmatprep.subr.bf16.mxu0 %v5938_v20  ;;  %3218 = vmatprep.subr.bf16.mxu1 %v5941_v29  ;;  %v6986_v20 = vld [vmem:[#allocation66_spill] sm:$0xff]  ;;  %v6987_v29 = vld [vmem:[#allocation67_spill] sm:$0xff] }
 0xa0e   :  { %3178 = vmatpush1.bf16.msra.mxu0 %v5944_v23  ;;  %3219 = vmatpush1.bf16.msra.mxu1 %v5947_v61  ;;  %v6988_v23 = vld [vmem:[#allocation68_spill] sm:$0xff]  ;;  %v6989_v61 = vld [vmem:[#allocation69_spill] sm:$0xff] }
 0xa0f   :  { %3179 = vmatprep.subr.bf16.mxu0 %v5950_v36  ;;  %3220 = vmatprep.subr.bf16.mxu1 %v5953_v25  ;;  %v6990_v36 = vld [vmem:[#allocation70_spill] sm:$0xff]  ;;  %v4003_v25 = vpop.eup %4002 }
 0xa12   :  { %3180 = vmatpush1.bf16.msra.mxu0 %v5957_v17  ;;  %3221 = vmatpush1.bf16.msra.mxu1 %v6980_v55 }
 0xa13   :  { %3181 = vmatprep.subr.bf16.mxu0 %v6981_v54  ;;  %3222 = vmatprep.subr.bf16.mxu1 %v6982_v10 }
 0xa15   :  { %v4005_v17 = vpop.eup %4004 }
 0xa16   :  { %3182 = vmatpush1.bf16.msra.mxu0 %v6983_v47  ;;  %3223 = vmatpush1.bf16.msra.mxu1 %v6984_v0  ;;  %v2966_v13 = vmul.f32 %v4005_v17, %v4003_v25  ;;  %v3539_v17 = vld [vmem:[%s6154_s8] ss:$0 sm:$0xff] }
 0xa17   :  { %3183 = vmatprep.subr.bf16.mxu0 %v6985_v8  ;;  %3224 = vmatprep.subr.bf16.mxu1 %v6986_v20 }
 0xa18   :  { %v3172_v26 = vpack.c.bf16 %v2966_v13, %v2966_v13 }
 0xa1a   :  { %3184 = vmatpush1.bf16.msra.mxu0 %v6987_v29  ;;  %3225 = vmatpush1.bf16.msra.mxu1 %v6988_v23 }
 0xa1b   :  { %3185 = vmatprep.subr.bf16.mxu0 %v6989_v61  ;;  %3226 = vmatprep.subr.bf16.mxu1 %v6990_v36 }
 0xa1e   :  { %3186 = vmatpush1.bf16.msra.mxu0 %v6991_v22  ;;  %3227 = vmatpush1.bf16.msra.mxu1 %v5996_v56  ;;  %v3296_v56 = vld [vmem:[#allocation11 + $0x68] sm:$0xff] }
 0xa1f   :  { %3187 = vmatprep.subr.bf16.mxu0 %v5999_v27  ;;  %3228 = vmatprep.subr.bf16.mxu1 %v6002_v63  ;;  %v3295_v27 = vld [vmem:[#allocation11 + $0x60] sm:$0xff]  ;;  %v3292_v63 = vld [vmem:[#allocation11 + $0x48] sm:$0xff] }
 0xa22   :  { %3188 = vmatpush1.bf16.msra.mxu0 %v6005_v37  ;;  %3229 = vmatpush1.bf16.msra.mxu1 %v6008_v44  ;;  %v3294_v37 = vld [vmem:[#allocation11 + $0x58] sm:$0xff]  ;;  %v3293_v44 = vld [vmem:[#allocation11 + $0x50] sm:$0xff] }
 0xa23   :  { %3557 = vmatprep.subr.mxu0 %v4384_v3 }
 0xa25   :  { %3206 = vmatmul.mubr.bf16.vlgmr.msra.gmra.mxu0 %v3172_v26  ;;  %3247 = vmatmul.mubr.bf16.vlgmr.msra.gmra.mxu1 %v3172_v26 }
 0xa26   :  { %3558 = vmatpush3.msra.mxu0 %v3298_v9  ;;  %3589 = vmatprep.mubr.msk.f32.mxu0 %vm4385_vm0, %v4384_v3 }
 0xa27   :  { %3559 = vmatprep.subr.mxu0 %v4384_v3 }
 0xa28   :  { %3560 = vmatpush3.msra.mxu0 %v3297_v59 }
 0xa29   :  { %3561 = vmatprep.subr.mxu0 %v4384_v3 }
 0xa2a   :  { %3562 = vmatpush3.msra.mxu0 %v3296_v56 }
 0xa2b   :  { %3563 = vmatprep.subr.mxu0 %v4384_v3 }
 0xa2c   :  { %3564 = vmatpush3.msra.mxu0 %v3295_v27 }
 0xa2d   :  { %3565 = vmatprep.subr.mxu0 %v4384_v3 }
 0xa2e   :  { %3566 = vmatpush3.msra.mxu0 %v3294_v37 }
 0xa2f   :  { %3567 = vmatprep.subr.mxu0 %v4384_v3 }
 0xa30   :  { %3568 = vmatpush3.msra.mxu0 %v3293_v44 }
 0xa31   :  { %3569 = vmatprep.subr.mxu0 %v4384_v3 }
 0xa32   :  { %3570 = vmatpush3.msra.mxu0 %v3292_v63 }
 0xa33   :  { %3571 = vmatprep.subr.mxu0 %v4384_v3 }
 0xa34   :  { %3572 = vmatpush3.msra.mxu0 %v3291_v35 }
 0xa35   :  { %3573 = vmatprep.subr.mxu0 %v4384_v3 }
 0xa36   :  { %3574 = vmatpush3.msra.mxu0 %v3290_v41 }
 0xa37   :  { %3575 = vmatprep.subr.mxu0 %v4384_v3 }
 0xa38   :  { %3576 = vmatpush3.msra.mxu0 %v3289_v4 }
 0xa39   :  { %3577 = vmatprep.subr.mxu0 %v4384_v3 }
 0xa3a   :  { %3578 = vmatpush3.msra.mxu0 %v3288_v2 }
 0xa3b   :  { %3579 = vmatprep.subr.mxu0 %v4384_v3 }
 0xa3c   :  { %3580 = vmatpush3.msra.mxu0 %v3287_v53 }
 0xa3d   :  { %3581 = vmatprep.subr.mxu0 %v4384_v3 }
 0xa3e   :  { %3582 = vmatpush3.msra.mxu0 %v3286_v40 }
 0xa3f   :  { %3583 = vmatprep.subr.mxu0 %v4384_v3 }
 0xa40   :  { %3584 = vmatpush3.msra.mxu0 %v3285_v28 }
 0xa41   :  { %3585 = vmatprep.subr.mxu0 %v4384_v3 }
 0xa42   :  { %3586 = vmatpush3.msra.mxu0 %v3284_v30 }
 0xa43   :  { %3587 = vmatprep.subr.mxu0 %v4384_v3 }
 0xa44   :  { %3588 = vmatpush3.msra.mxu0 %v3283_v7 }
 0xac5   :  { %v3124_v62 = vpop.f32.mrf.mxu0  ;;  %v3165_v33 = vpop.f32.mrf.mxu1 }
 0xac6   :  { %v3125_v15 = vadd.f32 %v3124_v62, %v6973_v38  ;;  %v3166_v38 = vadd.f32 %v3165_v33, %v6974_v52 }
 0xac7   :  { %v3126_v5 = vpop.f32.mrf.mxu0  ;;  %v3167_v60 = vpop.f32.mrf.mxu1 }
 0xac8   :  { %v3127_v50 = vadd.f32 %v3126_v5, %v6660_v1  ;;  %v3168_v32 = vadd.f32 %v3167_v60, %v6975_v46 }
 0xac9   :  { %v3128_v14 = vpop.f32.mrf.mxu0  ;;  %v3169_v39 = vpop.f32.mrf.mxu1 }
 0xacb   :  { %v3129_v18 = vpop.f32.mrf.mxu0  ;;  %v3170_v12 = vpop.f32.mrf.mxu1 }
 0xae5   :  { %v3207_v48 = vpop.f32.mrf.mxu0  ;;  %v3248_v31 = vpop.f32.mrf.mxu1 }
 0xae6   :  { %v3255_v51 = vadd.f32 %v3207_v48, %v3125_v15  ;;  %v3257_v1 = vadd.f32 %v3248_v31, %v3166_v38 }
 0xae7   :  { %v3209_v57 = vpop.f32.mrf.mxu0  ;;  %v3250_v34 = vpop.f32.mrf.mxu1 }
 0xae8   :  { %v3536_v58 = vmul.f32 -1.442695, %v3255_v51  ;;  %v3256_v16 = vadd.f32 %v3209_v57, %v3127_v50  ;;  %v3258_v21 = vadd.f32 %v3250_v34, %v3168_v32 }
 0xae9   :  { %v3211_v24 = vpop.f32.mrf.mxu0  ;;  %v3252_v43 = vpop.f32.mrf.mxu1 }
 0xaea   :  { %4006 = vpow2.f32 %v3536_v58  ;;  %v3537_v49 = vmul.f32 -1.442695, %v3256_v16  ;;  %v3538_v42 = vmul.f32 -1.442695, %v3258_v21 }
 0xaeb   :  { %v3212_v45 = vpop.f32.mrf.mxu0  ;;  %v3253_v6 = vpop.f32.mrf.mxu1 }
 0xaec   :  { %4008 = vpow2.f32 %v3537_v49 }
 0xaed   :  { %4010 = vpow2.f32 %v3538_v42 }
 0xaf7   :  { %v4007_v11 = vpop.eup %4006 }
 0xaf8   :  { %v3262_v55 = vadd.f32 1.0, %v4007_v11 }
 0xaf9   :  { %v4009_v54 = vpop.eup %4008 }
 0xafa   :  { %4012 = vrcp.f32 %v3262_v55  ;;  %v3268_v10 = vadd.f32 1.0, %v4009_v54  ;;  %v4011_v47 = vpop.eup %4010 }
 0xafb   :  { %4014 = vtanh.f32 %v3257_v1  ;;  %v3275_v29 = vadd.f32 1.0, %v4011_v47 }
 0xafc   :  { %4016 = vrcp.f32 %v3268_v10 }
 0xafd   :  { %4018 = vrcp.f32 %v3275_v29 }
 0xb07   :  { %v4013_v0 = vpop.eup %4012 }
 0xb08   :  { %v4015_v8 = vpop.eup %4014 }
 0xb09   :  { %v4017_v20 = vpop.eup %4016  ;;  %v3279_v23 = vmul.f32 %v4015_v8, %v4013_v0 }
 0xb0a   :  { %v3278_v46 = vmul.f32 %v4017_v20, %v6095_v19  ;;  %v4019_v52 = vpop.eup %4018 }
 0xb0c   :  { %v3280_v61 = vadd.f32 %v3279_v23, %v3278_v46 }
 0xb0e   :  { %4020 = vtanh.f32 %v3280_v61 }
 0xb1b   :  { %v4021_v36 = vpop.eup %4020 }
 0xb1c   :  { %v3282_v25 = vmul.f32 %v4021_v36, %v4019_v52 }
 0xb1e   :  { %3590 = vmatmul.mubr.f32.vlgmr.msra.gmra.mxu0 %v3282_v25 }
 0xbde   :  { %v3372_v22 = vpop.f32.mrf.mxu0 }
 0xbdf   :  { %v3373_v13 = vadd.f32 %v3539_v17, %v3372_v22 }
 0xbe0   :  { %v3591_v26 = vpop.f32.mrf.mxu0 }
 0xbe1   :  { %3376 = vst [vmem:[#allocation13] sm:$0xff] %v3373_v13 }
 0xbe2   :  { %4347 = shalt.err (!%p4344_p6)
}
 0xbe3   :  { %3386 = dma.vmem_to_hbm [thread:$0]  %s3384_s21, 128, %s6155_s9, [#allocation4]  }
 0xbe4   :  { %4364 = dma.done.wait [#allocation4], 128  }
 0xbe5   :  { %4365 = vsyncadd [#allocation4], 4294967168 }
 0xbe6   :  { %3390 = vsyncpa [#allocation3], 1 }
 0xbe7   :  { %3391 = vsyncpa [#allocation6], 1 }
 0xbe8   :  { %3392 = vsyncpa [#allocation9], 1 }
 0xbe9   :  { %3393 = vsyncpa [#allocation12], 1 }
 0xbea   :  { %3394 = vsyncpa [#allocation4], 1 }

</bundles_post_ra>
